<compile_context>
chip_gen: v7x
topology: tpu7x:2x2x1
jax: 0.10.0
libtpu: 0.0.40
codegen_flags: <defaults>
</compile_context>

<pallas_src>
import functools

import jax
import jax.numpy as jnp
import numpy as np
from jax import lax
from jax.experimental import pallas as pl
from jax.experimental.pallas import tpu as pltpu

# ---------------------------------------------------------------------------
# Problem sizes (planes must be a multiple of 8 for GroupNorm; stride=1
# requires in_planes == planes for the residual add).
# ---------------------------------------------------------------------------
N = 2          # batch
C = 32         # in_planes == planes
H = 16
W = 16
EPS = 1e-5


# ---------------------------------------------------------------------------
# Pallas kernel: full residual block, (C, L) layout with L = samples * H * W.
# ---------------------------------------------------------------------------
def residual_block_kernel(h, w, num_groups, samples,
                          x_ref,      # (C, L)   f32 input (also the residual)
                          w1_ref,     # (C, 9*C) bf16 conv1 weight (im2col)
                          w2_ref,     # (C, 9*C) bf16 conv2 weight (im2col)
                          p_ref,      # (C, 8)   f32 [b1,g1,be1,b2,g2,be2,0,0]
                          m_ref,      # (9, L)   f32 0/1 boundary masks per tap
                          out_ref,    # (C, L)   f32
                          patch_ref): # (9*C, L) bf16 scratch (im2col patch)
    c, l = x_ref.shape
    hw = h * w
    cg = c // num_groups
    offsets = [(dy, dx) for dy in (-1, 0, 1) for dx in (-1, 0, 1)]

    def fill_patch(x2d):
        # Build the im2col patch (9C, L) in the persistent bf16 VMEM scratch.
        # Tap order t = (dy+1)*3 + (dx+1) matches the weight column layout.
        # Shifts run on the XLU (pltpu.roll); masks are applied in f32 on the
        # VPU before the bf16 pack (v5e-friendly).
        for t, (dy, dx) in enumerate(offsets):
            d = dy * w + dx
            if d == 0:
                rolled = x2d
            else:
                # shifted[:, p] = x2d[:, (p + d) % L]  (wrapped lanes masked)
                rolled = pltpu.roll(x2d, shift=(-d) % l, axis=1)
            if dy == 0 and dx == 0:
                tap = rolled                         # center tap always valid
            else:
                tap = rolled * m_ref[t:t + 1, :]     # (1, L) mask broadcast
            patch_ref[t * c:(t + 1) * c, :] = tap.astype(jnp.bfloat16)

    def conv_gn_relu(x2d, w_ref, bias, gamma, beta):
        fill_patch(x2d)
        # Single K = 9*C matmul on the MXU (bf16 in, f32 accumulate).
        acc = jnp.dot(w_ref[...], patch_ref[...],
                      preferred_element_type=jnp.float32)          # (C, L)
        acc = acc + bias                                           # (C,1) bcast

        inv_cnt = 1.0 / float(cg * hw)
        segs = []
        for s in range(samples):      # GroupNorm statistics are per-sample
            seg = acc[:, s * hw:(s + 1) * hw] if samples > 1 else acc
            ch_sum = jnp.sum(seg, axis=1, keepdims=True)           # (C, 1)
            ch_sq = jnp.sum(seg * seg, axis=1, keepdims=True)      # (C, 1)
            stats = jnp.concatenate([ch_sum, ch_sq], axis=1)       # (C, 2)
            # Group combine via aligned sublane slice + reduce + broadcast
            # (no MXU work on the serial path between the two convs).
            parts = []
            for gi in range(num_groups):
                gsum = jnp.sum(stats[gi * cg:(gi + 1) * cg, :],
                               axis=0, keepdims=True)              # (1, 2)
                parts.append(jnp.broadcast_to(gsum, (cg, 2)))
            grp = jnp.concatenate(parts, axis=0)                   # (C, 2)
            mean = grp[:, 0:1] * inv_cnt
            var = jnp.maximum(grp[:, 1:2] * inv_cnt - mean * mean, 0.0)
            inv = lax.rsqrt(var + EPS)
            y = (seg - mean) * (inv * gamma) + beta
            segs.append(jnp.maximum(y, 0.0))
        return segs[0] if samples == 1 else jnp.concatenate(segs, axis=1)

    x2d = x_ref[...]                                               # (C, L) f32
    b1, g1, be1 = p_ref[:, 0:1], p_ref[:, 1:2], p_ref[:, 2:3]
    b2, g2, be2 = p_ref[:, 3:4], p_ref[:, 4:5], p_ref[:, 5:6]

    y1 = conv_gn_relu(x2d, w1_ref, b1, g1, be1)
    y2 = conv_gn_relu(y1, w2_ref, b2, g2, be2)

    # Residual add (f32) + final relu; lane-dense store.
    out_ref[...] = jnp.maximum(x2d + y2, 0.0).astype(out_ref.dtype)


# ---------------------------------------------------------------------------
# Wrapper: layout plumbing, weight/param packing, mask precompute, pallas_call.
# ---------------------------------------------------------------------------
def _dual_tensorcore_chip() -> bool:
    """True on chips with 2 TensorCores (v7x-class): keep the batch grid."""
    try:
        kind = jax.devices()[0].device_kind.lower()
    except Exception:
        return False
    return ("v7" in kind) or ("7x" in kind)


def residual_block(x_nchw, params):
    n, c, h, w = x_nchw.shape
    hw = h * w
    groups = c // 8

    # Single-TC chips (v5e/v6e): fold batch into lanes -> one program.
    # Dual-TC (v7x): keep grid=(N,) "parallel" so each core takes a sample.
    fold_batch = not _dual_tensorcore_chip()
    samples = n if fold_batch else 1
    l = samples * hw

    x = x_nchw.astype(jnp.float32)
    if fold_batch:
        # (N,C,H,W) -> (C, N*H*W). GroupNorm stats remain per-sample in-kernel.
        x_in = jnp.transpose(x.reshape(n, c, hw), (1, 0, 2)).reshape(c, l)
        grid = (1,)
        x_spec = pl.BlockSpec((c, l), lambda i: (0, 0))
        out_spec = pl.BlockSpec((c, l), lambda i: (0, 0))
        out_shape = jax.ShapeDtypeStruct((c, l), jnp.float32)
    else:
        x_in = x.reshape(n, c, hw)
        grid = (n,)
        x_spec = pl.BlockSpec((None, c, hw), lambda i: (i, 0, 0))
        out_spec = pl.BlockSpec((None, c, hw), lambda i: (i, 0, 0))
        out_shape = jax.ShapeDtypeStruct((n, c, hw), jnp.float32)

    def im2col_weight(wt):
        # PyTorch (out, in, kh, kw) -> (out, kh*kw*in): column (ky*3+kx)*C+cin.
        return jnp.transpose(wt, (0, 2, 3, 1)).reshape(c, 9 * c).astype(jnp.bfloat16)

    # Pack the six per-channel vectors into one (C, 8) f32 input -> one DMA.
    zeros_c = jnp.zeros((c,), jnp.float32)
    pvec = jnp.stack([params["b1"], params["g1"], params["be1"],
                      params["b2"], params["g2"], params["be2"],
                      zeros_c, zeros_c], axis=1).astype(jnp.float32)   # (C, 8)

    # Boundary-validity masks for the 9 taps, precomputed once in the wrapper
    # (also prevents cross-sample tap leakage in the folded layout).
    pidx = np.arange(l)
    ph = (pidx % hw) // w
    pw = pidx % w
    mrows = []
    for dy in (-1, 0, 1):
        for dx in (-1, 0, 1):
            valid = ((ph + dy >= 0) & (ph + dy < h) &
                     (pw + dx >= 0) & (pw + dx < w))
            mrows.append(valid)
    masks = jnp.asarray(np.stack(mrows).astype(np.float32))           # (9, L)

    kernel = functools.partial(residual_block_kernel, h, w, groups, samples)
    wgt_spec = pl.BlockSpec((c, 9 * c), lambda i: (0, 0))

    out = pl.pallas_call(
        kernel,
        out_shape=out_shape,
        grid_spec=pltpu.PrefetchScalarGridSpec(
            num_scalar_prefetch=0,
            grid=grid,
            in_specs=[
                x_spec,                                   # activations
                wgt_spec,                                 # conv1 weight
                wgt_spec,                                 # conv2 weight
                pl.BlockSpec((c, 8), lambda i: (0, 0)),   # packed bias/scale
                pl.BlockSpec((9, l), lambda i: (0, 0)),   # tap boundary masks
            ],
            out_specs=out_spec,
            scratch_shapes=[pltpu.VMEM((9 * c, l), jnp.bfloat16)],    # im2col
        ),
        compiler_params=pltpu.CompilerParams(
            dimension_semantics=("parallel",)),
    )(x_in, im2col_weight(params["w1"]), im2col_weight(params["w2"]),
      pvec, masks)

    if fold_batch:
        return out.reshape(c, n, h, w).transpose(1, 0, 2, 3)          # NCHW
    return out.reshape(n, c, h, w)                                    # NCHW


# ---------------------------------------------------------------------------
# Pure-JAX f32 reference (mirrors the PyTorch module) for correctness check.
# ---------------------------------------------------------------------------
def ref_forward(x, p):
    groups = x.shape[1] // 8

    def conv(inp, wgt, bias):
        out = lax.conv_general_dilated(
            inp, wgt, window_strides=(1, 1), padding=((1, 1), (1, 1)),
            dimension_numbers=("NCHW", "OIHW", "NCHW"))
        return out + bias[None, :, None, None]

    def gn(inp, gamma, beta):
        n_, c_, h_, w_ = inp.shape
        xg = inp.reshape(n_, groups, -1)
        mean = xg.mean(axis=-1, keepdims=True)
        var = xg.var(axis=-1, keepdims=True)
        xn = ((xg - mean) / jnp.sqrt(var + EPS)).reshape(n_, c_, h_, w_)
        return xn * gamma[None, :, None, None] + beta[None, :, None, None]

    y = jax.nn.relu(gn(conv(x, p["w1"], p["b1"]), p["g1"], p["be1"]))
    y = jax.nn.relu(gn(conv(y, p["w2"], p["b2"]), p["g2"], p["be2"]))
    return jax.nn.relu(x + y)


if __name__ == "__main__":
    key = jax.random.PRNGKey(0)
    kx, k1, k2, kb1, kb2, kg1, kg2, ke1, ke2 = jax.random.split(key, 9)

    x = jax.random.normal(kx, (N, C, H, W), jnp.float32)
    params = {
        "w1": jax.random.normal(k1, (C, C, 3, 3), jnp.float32) * 0.05,
        "b1": jax.random.normal(kb1, (C,), jnp.float32) * 0.1,
        "g1": 1.0 + 0.1 * jax.random.normal(kg1, (C,), jnp.float32),
        "be1": 0.1 * jax.random.normal(ke1, (C,), jnp.float32),
        "w2": jax.random.normal(k2, (C, C, 3, 3), jnp.float32) * 0.05,
        "b2": jax.random.normal(kb2, (C,), jnp.float32) * 0.1,
        "g2": 1.0 + 0.1 * jax.random.normal(kg2, (C,), jnp.float32),
        "be2": 0.1 * jax.random.normal(ke2, (C,), jnp.float32),
    }

    out = jax.jit(residual_block)(x, params)
    out = jax.block_until_ready(out)

    ref = jax.block_until_ready(ref_forward(x, params))
    # bf16 MXU inputs (f32 accumulation) -> tolerance appropriate for bf16.
    np.testing.assert_allclose(np.asarray(out), np.asarray(ref),
                               rtol=2e-2, atol=6e-2)
    print("KERNEL_OK")
</pallas_src>

<mosaic_0001>
module attributes {stable_mosaic.version = 11 : i64} {
  func.func @residual_block_kernel(%arg0: i32, %arg1: memref<32x512xf32, #tpu.memory_space<vmem>>, %arg2: memref<32x288xbf16, #tpu.memory_space<vmem>>, %arg3: memref<32x288xbf16, #tpu.memory_space<vmem>>, %arg4: memref<32x8xf32, #tpu.memory_space<vmem>>, %arg5: memref<9x512xf32, #tpu.memory_space<vmem>>, %arg6: memref<32x512xf32, #tpu.memory_space<vmem>>, %arg7: memref<288x512xbf16, #tpu.memory_space<vmem>>) attributes {dimension_semantics = [#tpu.dimension_semantics<parallel>], iteration_bounds = array<i64: 1>, scalar_prefetch = 0 : i64, scratch_operands = 1 : i64, tpu.core_type = #tpu.core_type<tc>, window_params = [{pipeline_mode = #tpu.pipeline_mode<synchronous>, transform_indices = @transform_0, window_bounds = array<i64: 32, 512>}, {pipeline_mode = #tpu.pipeline_mode<synchronous>, transform_indices = @transform_1, window_bounds = array<i64: 32, 288>}, {pipeline_mode = #tpu.pipeline_mode<synchronous>, transform_indices = @transform_2, window_bounds = array<i64: 32, 288>}, {pipeline_mode = #tpu.pipeline_mode<synchronous>, transform_indices = @transform_3, window_bounds = array<i64: 32, 8>}, {pipeline_mode = #tpu.pipeline_mode<synchronous>, transform_indices = @transform_4, window_bounds = array<i64: 9, 512>}, {pipeline_mode = #tpu.pipeline_mode<synchronous>, transform_indices = @transform_5, window_bounds = array<i64: 32, 512>}]} {
    %c0 = arith.constant 0 : index
    %c0_0 = arith.constant 0 : index
    %0 = vector.load %arg1[%c0, %c0_0] : memref<32x512xf32, #tpu.memory_space<vmem>>, vector<32x512xf32>
    %c0_1 = arith.constant 0 : index
    %c0_2 = arith.constant 0 : index
    %1 = vector.load %arg4[%c0_1, %c0_2] : memref<32x8xf32, #tpu.memory_space<vmem>>, vector<32x1xf32>
    %c0_3 = arith.constant 0 : index
    %c1 = arith.constant 1 : index
    %2 = vector.load %arg4[%c0_3, %c1] : memref<32x8xf32, #tpu.memory_space<vmem>>, vector<32x1xf32>
    %c0_4 = arith.constant 0 : index
    %c2 = arith.constant 2 : index
    %3 = vector.load %arg4[%c0_4, %c2] : memref<32x8xf32, #tpu.memory_space<vmem>>, vector<32x1xf32>
    %c0_5 = arith.constant 0 : index
    %c3 = arith.constant 3 : index
    %4 = vector.load %arg4[%c0_5, %c3] : memref<32x8xf32, #tpu.memory_space<vmem>>, vector<32x1xf32>
    %c0_6 = arith.constant 0 : index
    %c4 = arith.constant 4 : index
    %5 = vector.load %arg4[%c0_6, %c4] : memref<32x8xf32, #tpu.memory_space<vmem>>, vector<32x1xf32>
    %c0_7 = arith.constant 0 : index
    %c5 = arith.constant 5 : index
    %6 = vector.load %arg4[%c0_7, %c5] : memref<32x8xf32, #tpu.memory_space<vmem>>, vector<32x1xf32>
    %c17_i32 = arith.constant 17 : i32
    %7 = tpu.dynamic_rotate %0 by %c17_i32 dim 1 : vector<32x512xf32>, i32 -> vector<32x512xf32>
    %c0_8 = arith.constant 0 : index
    %c0_9 = arith.constant 0 : index
    %8 = vector.load %arg5[%c0_8, %c0_9] : memref<9x512xf32, #tpu.memory_space<vmem>>, vector<1x512xf32>
    %9 = vector.broadcast %8 : vector<1x512xf32> to vector<32x512xf32>
    %10 = arith.mulf %7, %9 : vector<32x512xf32>
    %11 = arith.truncf %10 : vector<32x512xf32> to vector<32x512xbf16>
    %c0_10 = arith.constant 0 : index
    %c0_11 = arith.constant 0 : index
    %12 = vector.load %arg7[%c0_10, %c0_11] : memref<288x512xbf16, #tpu.memory_space<vmem>>, vector<32x512xbf16>
    tpu.vector_store %arg7[%c0_10, %c0_11], %11 {strides = array<i32>} : memref<288x512xbf16, #tpu.memory_space<vmem>>, vector<32x512xbf16>,
    %c16_i32 = arith.constant 16 : i32
    %13 = tpu.dynamic_rotate %0 by %c16_i32 dim 1 : vector<32x512xf32>, i32 -> vector<32x512xf32>
    %c1_12 = arith.constant 1 : index
    %c0_13 = arith.constant 0 : index
    %14 = vector.load %arg5[%c1_12, %c0_13] : memref<9x512xf32, #tpu.memory_space<vmem>>, vector<1x512xf32>
    %15 = vector.broadcast %14 : vector<1x512xf32> to vector<32x512xf32>
    %16 = arith.mulf %13, %15 : vector<32x512xf32>
    %17 = arith.truncf %16 : vector<32x512xf32> to vector<32x512xbf16>
    %c32 = arith.constant 32 : index
    %c0_14 = arith.constant 0 : index
    %18 = vector.load %arg7[%c32, %c0_14] : memref<288x512xbf16, #tpu.memory_space<vmem>>, vector<32x512xbf16>
    tpu.vector_store %arg7[%c32, %c0_14], %17 {strides = array<i32>} : memref<288x512xbf16, #tpu.memory_space<vmem>>, vector<32x512xbf16>,
    %c15_i32 = arith.constant 15 : i32
    %19 = tpu.dynamic_rotate %0 by %c15_i32 dim 1 : vector<32x512xf32>, i32 -> vector<32x512xf32>
    %c2_15 = arith.constant 2 : index
    %c0_16 = arith.constant 0 : index
    %20 = vector.load %arg5[%c2_15, %c0_16] : memref<9x512xf32, #tpu.memory_space<vmem>>, vector<1x512xf32>
    %21 = vector.broadcast %20 : vector<1x512xf32> to vector<32x512xf32>
    %22 = arith.mulf %19, %21 : vector<32x512xf32>
    %23 = arith.truncf %22 : vector<32x512xf32> to vector<32x512xbf16>
    %c64 = arith.constant 64 : index
    %c0_17 = arith.constant 0 : index
    %24 = vector.load %arg7[%c64, %c0_17] : memref<288x512xbf16, #tpu.memory_space<vmem>>, vector<32x512xbf16>
    tpu.vector_store %arg7[%c64, %c0_17], %23 {strides = array<i32>} : memref<288x512xbf16, #tpu.memory_space<vmem>>, vector<32x512xbf16>,
    %c1_i32 = arith.constant 1 : i32
    %25 = tpu.dynamic_rotate %0 by %c1_i32 dim 1 : vector<32x512xf32>, i32 -> vector<32x512xf32>
    %c3_18 = arith.constant 3 : index
    %c0_19 = arith.constant 0 : index
    %26 = vector.load %arg5[%c3_18, %c0_19] : memref<9x512xf32, #tpu.memory_space<vmem>>, vector<1x512xf32>
    %27 = vector.broadcast %26 : vector<1x512xf32> to vector<32x512xf32>
    %28 = arith.mulf %25, %27 : vector<32x512xf32>
    %29 = arith.truncf %28 : vector<32x512xf32> to vector<32x512xbf16>
    %c96 = arith.constant 96 : index
    %c0_20 = arith.constant 0 : index
    %30 = vector.load %arg7[%c96, %c0_20] : memref<288x512xbf16, #tpu.memory_space<vmem>>, vector<32x512xbf16>
    tpu.vector_store %arg7[%c96, %c0_20], %29 {strides = array<i32>} : memref<288x512xbf16, #tpu.memory_space<vmem>>, vector<32x512xbf16>,
    %31 = arith.truncf %0 : vector<32x512xf32> to vector<32x512xbf16>
    %c128 = arith.constant 128 : index
    %c0_21 = arith.constant 0 : index
    %32 = vector.load %arg7[%c128, %c0_21] : memref<288x512xbf16, #tpu.memory_space<vmem>>, vector<32x512xbf16>
    tpu.vector_store %arg7[%c128, %c0_21], %31 {strides = array<i32>} : memref<288x512xbf16, #tpu.memory_space<vmem>>, vector<32x512xbf16>,
    %c511_i32 = arith.constant 511 : i32
    %33 = tpu.dynamic_rotate %0 by %c511_i32 dim 1 : vector<32x512xf32>, i32 -> vector<32x512xf32>
    %c5_22 = arith.constant 5 : index
    %c0_23 = arith.constant 0 : index
    %34 = vector.load %arg5[%c5_22, %c0_23] : memref<9x512xf32, #tpu.memory_space<vmem>>, vector<1x512xf32>
    %35 = vector.broadcast %34 : vector<1x512xf32> to vector<32x512xf32>
    %36 = arith.mulf %33, %35 : vector<32x512xf32>
    %37 = arith.truncf %36 : vector<32x512xf32> to vector<32x512xbf16>
    %c160 = arith.constant 160 : index
    %c0_24 = arith.constant 0 : index
    %38 = vector.load %arg7[%c160, %c0_24] : memref<288x512xbf16, #tpu.memory_space<vmem>>, vector<32x512xbf16>
    tpu.vector_store %arg7[%c160, %c0_24], %37 {strides = array<i32>} : memref<288x512xbf16, #tpu.memory_space<vmem>>, vector<32x512xbf16>,
    %c497_i32 = arith.constant 497 : i32
    %39 = tpu.dynamic_rotate %0 by %c497_i32 dim 1 : vector<32x512xf32>, i32 -> vector<32x512xf32>
    %c6 = arith.constant 6 : index
    %c0_25 = arith.constant 0 : index
    %40 = vector.load %arg5[%c6, %c0_25] : memref<9x512xf32, #tpu.memory_space<vmem>>, vector<1x512xf32>
    %41 = vector.broadcast %40 : vector<1x512xf32> to vector<32x512xf32>
    %42 = arith.mulf %39, %41 : vector<32x512xf32>
    %43 = arith.truncf %42 : vector<32x512xf32> to vector<32x512xbf16>
    %c192 = arith.constant 192 : index
    %c0_26 = arith.constant 0 : index
    %44 = vector.load %arg7[%c192, %c0_26] : memref<288x512xbf16, #tpu.memory_space<vmem>>, vector<32x512xbf16>
    tpu.vector_store %arg7[%c192, %c0_26], %43 {strides = array<i32>} : memref<288x512xbf16, #tpu.memory_space<vmem>>, vector<32x512xbf16>,
    %c496_i32 = arith.constant 496 : i32
    %45 = tpu.dynamic_rotate %0 by %c496_i32 dim 1 : vector<32x512xf32>, i32 -> vector<32x512xf32>
    %c7 = arith.constant 7 : index
    %c0_27 = arith.constant 0 : index
    %46 = vector.load %arg5[%c7, %c0_27] : memref<9x512xf32, #tpu.memory_space<vmem>>, vector<1x512xf32>
    %47 = vector.broadcast %46 : vector<1x512xf32> to vector<32x512xf32>
    %48 = arith.mulf %45, %47 : vector<32x512xf32>
    %49 = arith.truncf %48 : vector<32x512xf32> to vector<32x512xbf16>
    %c224 = arith.constant 224 : index
    %c0_28 = arith.constant 0 : index
    %50 = vector.load %arg7[%c224, %c0_28] : memref<288x512xbf16, #tpu.memory_space<vmem>>, vector<32x512xbf16>
    tpu.vector_store %arg7[%c224, %c0_28], %49 {strides = array<i32>} : memref<288x512xbf16, #tpu.memory_space<vmem>>, vector<32x512xbf16>,
    %c495_i32 = arith.constant 495 : i32
    %51 = tpu.dynamic_rotate %0 by %c495_i32 dim 1 : vector<32x512xf32>, i32 -> vector<32x512xf32>
    %c8 = arith.constant 8 : index
    %c0_29 = arith.constant 0 : index
    %52 = vector.load %arg5[%c8, %c0_29] : memref<9x512xf32, #tpu.memory_space<vmem>>, vector<1x512xf32>
    %53 = vector.broadcast %52 : vector<1x512xf32> to vector<32x512xf32>
    %54 = arith.mulf %51, %53 : vector<32x512xf32>
    %55 = arith.truncf %54 : vector<32x512xf32> to vector<32x512xbf16>
    %c256 = arith.constant 256 : index
    %c0_30 = arith.constant 0 : index
    %56 = vector.load %arg7[%c256, %c0_30] : memref<288x512xbf16, #tpu.memory_space<vmem>>, vector<32x512xbf16>
    tpu.vector_store %arg7[%c256, %c0_30], %55 {strides = array<i32>} : memref<288x512xbf16, #tpu.memory_space<vmem>>, vector<32x512xbf16>,
    %c0_31 = arith.constant 0 : index
    %c0_32 = arith.constant 0 : index
    %57 = vector.load %arg2[%c0_31, %c0_32] : memref<32x288xbf16, #tpu.memory_space<vmem>>, vector<32x288xbf16>
    %c0_33 = arith.constant 0 : index
    %c0_34 = arith.constant 0 : index
    %58 = vector.load %arg7[%c0_33, %c0_34] : memref<288x512xbf16, #tpu.memory_space<vmem>>, vector<288x512xbf16>
    %cst = arith.constant dense<0.000000e+00> : vector<32x512xf32>
    %59 = tpu.matmul %57, %58, %cst {dimension_numbers = #tpu.dot_dimension_numbers<[1], [0], [0], [1], [0, 0, 1, 1], [], []>} : vector<32x288xbf16>, vector<288x512xbf16>, vector<32x512xf32> -> vector<32x512xf32>
    %60 = vector.broadcast %1 : vector<32x1xf32> to vector<32x512xf32>
    %61 = arith.addf %59, %60 : vector<32x512xf32>
    %62 = vector.extract_strided_slice %61 {offsets = [0, 0], sizes = [32, 256], strides = [1, 1]} : vector<32x512xf32> to vector<32x256xf32>
    %cst_35 = arith.constant dense<0.000000e+00> : vector<32xf32>
    %63 = vector.multi_reduction <add>, %62, %cst_35 [1] : vector<32x256xf32> to vector<32xf32>
    %64 = vector.shape_cast %63 : vector<32xf32> to vector<32x1xf32>
    %65 = arith.mulf %62, %62 : vector<32x256xf32>
    %cst_36 = arith.constant dense<0.000000e+00> : vector<32xf32>
    %66 = vector.multi_reduction <add>, %65, %cst_36 [1] : vector<32x256xf32> to vector<32xf32>
    %67 = vector.shape_cast %66 : vector<32xf32> to vector<32x1xf32>
    %68 = tpu.concatenate %64, %67 in 1 : vector<32x1xf32>, vector<32x1xf32> -> vector<32x2xf32>
    %69 = vector.extract_strided_slice %68 {offsets = [0, 0], sizes = [8, 2], strides = [1, 1]} : vector<32x2xf32> to vector<8x2xf32>
    %cst_37 = arith.constant dense<0.000000e+00> : vector<2xf32>
    %70 = vector.multi_reduction <add>, %69, %cst_37 [0] : vector<8x2xf32> to vector<2xf32>
    %71 = vector.shape_cast %70 : vector<2xf32> to vector<1x2xf32>
    %72 = vector.shape_cast %71 : vector<1x2xf32> to vector<1x2xf32>
    %73 = vector.broadcast %72 : vector<1x2xf32> to vector<8x2xf32>
    %74 = vector.extract_strided_slice %68 {offsets = [8, 0], sizes = [8, 2], strides = [1, 1]} : vector<32x2xf32> to vector<8x2xf32>
    %cst_38 = arith.constant dense<0.000000e+00> : vector<2xf32>
    %75 = vector.multi_reduction <add>, %74, %cst_38 [0] : vector<8x2xf32> to vector<2xf32>
    %76 = vector.shape_cast %75 : vector<2xf32> to vector<1x2xf32>
    %77 = vector.shape_cast %76 : vector<1x2xf32> to vector<1x2xf32>
    %78 = vector.broadcast %77 : vector<1x2xf32> to vector<8x2xf32>
    %79 = vector.extract_strided_slice %68 {offsets = [16, 0], sizes = [8, 2], strides = [1, 1]} : vector<32x2xf32> to vector<8x2xf32>
    %cst_39 = arith.constant dense<0.000000e+00> : vector<2xf32>
    %80 = vector.multi_reduction <add>, %79, %cst_39 [0] : vector<8x2xf32> to vector<2xf32>
    %81 = vector.shape_cast %80 : vector<2xf32> to vector<1x2xf32>
    %82 = vector.shape_cast %81 : vector<1x2xf32> to vector<1x2xf32>
    %83 = vector.broadcast %82 : vector<1x2xf32> to vector<8x2xf32>
    %84 = vector.extract_strided_slice %68 {offsets = [24, 0], sizes = [8, 2], strides = [1, 1]} : vector<32x2xf32> to vector<8x2xf32>
    %cst_40 = arith.constant dense<0.000000e+00> : vector<2xf32>
    %85 = vector.multi_reduction <add>, %84, %cst_40 [0] : vector<8x2xf32> to vector<2xf32>
    %86 = vector.shape_cast %85 : vector<2xf32> to vector<1x2xf32>
    %87 = vector.shape_cast %86 : vector<1x2xf32> to vector<1x2xf32>
    %88 = vector.broadcast %87 : vector<1x2xf32> to vector<8x2xf32>
    %89 = tpu.concatenate %73, %78, %83, %88 in 0 : vector<8x2xf32>, vector<8x2xf32>, vector<8x2xf32>, vector<8x2xf32> -> vector<32x2xf32>
    %90 = vector.extract_strided_slice %89 {offsets = [0, 0], sizes = [32, 1], strides = [1, 1]} : vector<32x2xf32> to vector<32x1xf32>
    %cst_41 = arith.constant 4.8828125E-4 : f32
    %91 = vector.broadcast %cst_41 : f32 to vector<32x1xf32>
    %92 = arith.mulf %90, %91 : vector<32x1xf32>
    %93 = vector.extract_strided_slice %89 {offsets = [0, 1], sizes = [32, 1], strides = [1, 1]} : vector<32x2xf32> to vector<32x1xf32>
    %cst_42 = arith.constant 4.8828125E-4 : f32
    %94 = vector.broadcast %cst_42 : f32 to vector<32x1xf32>
    %95 = arith.mulf %93, %94 : vector<32x1xf32>
    %96 = arith.mulf %92, %92 : vector<32x1xf32>
    %97 = arith.subf %95, %96 : vector<32x1xf32>
    %cst_43 = arith.constant 0.000000e+00 : f32
    %98 = vector.broadcast %cst_43 : f32 to vector<32x1xf32>
    %99 = arith.maximumf %97, %98 : vector<32x1xf32>
    %cst_44 = arith.constant 9.99999974E-6 : f32
    %100 = vector.broadcast %cst_44 : f32 to vector<32x1xf32>
    %101 = arith.addf %99, %100 : vector<32x1xf32>
    %102 = math.rsqrt %101 : vector<32x1xf32>
    %103 = vector.broadcast %92 : vector<32x1xf32> to vector<32x256xf32>
    %104 = arith.subf %62, %103 : vector<32x256xf32>
    %105 = arith.mulf %102, %2 : vector<32x1xf32>
    %106 = vector.broadcast %105 : vector<32x1xf32> to vector<32x256xf32>
    %107 = arith.mulf %104, %106 : vector<32x256xf32>
    %108 = vector.broadcast %3 : vector<32x1xf32> to vector<32x256xf32>
    %109 = arith.addf %107, %108 : vector<32x256xf32>
    %cst_45 = arith.constant 0.000000e+00 : f32
    %110 = vector.broadcast %cst_45 : f32 to vector<32x256xf32>
    %111 = arith.maximumf %109, %110 : vector<32x256xf32>
    %112 = vector.extract_strided_slice %61 {offsets = [0, 256], sizes = [32, 256], strides = [1, 1]} : vector<32x512xf32> to vector<32x256xf32>
    %cst_46 = arith.constant dense<0.000000e+00> : vector<32xf32>
    %113 = vector.multi_reduction <add>, %112, %cst_46 [1] : vector<32x256xf32> to vector<32xf32>
    %114 = vector.shape_cast %113 : vector<32xf32> to vector<32x1xf32>
    %115 = arith.mulf %112, %112 : vector<32x256xf32>
    %cst_47 = arith.constant dense<0.000000e+00> : vector<32xf32>
    %116 = vector.multi_reduction <add>, %115, %cst_47 [1] : vector<32x256xf32> to vector<32xf32>
    %117 = vector.shape_cast %116 : vector<32xf32> to vector<32x1xf32>
    %118 = tpu.concatenate %114, %117 in 1 : vector<32x1xf32>, vector<32x1xf32> -> vector<32x2xf32>
    %119 = vector.extract_strided_slice %118 {offsets = [0, 0], sizes = [8, 2], strides = [1, 1]} : vector<32x2xf32> to vector<8x2xf32>
    %cst_48 = arith.constant dense<0.000000e+00> : vector<2xf32>
    %120 = vector.multi_reduction <add>, %119, %cst_48 [0] : vector<8x2xf32> to vector<2xf32>
    %121 = vector.shape_cast %120 : vector<2xf32> to vector<1x2xf32>
    %122 = vector.shape_cast %121 : vector<1x2xf32> to vector<1x2xf32>
    %123 = vector.broadcast %122 : vector<1x2xf32> to vector<8x2xf32>
    %124 = vector.extract_strided_slice %118 {offsets = [8, 0], sizes = [8, 2], strides = [1, 1]} : vector<32x2xf32> to vector<8x2xf32>
    %cst_49 = arith.constant dense<0.000000e+00> : vector<2xf32>
    %125 = vector.multi_reduction <add>, %124, %cst_49 [0] : vector<8x2xf32> to vector<2xf32>
    %126 = vector.shape_cast %125 : vector<2xf32> to vector<1x2xf32>
    %127 = vector.shape_cast %126 : vector<1x2xf32> to vector<1x2xf32>
    %128 = vector.broadcast %127 : vector<1x2xf32> to vector<8x2xf32>
    %129 = vector.extract_strided_slice %118 {offsets = [16, 0], sizes = [8, 2], strides = [1, 1]} : vector<32x2xf32> to vector<8x2xf32>
    %cst_50 = arith.constant dense<0.000000e+00> : vector<2xf32>
    %130 = vector.multi_reduction <add>, %129, %cst_50 [0] : vector<8x2xf32> to vector<2xf32>
    %131 = vector.shape_cast %130 : vector<2xf32> to vector<1x2xf32>
    %132 = vector.shape_cast %131 : vector<1x2xf32> to vector<1x2xf32>
    %133 = vector.broadcast %132 : vector<1x2xf32> to vector<8x2xf32>
    %134 = vector.extract_strided_slice %118 {offsets = [24, 0], sizes = [8, 2], strides = [1, 1]} : vector<32x2xf32> to vector<8x2xf32>
    %cst_51 = arith.constant dense<0.000000e+00> : vector<2xf32>
    %135 = vector.multi_reduction <add>, %134, %cst_51 [0] : vector<8x2xf32> to vector<2xf32>
    %136 = vector.shape_cast %135 : vector<2xf32> to vector<1x2xf32>
    %137 = vector.shape_cast %136 : vector<1x2xf32> to vector<1x2xf32>
    %138 = vector.broadcast %137 : vector<1x2xf32> to vector<8x2xf32>
    %139 = tpu.concatenate %123, %128, %133, %138 in 0 : vector<8x2xf32>, vector<8x2xf32>, vector<8x2xf32>, vector<8x2xf32> -> vector<32x2xf32>
    %140 = vector.extract_strided_slice %139 {offsets = [0, 0], sizes = [32, 1], strides = [1, 1]} : vector<32x2xf32> to vector<32x1xf32>
    %cst_52 = arith.constant 4.8828125E-4 : f32
    %141 = vector.broadcast %cst_52 : f32 to vector<32x1xf32>
    %142 = arith.mulf %140, %141 : vector<32x1xf32>
    %143 = vector.extract_strided_slice %139 {offsets = [0, 1], sizes = [32, 1], strides = [1, 1]} : vector<32x2xf32> to vector<32x1xf32>
    %cst_53 = arith.constant 4.8828125E-4 : f32
    %144 = vector.broadcast %cst_53 : f32 to vector<32x1xf32>
    %145 = arith.mulf %143, %144 : vector<32x1xf32>
    %146 = arith.mulf %142, %142 : vector<32x1xf32>
    %147 = arith.subf %145, %146 : vector<32x1xf32>
    %cst_54 = arith.constant 0.000000e+00 : f32
    %148 = vector.broadcast %cst_54 : f32 to vector<32x1xf32>
    %149 = arith.maximumf %147, %148 : vector<32x1xf32>
    %cst_55 = arith.constant 9.99999974E-6 : f32
    %150 = vector.broadcast %cst_55 : f32 to vector<32x1xf32>
    %151 = arith.addf %149, %150 : vector<32x1xf32>
    %152 = math.rsqrt %151 : vector<32x1xf32>
    %153 = vector.broadcast %142 : vector<32x1xf32> to vector<32x256xf32>
    %154 = arith.subf %112, %153 : vector<32x256xf32>
    %155 = arith.mulf %152, %2 : vector<32x1xf32>
    %156 = vector.broadcast %155 : vector<32x1xf32> to vector<32x256xf32>
    %157 = arith.mulf %154, %156 : vector<32x256xf32>
    %158 = vector.broadcast %3 : vector<32x1xf32> to vector<32x256xf32>
    %159 = arith.addf %157, %158 : vector<32x256xf32>
    %cst_56 = arith.constant 0.000000e+00 : f32
    %160 = vector.broadcast %cst_56 : f32 to vector<32x256xf32>
    %161 = arith.maximumf %159, %160 : vector<32x256xf32>
    %162 = tpu.concatenate %111, %161 in 1 : vector<32x256xf32>, vector<32x256xf32> -> vector<32x512xf32>
    %c17_i32_57 = arith.constant 17 : i32
    %163 = tpu.dynamic_rotate %162 by %c17_i32_57 dim 1 : vector<32x512xf32>, i32 -> vector<32x512xf32>
    %c0_58 = arith.constant 0 : index
    %c0_59 = arith.constant 0 : index
    %164 = vector.load %arg5[%c0_58, %c0_59] : memref<9x512xf32, #tpu.memory_space<vmem>>, vector<1x512xf32>
    %165 = vector.broadcast %164 : vector<1x512xf32> to vector<32x512xf32>
    %166 = arith.mulf %163, %165 : vector<32x512xf32>
    %167 = arith.truncf %166 : vector<32x512xf32> to vector<32x512xbf16>
    %c0_60 = arith.constant 0 : index
    %c0_61 = arith.constant 0 : index
    %168 = vector.load %arg7[%c0_60, %c0_61] : memref<288x512xbf16, #tpu.memory_space<vmem>>, vector<32x512xbf16>
    tpu.vector_store %arg7[%c0_60, %c0_61], %167 {strides = array<i32>} : memref<288x512xbf16, #tpu.memory_space<vmem>>, vector<32x512xbf16>,
    %c16_i32_62 = arith.constant 16 : i32
    %169 = tpu.dynamic_rotate %162 by %c16_i32_62 dim 1 : vector<32x512xf32>, i32 -> vector<32x512xf32>
    %c1_63 = arith.constant 1 : index
    %c0_64 = arith.constant 0 : index
    %170 = vector.load %arg5[%c1_63, %c0_64] : memref<9x512xf32, #tpu.memory_space<vmem>>, vector<1x512xf32>
    %171 = vector.broadcast %170 : vector<1x512xf32> to vector<32x512xf32>
    %172 = arith.mulf %169, %171 : vector<32x512xf32>
    %173 = arith.truncf %172 : vector<32x512xf32> to vector<32x512xbf16>
    %c32_65 = arith.constant 32 : index
    %c0_66 = arith.constant 0 : index
    %174 = vector.load %arg7[%c32_65, %c0_66] : memref<288x512xbf16, #tpu.memory_space<vmem>>, vector<32x512xbf16>
    tpu.vector_store %arg7[%c32_65, %c0_66], %173 {strides = array<i32>} : memref<288x512xbf16, #tpu.memory_space<vmem>>, vector<32x512xbf16>,
    %c15_i32_67 = arith.constant 15 : i32
    %175 = tpu.dynamic_rotate %162 by %c15_i32_67 dim 1 : vector<32x512xf32>, i32 -> vector<32x512xf32>
    %c2_68 = arith.constant 2 : index
    %c0_69 = arith.constant 0 : index
    %176 = vector.load %arg5[%c2_68, %c0_69] : memref<9x512xf32, #tpu.memory_space<vmem>>, vector<1x512xf32>
    %177 = vector.broadcast %176 : vector<1x512xf32> to vector<32x512xf32>
    %178 = arith.mulf %175, %177 : vector<32x512xf32>
    %179 = arith.truncf %178 : vector<32x512xf32> to vector<32x512xbf16>
    %c64_70 = arith.constant 64 : index
    %c0_71 = arith.constant 0 : index
    %180 = vector.load %arg7[%c64_70, %c0_71] : memref<288x512xbf16, #tpu.memory_space<vmem>>, vector<32x512xbf16>
    tpu.vector_store %arg7[%c64_70, %c0_71], %179 {strides = array<i32>} : memref<288x512xbf16, #tpu.memory_space<vmem>>, vector<32x512xbf16>,
    %c1_i32_72 = arith.constant 1 : i32
    %181 = tpu.dynamic_rotate %162 by %c1_i32_72 dim 1 : vector<32x512xf32>, i32 -> vector<32x512xf32>
    %c3_73 = arith.constant 3 : index
    %c0_74 = arith.constant 0 : index
    %182 = vector.load %arg5[%c3_73, %c0_74] : memref<9x512xf32, #tpu.memory_space<vmem>>, vector<1x512xf32>
    %183 = vector.broadcast %182 : vector<1x512xf32> to vector<32x512xf32>
    %184 = arith.mulf %181, %183 : vector<32x512xf32>
    %185 = arith.truncf %184 : vector<32x512xf32> to vector<32x512xbf16>
    %c96_75 = arith.constant 96 : index
    %c0_76 = arith.constant 0 : index
    %186 = vector.load %arg7[%c96_75, %c0_76] : memref<288x512xbf16, #tpu.memory_space<vmem>>, vector<32x512xbf16>
    tpu.vector_store %arg7[%c96_75, %c0_76], %185 {strides = array<i32>} : memref<288x512xbf16, #tpu.memory_space<vmem>>, vector<32x512xbf16>,
    %187 = arith.truncf %162 : vector<32x512xf32> to vector<32x512xbf16>
    %c128_77 = arith.constant 128 : index
    %c0_78 = arith.constant 0 : index
    %188 = vector.load %arg7[%c128_77, %c0_78] : memref<288x512xbf16, #tpu.memory_space<vmem>>, vector<32x512xbf16>
    tpu.vector_store %arg7[%c128_77, %c0_78], %187 {strides = array<i32>} : memref<288x512xbf16, #tpu.memory_space<vmem>>, vector<32x512xbf16>,
    %c511_i32_79 = arith.constant 511 : i32
    %189 = tpu.dynamic_rotate %162 by %c511_i32_79 dim 1 : vector<32x512xf32>, i32 -> vector<32x512xf32>
    %c5_80 = arith.constant 5 : index
    %c0_81 = arith.constant 0 : index
    %190 = vector.load %arg5[%c5_80, %c0_81] : memref<9x512xf32, #tpu.memory_space<vmem>>, vector<1x512xf32>
    %191 = vector.broadcast %190 : vector<1x512xf32> to vector<32x512xf32>
    %192 = arith.mulf %189, %191 : vector<32x512xf32>
    %193 = arith.truncf %192 : vector<32x512xf32> to vector<32x512xbf16>
    %c160_82 = arith.constant 160 : index
    %c0_83 = arith.constant 0 : index
    %194 = vector.load %arg7[%c160_82, %c0_83] : memref<288x512xbf16, #tpu.memory_space<vmem>>, vector<32x512xbf16>
    tpu.vector_store %arg7[%c160_82, %c0_83], %193 {strides = array<i32>} : memref<288x512xbf16, #tpu.memory_space<vmem>>, vector<32x512xbf16>,
    %c497_i32_84 = arith.constant 497 : i32
    %195 = tpu.dynamic_rotate %162 by %c497_i32_84 dim 1 : vector<32x512xf32>, i32 -> vector<32x512xf32>
    %c6_85 = arith.constant 6 : index
    %c0_86 = arith.constant 0 : index
    %196 = vector.load %arg5[%c6_85, %c0_86] : memref<9x512xf32, #tpu.memory_space<vmem>>, vector<1x512xf32>
    %197 = vector.broadcast %196 : vector<1x512xf32> to vector<32x512xf32>
    %198 = arith.mulf %195, %197 : vector<32x512xf32>
    %199 = arith.truncf %198 : vector<32x512xf32> to vector<32x512xbf16>
    %c192_87 = arith.constant 192 : index
    %c0_88 = arith.constant 0 : index
    %200 = vector.load %arg7[%c192_87, %c0_88] : memref<288x512xbf16, #tpu.memory_space<vmem>>, vector<32x512xbf16>
    tpu.vector_store %arg7[%c192_87, %c0_88], %199 {strides = array<i32>} : memref<288x512xbf16, #tpu.memory_space<vmem>>, vector<32x512xbf16>,
    %c496_i32_89 = arith.constant 496 : i32
    %201 = tpu.dynamic_rotate %162 by %c496_i32_89 dim 1 : vector<32x512xf32>, i32 -> vector<32x512xf32>
    %c7_90 = arith.constant 7 : index
    %c0_91 = arith.constant 0 : index
    %202 = vector.load %arg5[%c7_90, %c0_91] : memref<9x512xf32, #tpu.memory_space<vmem>>, vector<1x512xf32>
    %203 = vector.broadcast %202 : vector<1x512xf32> to vector<32x512xf32>
    %204 = arith.mulf %201, %203 : vector<32x512xf32>
    %205 = arith.truncf %204 : vector<32x512xf32> to vector<32x512xbf16>
    %c224_92 = arith.constant 224 : index
    %c0_93 = arith.constant 0 : index
    %206 = vector.load %arg7[%c224_92, %c0_93] : memref<288x512xbf16, #tpu.memory_space<vmem>>, vector<32x512xbf16>
    tpu.vector_store %arg7[%c224_92, %c0_93], %205 {strides = array<i32>} : memref<288x512xbf16, #tpu.memory_space<vmem>>, vector<32x512xbf16>,
    %c495_i32_94 = arith.constant 495 : i32
    %207 = tpu.dynamic_rotate %162 by %c495_i32_94 dim 1 : vector<32x512xf32>, i32 -> vector<32x512xf32>
    %c8_95 = arith.constant 8 : index
    %c0_96 = arith.constant 0 : index
    %208 = vector.load %arg5[%c8_95, %c0_96] : memref<9x512xf32, #tpu.memory_space<vmem>>, vector<1x512xf32>
    %209 = vector.broadcast %208 : vector<1x512xf32> to vector<32x512xf32>
    %210 = arith.mulf %207, %209 : vector<32x512xf32>
    %211 = arith.truncf %210 : vector<32x512xf32> to vector<32x512xbf16>
    %c256_97 = arith.constant 256 : index
    %c0_98 = arith.constant 0 : index
    %212 = vector.load %arg7[%c256_97, %c0_98] : memref<288x512xbf16, #tpu.memory_space<vmem>>, vector<32x512xbf16>
    tpu.vector_store %arg7[%c256_97, %c0_98], %211 {strides = array<i32>} : memref<288x512xbf16, #tpu.memory_space<vmem>>, vector<32x512xbf16>,
    %c0_99 = arith.constant 0 : index
    %c0_100 = arith.constant 0 : index
    %213 = vector.load %arg3[%c0_99, %c0_100] : memref<32x288xbf16, #tpu.memory_space<vmem>>, vector<32x288xbf16>
    %c0_101 = arith.constant 0 : index
    %c0_102 = arith.constant 0 : index
    %214 = vector.load %arg7[%c0_101, %c0_102] : memref<288x512xbf16, #tpu.memory_space<vmem>>, vector<288x512xbf16>
    %cst_103 = arith.constant dense<0.000000e+00> : vector<32x512xf32>
    %215 = tpu.matmul %213, %214, %cst_103 {dimension_numbers = #tpu.dot_dimension_numbers<[1], [0], [0], [1], [0, 0, 1, 1], [], []>} : vector<32x288xbf16>, vector<288x512xbf16>, vector<32x512xf32> -> vector<32x512xf32>
    %216 = vector.broadcast %4 : vector<32x1xf32> to vector<32x512xf32>
    %217 = arith.addf %215, %216 : vector<32x512xf32>
    %218 = vector.extract_strided_slice %217 {offsets = [0, 0], sizes = [32, 256], strides = [1, 1]} : vector<32x512xf32> to vector<32x256xf32>
    %cst_104 = arith.constant dense<0.000000e+00> : vector<32xf32>
    %219 = vector.multi_reduction <add>, %218, %cst_104 [1] : vector<32x256xf32> to vector<32xf32>
    %220 = vector.shape_cast %219 : vector<32xf32> to vector<32x1xf32>
    %221 = arith.mulf %218, %218 : vector<32x256xf32>
    %cst_105 = arith.constant dense<0.000000e+00> : vector<32xf32>
    %222 = vector.multi_reduction <add>, %221, %cst_105 [1] : vector<32x256xf32> to vector<32xf32>
    %223 = vector.shape_cast %222 : vector<32xf32> to vector<32x1xf32>
    %224 = tpu.concatenate %220, %223 in 1 : vector<32x1xf32>, vector<32x1xf32> -> vector<32x2xf32>
    %225 = vector.extract_strided_slice %224 {offsets = [0, 0], sizes = [8, 2], strides = [1, 1]} : vector<32x2xf32> to vector<8x2xf32>
    %cst_106 = arith.constant dense<0.000000e+00> : vector<2xf32>
    %226 = vector.multi_reduction <add>, %225, %cst_106 [0] : vector<8x2xf32> to vector<2xf32>
    %227 = vector.shape_cast %226 : vector<2xf32> to vector<1x2xf32>
    %228 = vector.shape_cast %227 : vector<1x2xf32> to vector<1x2xf32>
    %229 = vector.broadcast %228 : vector<1x2xf32> to vector<8x2xf32>
    %230 = vector.extract_strided_slice %224 {offsets = [8, 0], sizes = [8, 2], strides = [1, 1]} : vector<32x2xf32> to vector<8x2xf32>
    %cst_107 = arith.constant dense<0.000000e+00> : vector<2xf32>
    %231 = vector.multi_reduction <add>, %230, %cst_107 [0] : vector<8x2xf32> to vector<2xf32>
    %232 = vector.shape_cast %231 : vector<2xf32> to vector<1x2xf32>
    %233 = vector.shape_cast %232 : vector<1x2xf32> to vector<1x2xf32>
    %234 = vector.broadcast %233 : vector<1x2xf32> to vector<8x2xf32>
    %235 = vector.extract_strided_slice %224 {offsets = [16, 0], sizes = [8, 2], strides = [1, 1]} : vector<32x2xf32> to vector<8x2xf32>
    %cst_108 = arith.constant dense<0.000000e+00> : vector<2xf32>
    %236 = vector.multi_reduction <add>, %235, %cst_108 [0] : vector<8x2xf32> to vector<2xf32>
    %237 = vector.shape_cast %236 : vector<2xf32> to vector<1x2xf32>
    %238 = vector.shape_cast %237 : vector<1x2xf32> to vector<1x2xf32>
    %239 = vector.broadcast %238 : vector<1x2xf32> to vector<8x2xf32>
    %240 = vector.extract_strided_slice %224 {offsets = [24, 0], sizes = [8, 2], strides = [1, 1]} : vector<32x2xf32> to vector<8x2xf32>
    %cst_109 = arith.constant dense<0.000000e+00> : vector<2xf32>
    %241 = vector.multi_reduction <add>, %240, %cst_109 [0] : vector<8x2xf32> to vector<2xf32>
    %242 = vector.shape_cast %241 : vector<2xf32> to vector<1x2xf32>
    %243 = vector.shape_cast %242 : vector<1x2xf32> to vector<1x2xf32>
    %244 = vector.broadcast %243 : vector<1x2xf32> to vector<8x2xf32>
    %245 = tpu.concatenate %229, %234, %239, %244 in 0 : vector<8x2xf32>, vector<8x2xf32>, vector<8x2xf32>, vector<8x2xf32> -> vector<32x2xf32>
    %246 = vector.extract_strided_slice %245 {offsets = [0, 0], sizes = [32, 1], strides = [1, 1]} : vector<32x2xf32> to vector<32x1xf32>
    %cst_110 = arith.constant 4.8828125E-4 : f32
    %247 = vector.broadcast %cst_110 : f32 to vector<32x1xf32>
    %248 = arith.mulf %246, %247 : vector<32x1xf32>
    %249 = vector.extract_strided_slice %245 {offsets = [0, 1], sizes = [32, 1], strides = [1, 1]} : vector<32x2xf32> to vector<32x1xf32>
    %cst_111 = arith.constant 4.8828125E-4 : f32
    %250 = vector.broadcast %cst_111 : f32 to vector<32x1xf32>
    %251 = arith.mulf %249, %250 : vector<32x1xf32>
    %252 = arith.mulf %248, %248 : vector<32x1xf32>
    %253 = arith.subf %251, %252 : vector<32x1xf32>
    %cst_112 = arith.constant 0.000000e+00 : f32
    %254 = vector.broadcast %cst_112 : f32 to vector<32x1xf32>
    %255 = arith.maximumf %253, %254 : vector<32x1xf32>
    %cst_113 = arith.constant 9.99999974E-6 : f32
    %256 = vector.broadcast %cst_113 : f32 to vector<32x1xf32>
    %257 = arith.addf %255, %256 : vector<32x1xf32>
    %258 = math.rsqrt %257 : vector<32x1xf32>
    %259 = vector.broadcast %248 : vector<32x1xf32> to vector<32x256xf32>
    %260 = arith.subf %218, %259 : vector<32x256xf32>
    %261 = arith.mulf %258, %5 : vector<32x1xf32>
    %262 = vector.broadcast %261 : vector<32x1xf32> to vector<32x256xf32>
    %263 = arith.mulf %260, %262 : vector<32x256xf32>
    %264 = vector.broadcast %6 : vector<32x1xf32> to vector<32x256xf32>
    %265 = arith.addf %263, %264 : vector<32x256xf32>
    %cst_114 = arith.constant 0.000000e+00 : f32
    %266 = vector.broadcast %cst_114 : f32 to vector<32x256xf32>
    %267 = arith.maximumf %265, %266 : vector<32x256xf32>
    %268 = vector.extract_strided_slice %217 {offsets = [0, 256], sizes = [32, 256], strides = [1, 1]} : vector<32x512xf32> to vector<32x256xf32>
    %cst_115 = arith.constant dense<0.000000e+00> : vector<32xf32>
    %269 = vector.multi_reduction <add>, %268, %cst_115 [1] : vector<32x256xf32> to vector<32xf32>
    %270 = vector.shape_cast %269 : vector<32xf32> to vector<32x1xf32>
    %271 = arith.mulf %268, %268 : vector<32x256xf32>
    %cst_116 = arith.constant dense<0.000000e+00> : vector<32xf32>
    %272 = vector.multi_reduction <add>, %271, %cst_116 [1] : vector<32x256xf32> to vector<32xf32>
    %273 = vector.shape_cast %272 : vector<32xf32> to vector<32x1xf32>
    %274 = tpu.concatenate %270, %273 in 1 : vector<32x1xf32>, vector<32x1xf32> -> vector<32x2xf32>
    %275 = vector.extract_strided_slice %274 {offsets = [0, 0], sizes = [8, 2], strides = [1, 1]} : vector<32x2xf32> to vector<8x2xf32>
    %cst_117 = arith.constant dense<0.000000e+00> : vector<2xf32>
    %276 = vector.multi_reduction <add>, %275, %cst_117 [0] : vector<8x2xf32> to vector<2xf32>
    %277 = vector.shape_cast %276 : vector<2xf32> to vector<1x2xf32>
    %278 = vector.shape_cast %277 : vector<1x2xf32> to vector<1x2xf32>
    %279 = vector.broadcast %278 : vector<1x2xf32> to vector<8x2xf32>
    %280 = vector.extract_strided_slice %274 {offsets = [8, 0], sizes = [8, 2], strides = [1, 1]} : vector<32x2xf32> to vector<8x2xf32>
    %cst_118 = arith.constant dense<0.000000e+00> : vector<2xf32>
    %281 = vector.multi_reduction <add>, %280, %cst_118 [0] : vector<8x2xf32> to vector<2xf32>
    %282 = vector.shape_cast %281 : vector<2xf32> to vector<1x2xf32>
    %283 = vector.shape_cast %282 : vector<1x2xf32> to vector<1x2xf32>
    %284 = vector.broadcast %283 : vector<1x2xf32> to vector<8x2xf32>
    %285 = vector.extract_strided_slice %274 {offsets = [16, 0], sizes = [8, 2], strides = [1, 1]} : vector<32x2xf32> to vector<8x2xf32>
    %cst_119 = arith.constant dense<0.000000e+00> : vector<2xf32>
    %286 = vector.multi_reduction <add>, %285, %cst_119 [0] : vector<8x2xf32> to vector<2xf32>
    %287 = vector.shape_cast %286 : vector<2xf32> to vector<1x2xf32>
    %288 = vector.shape_cast %287 : vector<1x2xf32> to vector<1x2xf32>
    %289 = vector.broadcast %288 : vector<1x2xf32> to vector<8x2xf32>
    %290 = vector.extract_strided_slice %274 {offsets = [24, 0], sizes = [8, 2], strides = [1, 1]} : vector<32x2xf32> to vector<8x2xf32>
    %cst_120 = arith.constant dense<0.000000e+00> : vector<2xf32>
    %291 = vector.multi_reduction <add>, %290, %cst_120 [0] : vector<8x2xf32> to vector<2xf32>
    %292 = vector.shape_cast %291 : vector<2xf32> to vector<1x2xf32>
    %293 = vector.shape_cast %292 : vector<1x2xf32> to vector<1x2xf32>
    %294 = vector.broadcast %293 : vector<1x2xf32> to vector<8x2xf32>
    %295 = tpu.concatenate %279, %284, %289, %294 in 0 : vector<8x2xf32>, vector<8x2xf32>, vector<8x2xf32>, vector<8x2xf32> -> vector<32x2xf32>
    %296 = vector.extract_strided_slice %295 {offsets = [0, 0], sizes = [32, 1], strides = [1, 1]} : vector<32x2xf32> to vector<32x1xf32>
    %cst_121 = arith.constant 4.8828125E-4 : f32
    %297 = vector.broadcast %cst_121 : f32 to vector<32x1xf32>
    %298 = arith.mulf %296, %297 : vector<32x1xf32>
    %299 = vector.extract_strided_slice %295 {offsets = [0, 1], sizes = [32, 1], strides = [1, 1]} : vector<32x2xf32> to vector<32x1xf32>
    %cst_122 = arith.constant 4.8828125E-4 : f32
    %300 = vector.broadcast %cst_122 : f32 to vector<32x1xf32>
    %301 = arith.mulf %299, %300 : vector<32x1xf32>
    %302 = arith.mulf %298, %298 : vector<32x1xf32>
    %303 = arith.subf %301, %302 : vector<32x1xf32>
    %cst_123 = arith.constant 0.000000e+00 : f32
    %304 = vector.broadcast %cst_123 : f32 to vector<32x1xf32>
    %305 = arith.maximumf %303, %304 : vector<32x1xf32>
    %cst_124 = arith.constant 9.99999974E-6 : f32
    %306 = vector.broadcast %cst_124 : f32 to vector<32x1xf32>
    %307 = arith.addf %305, %306 : vector<32x1xf32>
    %308 = math.rsqrt %307 : vector<32x1xf32>
    %309 = vector.broadcast %298 : vector<32x1xf32> to vector<32x256xf32>
    %310 = arith.subf %268, %309 : vector<32x256xf32>
    %311 = arith.mulf %308, %5 : vector<32x1xf32>
    %312 = vector.broadcast %311 : vector<32x1xf32> to vector<32x256xf32>
    %313 = arith.mulf %310, %312 : vector<32x256xf32>
    %314 = vector.broadcast %6 : vector<32x1xf32> to vector<32x256xf32>
    %315 = arith.addf %313, %314 : vector<32x256xf32>
    %cst_125 = arith.constant 0.000000e+00 : f32
    %316 = vector.broadcast %cst_125 : f32 to vector<32x256xf32>
    %317 = arith.maximumf %315, %316 : vector<32x256xf32>
    %318 = tpu.concatenate %267, %317 in 1 : vector<32x256xf32>, vector<32x256xf32> -> vector<32x512xf32>
    %319 = arith.addf %0, %318 : vector<32x512xf32>
    %cst_126 = arith.constant 0.000000e+00 : f32
    %320 = vector.broadcast %cst_126 : f32 to vector<32x512xf32>
    %321 = arith.maximumf %319, %320 : vector<32x512xf32>
    %c0_127 = arith.constant 0 : index
    %c0_128 = arith.constant 0 : index
    %322 = vector.load %arg6[%c0_127, %c0_128] : memref<32x512xf32, #tpu.memory_space<vmem>>, vector<32x512xf32>
    tpu.vector_store %arg6[%c0_127, %c0_128], %321 {strides = array<i32>} : memref<32x512xf32, #tpu.memory_space<vmem>>, vector<32x512xf32>,
    return
  }
  func.func @transform_0(%arg0: i32) -> (i32, i32) {
    %c0_i32 = arith.constant 0 : i32
    %c0_i32_0 = arith.constant 0 : i32
    %c0_i32_1 = arith.constant 0 : i32
    return %c0_i32, %c0_i32_0 : i32, i32
  }
  func.func @transform_1(%arg0: i32) -> (i32, i32) {
    %c0_i32 = arith.constant 0 : i32
    %c0_i32_0 = arith.constant 0 : i32
    %c0_i32_1 = arith.constant 0 : i32
    return %c0_i32, %c0_i32_0 : i32, i32
  }
  func.func @transform_2(%arg0: i32) -> (i32, i32) {
    %c0_i32 = arith.constant 0 : i32
    %c0_i32_0 = arith.constant 0 : i32
    %c0_i32_1 = arith.constant 0 : i32
    return %c0_i32, %c0_i32_0 : i32, i32
  }
  func.func @transform_3(%arg0: i32) -> (i32, i32) {
    %c0_i32 = arith.constant 0 : i32
    %c0_i32_0 = arith.constant 0 : i32
    %c0_i32_1 = arith.constant 0 : i32
    return %c0_i32, %c0_i32_0 : i32, i32
  }
  func.func @transform_4(%arg0: i32) -> (i32, i32) {
    %c0_i32 = arith.constant 0 : i32
    %c0_i32_0 = arith.constant 0 : i32
    %c0_i32_1 = arith.constant 0 : i32
    return %c0_i32, %c0_i32_0 : i32, i32
  }
  func.func @transform_5(%arg0: i32) -> (i32, i32) {
    %c0_i32 = arith.constant 0 : i32
    %c0_i32_0 = arith.constant 0 : i32
    %c0_i32_1 = arith.constant 0 : i32
    return %c0_i32, %c0_i32_0 : i32, i32
  }
}

</mosaic_0001>

<bundles_post_ra>
// kernel: residual_block.1
= control target key start
LH: loop header
LB: loop body
LE: loop exit
PB: predicated region body
PF: predicated region fallthrough
CT: control target
= control target key end

     0   :  { %s3434_s22 = smov 17   ;;  %s3435_s27 = smov 16   ;;  %v73_v16 = vlaneseq  ;;  %vm1020_vm8 = vcmask 261120   ;;  %vm1271_vm9 = vcmask 7168   ;;  %vm1276_vm10 = vcmask 15360   ;;  %s5892_s0 = inlined_call_operand.vmem [shape: f32[32,512], index: 0, kind: input, shape index: {}]   ;;  %s5893_s4 = inlined_call_operand.vmem [shape: f32[9,512], index: 4, kind: input, shape index: {}]   ;;  %s5894_s1 = inlined_call_operand.vmem [shape: bf16[32,288], index: 1, kind: input, shape index: {}]   ;;  %s5895_s3 = inlined_call_operand.vmem [shape: f32[32,8], index: 3, kind: input, shape index: {}]   ;;  %s5896_s2 = inlined_call_operand.vmem [shape: bf16[32,288], index: 2, kind: input, shape index: {}]   ;;  %s5897_s5 = inlined_call_operand.vmem [shape: f32[32,512], index: 5, kind: output, shape index: {}]  }
   0x1   :  { %v3481_v0 = vld [vmem:[%s5892_s0 + $0x8] sm:$0xff]  ;;  %v3486_v1 = vld [vmem:[%s5892_s0] sm:$0xff]  ;;  %v3509_v4 = vld [vmem:[%s5892_s0 + $0x30] sm:$0xff]  ;;  %s3436_s28 = smov 15   ;;  %s3437_s29 = smov 1  }
   0x2   :  { %49 = vrot.lane.b32.xlu1 %v3481_v0, %s3434_s22  ;;  %41 = vrot.lane.b32.xlu0 %v3486_v1, %s3434_s22  ;;  %v3495_v2 = vld [vmem:[%s5892_s0 + $0x28] sm:$0xff]  ;;  %v3500_v3 = vld [vmem:[%s5892_s0 + $0x20] sm:$0xff]  ;;  %v95_v17 = vshrl.u32 %v73_v16, 7  ;;  %v3670_v18 = vand.u32 127, %v73_v16  ;;  %s3438_s7 = smov 127   ;;  %s3439_s10 = smov 113  }
   0x3   :  { %v3514_v5 = vld [vmem:[%s5892_s0 + $0x10] sm:$0xff]  ;;  %v3523_v6 = vld [vmem:[%s5892_s0 + $0x38] sm:$0xff]  ;;  %v3537_v8 = vld [vmem:[%s5892_s0 + $0x60] sm:$0xff]  ;;  %s3440_s13 = smov 112   ;;  %s3441_s18 = smov 111  }
   0x4   :  { %v3528_v7 = vld [vmem:[%s5892_s0 + $0x18] sm:$0xff]  ;;  %v3542_v9 = vld [vmem:[%s5892_s0 + $0x40] sm:$0xff]  ;;  %v3551_v10 = vld [vmem:[%s5892_s0 + $0x68] sm:$0xff]  ;;  %v3676_v19 = vsub.s32 1, %v95_v17  ;;  %vm75_vm0 = vcmp.lt.s32.totalorder %v3670_v18, 17  ;;  %v3689_v27 = vsub.s32 2, %v95_v17 }
   0x5   :  { %v3556_v11 = vld [vmem:[%s5892_s0 + $0x48] sm:$0xff]  ;;  %v3565_v12 = vld [vmem:[%s5892_s0 + $0x70] sm:$0xff]  ;;  %v3579_v14 = vld [vmem:[%s5892_s0 + $0x78] sm:$0xff]  ;;  %v3697_v31 = vsub.s32 0, %v95_v17  ;;  %v3699_v32 = vsub.s32 3, %v95_v17  ;;  %vm178_vm1 = vcmp.lt.s32.totalorder %v3670_v18, 16 }
   0x6   :  { %51 = vrot.lane.b32.xlu1 %v3495_v2, %s3434_s22  ;;  %43 = vrot.lane.b32.xlu0 %v3500_v3, %s3434_s22  ;;  %v3570_v13 = vld [vmem:[%s5892_s0 + $0x50] sm:$0xff]  ;;  %v3584_v15 = vld [vmem:[%s5892_s0 + $0x58] sm:$0xff]  ;;  %vm282_vm2 = vcmp.lt.s32.totalorder %v3670_v18, 15  ;;  %vm386_vm3 = vcmp.lt.s32.totalorder %v3670_v18, 1  ;;  %vm506_vm4 = vcmp.lt.s32.totalorder %v3670_v18, 127  ;;  %vm610_vm5 = vcmp.lt.s32.totalorder %v3670_v18, 113 }
   0x7   :  { %v92_v20 = vld [vmem:[%s5893_s4] ss:$8 sm:$0xf]  ;;  %vm714_vm6 = vcmp.lt.s32.totalorder %v3670_v18, 112  ;;  %vm818_vm7 = vcmp.lt.s32.totalorder %v3670_v18, 111 }
   0x8   :  { %v101_v23 = vrot.slane %v92_v20, %v3676_v19  ;;  %v105_v36 = vrot.slane %v92_v20, %v3689_v27  ;;  %v97_v39 = vrot.slane %v92_v20, %v3697_v31  ;;  %v109_v40 = vrot.slane %v92_v20, %v3699_v32  ;;  %v3377_v18 = vld [vmem:[%s5896_s2 + $0x20] ss:$12 sps:$4 sm:$0xff]  }
   0xa   :  { %59 = vrot.lane.b32.xlu1 %v3509_v4, %s3434_s22  ;;  %57 = vrot.lane.b32.xlu0 %v3514_v5, %s3434_s22 }
   0xe   :  { %67 = vrot.lane.b32.xlu1 %v3523_v6, %s3434_s22  ;;  %65 = vrot.lane.b32.xlu0 %v3528_v7, %s3434_s22 }
  0x12   :  { %47 = vrot.lane.b32.xlu1 %v3537_v8, %s3434_s22  ;;  %45 = vrot.lane.b32.xlu0 %v3542_v9, %s3434_s22 }
  0x16   :  { %55 = vrot.lane.b32.xlu1 %v3551_v10, %s3434_s22  ;;  %53 = vrot.lane.b32.xlu0 %v3556_v11, %s3434_s22 }
  0x1a   :  { %63 = vrot.lane.b32.xlu1 %v3565_v12, %s3434_s22  ;;  %61 = vrot.lane.b32.xlu0 %v3570_v13, %s3434_s22 }
  0x1e   :  { %71 = vrot.lane.b32.xlu1 %v3579_v14, %s3434_s22  ;;  %69 = vrot.lane.b32.xlu0 %v3584_v15, %s3434_s22 }
  0x22   :  { %148 = vrot.lane.b32.xlu1 %v3500_v3, %s3435_s27  ;;  %146 = vrot.lane.b32.xlu0 %v3486_v1, %s3435_s27 }
  0x26   :  { %156 = vrot.lane.b32.xlu1 %v3495_v2, %s3435_s27  ;;  %154 = vrot.lane.b32.xlu0 %v3481_v0, %s3435_s27 }
  0x2a   :  { %164 = vrot.lane.b32.xlu1 %v3509_v4, %s3435_s27  ;;  %162 = vrot.lane.b32.xlu0 %v3514_v5, %s3435_s27 }
  0x2e   :  { %172 = vrot.lane.b32.xlu1 %v3523_v6, %s3435_s27  ;;  %170 = vrot.lane.b32.xlu0 %v3528_v7, %s3435_s27 }
  0x32   :  { %152 = vrot.lane.b32.xlu1 %v3537_v8, %s3435_s27  ;;  %150 = vrot.lane.b32.xlu0 %v3542_v9, %s3435_s27 }
  0x36   :  { %160 = vrot.lane.b32.xlu1 %v3551_v10, %s3435_s27  ;;  %158 = vrot.lane.b32.xlu0 %v3556_v11, %s3435_s27 }
  0x3a   :  { %168 = vrot.lane.b32.xlu1 %v3565_v12, %s3435_s27  ;;  %166 = vrot.lane.b32.xlu0 %v3570_v13, %s3435_s27 }
  0x3e   :  { %176 = vrot.lane.b32.xlu1 %v3579_v14, %s3435_s27  ;;  %174 = vrot.lane.b32.xlu0 %v3584_v15, %s3435_s27 }
  0x42   :  { %252 = vrot.lane.b32.xlu1 %v3500_v3, %s3436_s28  ;;  %250 = vrot.lane.b32.xlu0 %v3486_v1, %s3436_s28 }
  0x46   :  { %260 = vrot.lane.b32.xlu1 %v3495_v2, %s3436_s28  ;;  %258 = vrot.lane.b32.xlu0 %v3481_v0, %s3436_s28 }
  0x4a   :  { %268 = vrot.lane.b32.xlu1 %v3509_v4, %s3436_s28  ;;  %266 = vrot.lane.b32.xlu0 %v3514_v5, %s3436_s28 }
  0x4e   :  { %276 = vrot.lane.b32.xlu1 %v3523_v6, %s3436_s28  ;;  %274 = vrot.lane.b32.xlu0 %v3528_v7, %s3436_s28 }
  0x52   :  { %256 = vrot.lane.b32.xlu1 %v3537_v8, %s3436_s28  ;;  %254 = vrot.lane.b32.xlu0 %v3542_v9, %s3436_s28 }
  0x56   :  { %264 = vrot.lane.b32.xlu1 %v3551_v10, %s3436_s28  ;;  %262 = vrot.lane.b32.xlu0 %v3556_v11, %s3436_s28 }
  0x5a   :  { %272 = vrot.lane.b32.xlu1 %v3565_v12, %s3436_s28  ;;  %270 = vrot.lane.b32.xlu0 %v3570_v13, %s3436_s28 }
  0x5e   :  { %280 = vrot.lane.b32.xlu1 %v3579_v14, %s3436_s28  ;;  %278 = vrot.lane.b32.xlu0 %v3584_v15, %s3436_s28 }
  0x62   :  { %356 = vrot.lane.b32.xlu1 %v3500_v3, %s3437_s29  ;;  %354 = vrot.lane.b32.xlu0 %v3486_v1, %s3437_s29 }
  0x66   :  { %364 = vrot.lane.b32.xlu1 %v3495_v2, %s3437_s29  ;;  %362 = vrot.lane.b32.xlu0 %v3481_v0, %s3437_s29 }
  0x6a   :  { %372 = vrot.lane.b32.xlu1 %v3509_v4, %s3437_s29  ;;  %370 = vrot.lane.b32.xlu0 %v3514_v5, %s3437_s29 }
  0x6e   :  { %380 = vrot.lane.b32.xlu1 %v3523_v6, %s3437_s29  ;;  %378 = vrot.lane.b32.xlu0 %v3528_v7, %s3437_s29 }
  0x72   :  { %360 = vrot.lane.b32.xlu1 %v3537_v8, %s3437_s29  ;;  %358 = vrot.lane.b32.xlu0 %v3542_v9, %s3437_s29 }
  0x74   :  { %v50_v21 = vpop.permute.xlu1 %49  ;;  %v42_v22 = vpop.permute.xlu0 %41 }
  0x75   :  { %v84_v24 = vsel %vm75_vm0, %v42_v22, %v50_v21 }
  0x76   :  { %368 = vrot.lane.b32.xlu1 %v3551_v10, %s3437_s29  ;;  %366 = vrot.lane.b32.xlu0 %v3556_v11, %s3437_s29  ;;  %v115_v29 = vmul.f32 %v101_v23, %v84_v24 }
  0x78   :  { %v52_v25 = vpop.permute.xlu1 %51  ;;  %v44_v26 = vpop.permute.xlu0 %43 }
  0x79   :  { %v85_v28 = vsel %vm75_vm0, %v44_v26, %v52_v25 }
  0x7a   :  { %376 = vrot.lane.b32.xlu1 %v3565_v12, %s3437_s29  ;;  %374 = vrot.lane.b32.xlu0 %v3570_v13, %s3437_s29  ;;  %v119_v30 = vmul.f32 %v101_v23, %v85_v28 }
  0x7c   :  { %v60_v33 = vpop.permute.xlu1 %59  ;;  %v58_v34 = vpop.permute.xlu0 %57  ;;  %v131_v35 = vpack.c.bf16 %v119_v30, %v115_v29 }
  0x7d   :  { %v81_v37 = vsel %vm75_vm0, %v52_v25, %v60_v33  ;;  %v80_v38 = vsel %vm75_vm0, %v50_v21, %v58_v34 }
  0x7e   :  { %384 = vrot.lane.b32.xlu1 %v3579_v14, %s3437_s29  ;;  %382 = vrot.lane.b32.xlu0 %v3584_v15, %s3437_s29  ;;  %v116_v43 = vmul.f32 %v105_v36, %v80_v38  ;;  %v120_v44 = vmul.f32 %v105_v36, %v81_v37 }
  0x7f   :  { %1027 = vmatprep.subr.bf16.mxu0 %v131_v35 }
  0x80   :  { %v68_v41 = vpop.permute.xlu1 %67  ;;  %v66_v42 = vpop.permute.xlu0 %65  ;;  %v132_v57 = vpack.c.bf16 %v120_v44, %v116_v43 }
  0x81   :  { %v89_v45 = vsel %vm75_vm0, %v68_v41, %v44_v26  ;;  %v88_v46 = vsel %vm75_vm0, %v66_v42, %v42_v22  ;;  %v76_v47 = vsel %vm75_vm0, %v58_v34, %v66_v42  ;;  %v77_v48 = vsel %vm75_vm0, %v60_v33, %v68_v41 }
  0x82   :  { %476 = vrot.lane.b32.xlu1 %v3500_v3, %s3438_s7  ;;  %474 = vrot.lane.b32.xlu0 %v3486_v1, %s3438_s7  ;;  %v114_v49 = vmul.f32 %v97_v39, %v88_v46  ;;  %v118_v50 = vmul.f32 %v97_v39, %v89_v45  ;;  %v117_v51 = vmul.f32 %v109_v40, %v76_v47 }
  0x83   :  { %v121_v52 = vmul.f32 %v109_v40, %v77_v48 }
  0x84   :  { %v48_v53 = vpop.permute.xlu1 %47  ;;  %v46_v54 = vpop.permute.xlu0 %45  ;;  %v130_v55 = vpack.c.bf16 %v118_v50, %v114_v49 }
  0x85   :  { %v133_v56 = vpack.c.bf16 %v121_v52, %v117_v51 }
  0x86   :  { %484 = vrot.lane.b32.xlu1 %v3495_v2, %s3438_s7  ;;  %482 = vrot.lane.b32.xlu0 %v3481_v0, %s3438_s7 }
  0x87   :  { %1028 = vmatpush1.bf16.msra.mxu0 %v130_v55  ;;  %1133 = vmatprep.subr.bf16.mxu1 %v133_v56 }
  0x88   :  { %1134 = vmatpush1.bf16.msra.mxu1 %v132_v57  ;;  %v56_v58 = vpop.permute.xlu1 %55  ;;  %v54_v59 = vpop.permute.xlu0 %53 }
  0x89   :  { %v87_v60 = vsel %vm75_vm0, %v48_v53, %v56_v58  ;;  %v86_v61 = vsel %vm75_vm0, %v46_v54, %v54_v59 }
  0x8a   :  { %v127_v62 = vmul.f32 %v101_v23, %v87_v60  ;;  %v123_v63 = vmul.f32 %v101_v23, %v86_v61  ;;  %492 = vrot.lane.b32.xlu1 %v3509_v4, %s3438_s7  ;;  %490 = vrot.lane.b32.xlu0 %v3514_v5, %s3438_s7 }
  0x8c   :  { %v64_v16 = vpop.permute.xlu1 %63  ;;  %v62_v17 = vpop.permute.xlu0 %61  ;;  %v135_v20 = vpack.c.bf16 %v127_v62, %v123_v63 }
  0x8d   :  { %v83_v21 = vsel %vm75_vm0, %v56_v58, %v64_v16  ;;  %v82_v22 = vsel %vm75_vm0, %v54_v59, %v62_v17 }
  0x8e   :  { %500 = vrot.lane.b32.xlu1 %v3523_v6, %s3438_s7  ;;  %498 = vrot.lane.b32.xlu0 %v3528_v7, %s3438_s7  ;;  %v128_v23 = vmul.f32 %v105_v36, %v83_v21  ;;  %v124_v24 = vmul.f32 %v105_v36, %v82_v22  ;;  %v3233_v36 = vld [vmem:[%s5893_s4 + $0x1] ss:$8 sm:$0xf] }
  0x8f   :  { %1029 = vmatprep.subr.bf16.mxu0 %v135_v20  ;;  %v209_v51 = vrot.slane %v3233_v36, %v3689_v27  ;;  %v201_v57 = vrot.slane %v3233_v36, %v3697_v31  ;;  %v213_v58 = vrot.slane %v3233_v36, %v3699_v32 }
  0x90   :  { %v72_v25 = vpop.permute.xlu1 %71  ;;  %v70_v26 = vpop.permute.xlu0 %69 }
  0x91   :  { %v79_v28 = vsel %vm75_vm0, %v64_v16, %v72_v25  ;;  %v91_v29 = vsel %vm75_vm0, %v72_v25, %v48_v53  ;;  %v78_v30 = vsel %vm75_vm0, %v62_v17, %v70_v26  ;;  %v90_v33 = vsel %vm75_vm0, %v70_v26, %v46_v54 }
  0x92   :  { %v126_v34 = vmul.f32 %v97_v39, %v91_v29  ;;  %v129_v35 = vmul.f32 %v109_v40, %v79_v28  ;;  %v122_v37 = vmul.f32 %v97_v39, %v90_v33  ;;  %v125_v38 = vmul.f32 %v109_v40, %v78_v30  ;;  %480 = vrot.lane.b32.xlu1 %v3537_v8, %s3438_s7 }
  0x93   :  { %478 = vrot.lane.b32.xlu0 %v3542_v9, %s3438_s7  ;;  %v136_v39 = vpack.c.bf16 %v128_v23, %v124_v24  ;;  %v205_v40 = vrot.slane %v3233_v36, %v3676_v19 }
  0x94   :  { %v149_v41 = vpop.permute.xlu1 %148  ;;  %v147_v42 = vpop.permute.xlu0 %146  ;;  %v134_v43 = vpack.c.bf16 %v126_v34, %v122_v37  ;;  %v137_v44 = vpack.c.bf16 %v129_v35, %v125_v38 }
  0x96   :  { %488 = vrot.lane.b32.xlu1 %v3551_v10, %s3438_s7  ;;  %1030 = vmatpush1.bf16.msra.mxu0 %v134_v43 }
  0x97   :  { %486 = vrot.lane.b32.xlu0 %v3556_v11, %s3438_s7  ;;  %1135 = vmatprep.subr.bf16.mxu1 %v137_v44 }
  0x98   :  { %1136 = vmatpush1.bf16.msra.mxu1 %v136_v39  ;;  %v157_v45 = vpop.permute.xlu1 %156  ;;  %v155_v46 = vpop.permute.xlu0 %154 }
  0x99   :  { %v188_v47 = vsel %vm178_vm1, %v149_v41, %v157_v45  ;;  %v187_v48 = vsel %vm178_vm1, %v147_v42, %v155_v46 }
  0x9a   :  { %v223_v49 = vmul.f32 %v205_v40, %v188_v47  ;;  %v219_v50 = vmul.f32 %v205_v40, %v187_v48  ;;  %496 = vrot.lane.b32.xlu1 %v3565_v12, %s3438_s7 }
  0x9b   :  { %494 = vrot.lane.b32.xlu0 %v3570_v13, %s3438_s7 }
  0x9c   :  { %v165_v52 = vpop.permute.xlu1 %164  ;;  %v163_v53 = vpop.permute.xlu0 %162  ;;  %v235_v54 = vpack.c.bf16 %v223_v49, %v219_v50 }
  0x9d   :  { %v184_v55 = vsel %vm178_vm1, %v157_v45, %v165_v52  ;;  %v183_v56 = vsel %vm178_vm1, %v155_v46, %v163_v53 }
  0x9e   :  { %504 = vrot.lane.b32.xlu1 %v3579_v14, %s3438_s7  ;;  %1031 = vmatprep.subr.bf16.mxu0 %v235_v54  ;;  %v224_v59 = vmul.f32 %v209_v51, %v184_v55  ;;  %v220_v60 = vmul.f32 %v209_v51, %v183_v56 }
  0x9f   :  { %502 = vrot.lane.b32.xlu0 %v3584_v15, %s3438_s7 }
  0xa0   :  { %v173_v61 = vpop.permute.xlu1 %172  ;;  %v171_v62 = vpop.permute.xlu0 %170  ;;  %v236_v30 = vpack.c.bf16 %v224_v59, %v220_v60 }
  0xa1   :  { %v180_v63 = vsel %vm178_vm1, %v165_v52, %v173_v61  ;;  %v192_v16 = vsel %vm178_vm1, %v173_v61, %v149_v41  ;;  %v179_v17 = vsel %vm178_vm1, %v163_v53, %v171_v62  ;;  %v191_v20 = vsel %vm178_vm1, %v171_v62, %v147_v42 }
  0xa2   :  { %v222_v21 = vmul.f32 %v201_v57, %v192_v16  ;;  %v225_v22 = vmul.f32 %v213_v58, %v180_v63  ;;  %v218_v23 = vmul.f32 %v201_v57, %v191_v20  ;;  %v221_v24 = vmul.f32 %v213_v58, %v179_v17  ;;  %580 = vrot.lane.b32.xlu1 %v3500_v3, %s3439_s10 }
  0xa3   :  { %578 = vrot.lane.b32.xlu0 %v3486_v1, %s3439_s10 }
  0xa4   :  { %v153_v25 = vpop.permute.xlu1 %152  ;;  %v151_v26 = vpop.permute.xlu0 %150  ;;  %v234_v28 = vpack.c.bf16 %v222_v21, %v218_v23  ;;  %v237_v29 = vpack.c.bf16 %v225_v22, %v221_v24 }
  0xa6   :  { %588 = vrot.lane.b32.xlu1 %v3495_v2, %s3439_s10  ;;  %1032 = vmatpush1.bf16.msra.mxu0 %v234_v28 }
  0xa7   :  { %586 = vrot.lane.b32.xlu0 %v3481_v0, %s3439_s10  ;;  %1137 = vmatprep.subr.bf16.mxu1 %v237_v29 }
  0xa8   :  { %1138 = vmatpush1.bf16.msra.mxu1 %v236_v30  ;;  %v161_v33 = vpop.permute.xlu1 %160  ;;  %v159_v34 = vpop.permute.xlu0 %158 }
  0xa9   :  { %v190_v35 = vsel %vm178_vm1, %v153_v25, %v161_v33  ;;  %v189_v37 = vsel %vm178_vm1, %v151_v26, %v159_v34 }
  0xaa   :  { %v231_v38 = vmul.f32 %v205_v40, %v190_v35  ;;  %v227_v36 = vmul.f32 %v205_v40, %v189_v37  ;;  %596 = vrot.lane.b32.xlu1 %v3509_v4, %s3439_s10 }
  0xab   :  { %594 = vrot.lane.b32.xlu0 %v3514_v5, %s3439_s10 }
  0xac   :  { %v169_v41 = vpop.permute.xlu1 %168  ;;  %v167_v42 = vpop.permute.xlu0 %166  ;;  %v239_v43 = vpack.c.bf16 %v231_v38, %v227_v36 }
  0xad   :  { %v186_v44 = vsel %vm178_vm1, %v161_v33, %v169_v41  ;;  %v185_v39 = vsel %vm178_vm1, %v159_v34, %v167_v42 }
  0xae   :  { %604 = vrot.lane.b32.xlu1 %v3523_v6, %s3439_s10  ;;  %1033 = vmatprep.subr.bf16.mxu0 %v239_v43  ;;  %v232_v40 = vmul.f32 %v209_v51, %v186_v44  ;;  %v228_v45 = vmul.f32 %v209_v51, %v185_v39  ;;  %v3234_v51 = vld [vmem:[%s5893_s4 + $0x2] ss:$8 sm:$0xf] }
  0xaf   :  { %602 = vrot.lane.b32.xlu0 %v3528_v7, %s3439_s10  ;;  %v313_v23 = vrot.slane %v3234_v51, %v3689_v27  ;;  %v305_v30 = vrot.slane %v3234_v51, %v3697_v31  ;;  %v317_v33 = vrot.slane %v3234_v51, %v3699_v32 }
  0xb0   :  { %v177_v46 = vpop.permute.xlu1 %176  ;;  %v175_v47 = vpop.permute.xlu0 %174 }
  0xb1   :  { %v182_v48 = vsel %vm178_vm1, %v169_v41, %v177_v46  ;;  %v194_v49 = vsel %vm178_vm1, %v177_v46, %v153_v25  ;;  %v181_v50 = vsel %vm178_vm1, %v167_v42, %v175_v47  ;;  %v193_v52 = vsel %vm178_vm1, %v175_v47, %v151_v26 }
  0xb2   :  { %v230_v53 = vmul.f32 %v201_v57, %v194_v49  ;;  %v233_v54 = vmul.f32 %v213_v58, %v182_v48  ;;  %v226_v55 = vmul.f32 %v201_v57, %v193_v52  ;;  %v229_v56 = vmul.f32 %v213_v58, %v181_v50  ;;  %584 = vrot.lane.b32.xlu1 %v3537_v8, %s3439_s10 }
  0xb3   :  { %582 = vrot.lane.b32.xlu0 %v3542_v9, %s3439_s10  ;;  %v240_v57 = vpack.c.bf16 %v232_v40, %v228_v45  ;;  %v309_v58 = vrot.slane %v3234_v51, %v3676_v19 }
  0xb4   :  { %v253_v59 = vpop.permute.xlu1 %252  ;;  %v251_v60 = vpop.permute.xlu0 %250  ;;  %v238_v61 = vpack.c.bf16 %v230_v53, %v226_v55  ;;  %v241_v62 = vpack.c.bf16 %v233_v54, %v229_v56 }
  0xb6   :  { %592 = vrot.lane.b32.xlu1 %v3551_v10, %s3439_s10  ;;  %1034 = vmatpush1.bf16.msra.mxu0 %v238_v61 }
  0xb7   :  { %590 = vrot.lane.b32.xlu0 %v3556_v11, %s3439_s10  ;;  %1139 = vmatprep.subr.bf16.mxu1 %v241_v62 }
  0xb8   :  { %1140 = vmatpush1.bf16.msra.mxu1 %v240_v57  ;;  %v261_v63 = vpop.permute.xlu1 %260  ;;  %v259_v16 = vpop.permute.xlu0 %258 }
  0xb9   :  { %v292_v17 = vsel %vm282_vm2, %v253_v59, %v261_v63  ;;  %v291_v20 = vsel %vm282_vm2, %v251_v60, %v259_v16 }
  0xba   :  { %v327_v21 = vmul.f32 %v309_v58, %v292_v17  ;;  %v323_v22 = vmul.f32 %v309_v58, %v291_v20  ;;  %600 = vrot.lane.b32.xlu1 %v3565_v12, %s3439_s10 }
  0xbb   :  { %598 = vrot.lane.b32.xlu0 %v3570_v13, %s3439_s10 }
  0xbc   :  { %v269_v24 = vpop.permute.xlu1 %268  ;;  %v267_v25 = vpop.permute.xlu0 %266  ;;  %v339_v26 = vpack.c.bf16 %v327_v21, %v323_v22 }
  0xbd   :  { %v288_v28 = vsel %vm282_vm2, %v261_v63, %v269_v24  ;;  %v287_v29 = vsel %vm282_vm2, %v259_v16, %v267_v25 }
  0xbe   :  { %608 = vrot.lane.b32.xlu1 %v3579_v14, %s3439_s10  ;;  %1035 = vmatprep.subr.bf16.mxu0 %v339_v26  ;;  %v328_v34 = vmul.f32 %v313_v23, %v288_v28  ;;  %v324_v35 = vmul.f32 %v313_v23, %v287_v29 }
  0xbf   :  { %606 = vrot.lane.b32.xlu0 %v3584_v15, %s3439_s10 }
  0xc0   :  { %v277_v37 = vpop.permute.xlu1 %276  ;;  %v275_v38 = vpop.permute.xlu0 %274  ;;  %v340_v50 = vpack.c.bf16 %v328_v34, %v324_v35 }
  0xc1   :  { %v284_v36 = vsel %vm282_vm2, %v269_v24, %v277_v37  ;;  %v296_v41 = vsel %vm282_vm2, %v277_v37, %v253_v59  ;;  %v283_v42 = vsel %vm282_vm2, %v267_v25, %v275_v38  ;;  %v295_v43 = vsel %vm282_vm2, %v275_v38, %v251_v60 }
  0xc2   :  { %v326_v44 = vmul.f32 %v305_v30, %v296_v41  ;;  %v329_v39 = vmul.f32 %v317_v33, %v284_v36  ;;  %v322_v40 = vmul.f32 %v305_v30, %v295_v43  ;;  %v325_v45 = vmul.f32 %v317_v33, %v283_v42  ;;  %684 = vrot.lane.b32.xlu1 %v3500_v3, %s3440_s13 }
  0xc3   :  { %682 = vrot.lane.b32.xlu0 %v3486_v1, %s3440_s13 }
  0xc4   :  { %v257_v46 = vpop.permute.xlu1 %256  ;;  %v255_v47 = vpop.permute.xlu0 %254  ;;  %v338_v48 = vpack.c.bf16 %v326_v44, %v322_v40  ;;  %v341_v49 = vpack.c.bf16 %v329_v39, %v325_v45 }
  0xc6   :  { %692 = vrot.lane.b32.xlu1 %v3495_v2, %s3440_s13  ;;  %1036 = vmatpush1.bf16.msra.mxu0 %v338_v48 }
  0xc7   :  { %690 = vrot.lane.b32.xlu0 %v3481_v0, %s3440_s13  ;;  %1141 = vmatprep.subr.bf16.mxu1 %v341_v49 }
  0xc8   :  { %1142 = vmatpush1.bf16.msra.mxu1 %v340_v50  ;;  %v265_v52 = vpop.permute.xlu1 %264  ;;  %v263_v53 = vpop.permute.xlu0 %262 }
  0xc9   :  { %v294_v54 = vsel %vm282_vm2, %v257_v46, %v265_v52  ;;  %v293_v55 = vsel %vm282_vm2, %v255_v47, %v263_v53 }
  0xca   :  { %v335_v56 = vmul.f32 %v309_v58, %v294_v54  ;;  %v331_v51 = vmul.f32 %v309_v58, %v293_v55  ;;  %700 = vrot.lane.b32.xlu1 %v3509_v4, %s3440_s13 }
  0xcb   :  { %698 = vrot.lane.b32.xlu0 %v3514_v5, %s3440_s13 }
  0xcc   :  { %v273_v59 = vpop.permute.xlu1 %272  ;;  %v271_v60 = vpop.permute.xlu0 %270  ;;  %v343_v61 = vpack.c.bf16 %v335_v56, %v331_v51 }
  0xcd   :  { %v290_v62 = vsel %vm282_vm2, %v265_v52, %v273_v59  ;;  %v289_v57 = vsel %vm282_vm2, %v263_v53, %v271_v60 }
  0xce   :  { %708 = vrot.lane.b32.xlu1 %v3523_v6, %s3440_s13  ;;  %1037 = vmatprep.subr.bf16.mxu0 %v343_v61  ;;  %v336_v58 = vmul.f32 %v313_v23, %v290_v62  ;;  %v332_v63 = vmul.f32 %v313_v23, %v289_v57  ;;  %v3235_v23 = vld [vmem:[%s5893_s4 + $0x3] ss:$8 sm:$0xf] }
  0xcf   :  { %706 = vrot.lane.b32.xlu0 %v3528_v7, %s3440_s13  ;;  %v417_v40 = vrot.slane %v3235_v23, %v3689_v27  ;;  %v409_v50 = vrot.slane %v3235_v23, %v3697_v31  ;;  %v421_v52 = vrot.slane %v3235_v23, %v3699_v32  ;;  %v3364_v62 = vld [vmem:[%s5894_s1 + $0x4] ss:$12 sps:$4 sm:$0xff]  }
  0xd0   :  { %v281_v16 = vpop.permute.xlu1 %280  ;;  %v279_v17 = vpop.permute.xlu0 %278  ;;  %1059 = vmatprep.mubr.bf16.mxu0 %v3364_v62  ;;  %1165 = vmatprep.mubr.bf16.mxu1 %v3364_v62 }
  0xd1   :  { %v286_v20 = vsel %vm282_vm2, %v273_v59, %v281_v16  ;;  %v298_v21 = vsel %vm282_vm2, %v281_v16, %v257_v46  ;;  %v285_v22 = vsel %vm282_vm2, %v271_v60, %v279_v17  ;;  %v297_v24 = vsel %vm282_vm2, %v279_v17, %v255_v47 }
  0xd2   :  { %v334_v25 = vmul.f32 %v305_v30, %v298_v21  ;;  %v337_v26 = vmul.f32 %v317_v33, %v286_v20  ;;  %v330_v28 = vmul.f32 %v305_v30, %v297_v24  ;;  %v333_v29 = vmul.f32 %v317_v33, %v285_v22  ;;  %688 = vrot.lane.b32.xlu1 %v3537_v8, %s3440_s13 }
  0xd3   :  { %686 = vrot.lane.b32.xlu0 %v3542_v9, %s3440_s13  ;;  %v344_v30 = vpack.c.bf16 %v336_v58, %v332_v63  ;;  %v413_v33 = vrot.slane %v3235_v23, %v3676_v19 }
  0xd4   :  { %v357_v34 = vpop.permute.xlu1 %356  ;;  %v355_v35 = vpop.permute.xlu0 %354  ;;  %v342_v37 = vpack.c.bf16 %v334_v25, %v330_v28  ;;  %v345_v38 = vpack.c.bf16 %v337_v26, %v333_v29 }
  0xd6   :  { %696 = vrot.lane.b32.xlu1 %v3551_v10, %s3440_s13  ;;  %1038 = vmatpush1.bf16.msra.mxu0 %v342_v37 }
  0xd7   :  { %694 = vrot.lane.b32.xlu0 %v3556_v11, %s3440_s13  ;;  %1143 = vmatprep.subr.bf16.mxu1 %v345_v38 }
  0xd8   :  { %1144 = vmatpush1.bf16.msra.mxu1 %v344_v30  ;;  %v365_v36 = vpop.permute.xlu1 %364  ;;  %v363_v41 = vpop.permute.xlu0 %362 }
  0xd9   :  { %v396_v42 = vsel %vm386_vm3, %v357_v34, %v365_v36  ;;  %v395_v43 = vsel %vm386_vm3, %v355_v35, %v363_v41 }
  0xda   :  { %v431_v44 = vmul.f32 %v413_v33, %v396_v42  ;;  %v427_v39 = vmul.f32 %v413_v33, %v395_v43  ;;  %704 = vrot.lane.b32.xlu1 %v3565_v12, %s3440_s13 }
  0xdb   :  { %702 = vrot.lane.b32.xlu0 %v3570_v13, %s3440_s13 }
  0xdc   :  { %v373_v45 = vpop.permute.xlu1 %372  ;;  %v371_v46 = vpop.permute.xlu0 %370  ;;  %v443_v47 = vpack.c.bf16 %v431_v44, %v427_v39 }
  0xdd   :  { %v392_v48 = vsel %vm386_vm3, %v365_v36, %v373_v45  ;;  %v391_v49 = vsel %vm386_vm3, %v363_v41, %v371_v46 }
  0xde   :  { %712 = vrot.lane.b32.xlu1 %v3579_v14, %s3440_s13  ;;  %1039 = vmatprep.subr.bf16.mxu0 %v443_v47  ;;  %v432_v53 = vmul.f32 %v417_v40, %v392_v48  ;;  %v428_v54 = vmul.f32 %v417_v40, %v391_v49 }
  0xdf   :  { %710 = vrot.lane.b32.xlu0 %v3584_v15, %s3440_s13 }
  0xe0   :  { %v381_v55 = vpop.permute.xlu1 %380  ;;  %v379_v56 = vpop.permute.xlu0 %378  ;;  %v444_v24 = vpack.c.bf16 %v432_v53, %v428_v54 }
  0xe1   :  { %v388_v51 = vsel %vm386_vm3, %v373_v45, %v381_v55  ;;  %v400_v59 = vsel %vm386_vm3, %v381_v55, %v357_v34  ;;  %v387_v60 = vsel %vm386_vm3, %v371_v46, %v379_v56  ;;  %v399_v61 = vsel %vm386_vm3, %v379_v56, %v355_v35 }
  0xe2   :  { %v430_v57 = vmul.f32 %v409_v50, %v400_v59  ;;  %v433_v58 = vmul.f32 %v421_v52, %v388_v51  ;;  %v426_v63 = vmul.f32 %v409_v50, %v399_v61  ;;  %v429_v16 = vmul.f32 %v421_v52, %v387_v60  ;;  %788 = vrot.lane.b32.xlu1 %v3500_v3, %s3441_s18  ;;  %v3236_v59 = vld [vmem:[%s5893_s4 + $0x5] ss:$8 sm:$0xf] }
  0xe3   :  { %786 = vrot.lane.b32.xlu0 %v3486_v1, %s3441_s18  ;;  %v459_v51 = vpack.c.bf16 %v3495_v2, %v3481_v0  ;;  %v458_v60 = vpack.c.bf16 %v3500_v3, %v3486_v1  ;;  %v460_v61 = vpack.c.bf16 %v3509_v4, %v3514_v5  ;;  %v4006_v62 = vrot.slane %v3236_v59, %v3676_v19 }
  0xe4   :  { %v361_v17 = vpop.permute.xlu1 %360  ;;  %v359_v20 = vpop.permute.xlu0 %358  ;;  %v442_v21 = vpack.c.bf16 %v430_v57, %v426_v63  ;;  %v445_v22 = vpack.c.bf16 %v433_v58, %v429_v16  ;;  %v464_v16 = vpack.c.bf16 %v3565_v12, %v3570_v13 }
  0xe6   :  { %796 = vrot.lane.b32.xlu1 %v3495_v2, %s3441_s18  ;;  %1040 = vmatpush1.bf16.msra.mxu0 %v442_v21  ;;  %v3992_v2 = vrot.slane %v3236_v59, %v3697_v31 }
  0xe7   :  { %794 = vrot.lane.b32.xlu0 %v3481_v0, %s3441_s18  ;;  %1145 = vmatprep.subr.bf16.mxu1 %v445_v22  ;;  %v463_v0 = vpack.c.bf16 %v3551_v10, %v3556_v11 }
  0xe8   :  { %1146 = vmatpush1.bf16.msra.mxu1 %v444_v24  ;;  %v369_v25 = vpop.permute.xlu1 %368  ;;  %v367_v26 = vpop.permute.xlu0 %366 }
  0xe9   :  { %v398_v28 = vsel %vm386_vm3, %v361_v17, %v369_v25  ;;  %v397_v29 = vsel %vm386_vm3, %v359_v20, %v367_v26 }
  0xea   :  { %v439_v23 = vmul.f32 %v413_v33, %v398_v28  ;;  %v435_v34 = vmul.f32 %v413_v33, %v397_v29  ;;  %804 = vrot.lane.b32.xlu1 %v3509_v4, %s3441_s18  ;;  %v462_v4 = vpack.c.bf16 %v3537_v8, %v3542_v9 }
  0xeb   :  { %802 = vrot.lane.b32.xlu0 %v3514_v5, %s3441_s18 }
  0xec   :  { %v377_v35 = vpop.permute.xlu1 %376  ;;  %v375_v37 = vpop.permute.xlu0 %374  ;;  %v447_v38 = vpack.c.bf16 %v439_v23, %v435_v34 }
  0xed   :  { %v394_v30 = vsel %vm386_vm3, %v369_v25, %v377_v35  ;;  %v393_v36 = vsel %vm386_vm3, %v367_v26, %v375_v37 }
  0xee   :  { %812 = vrot.lane.b32.xlu1 %v3523_v6, %s3441_s18  ;;  %1041 = vmatprep.subr.bf16.mxu0 %v447_v38  ;;  %v440_v33 = vmul.f32 %v417_v40, %v394_v30  ;;  %v436_v41 = vmul.f32 %v417_v40, %v393_v36  ;;  %v4044_v36 = vld [vmem:[%s5895_s3] sm:$0xff] }
  0xef   :  { %810 = vrot.lane.b32.xlu0 %v3528_v7, %s3441_s18 }
  0xf0   :  { %v385_v42 = vpop.permute.xlu1 %384  ;;  %v383_v43 = vpop.permute.xlu0 %382 }
  0xf1   :  { %v390_v44 = vsel %vm386_vm3, %v377_v35, %v385_v42  ;;  %v402_v39 = vsel %vm386_vm3, %v385_v42, %v361_v17  ;;  %v389_v45 = vsel %vm386_vm3, %v375_v37, %v383_v43  ;;  %v401_v46 = vsel %vm386_vm3, %v383_v43, %v359_v20  ;;  %v40_v42 = vld [vmem:[%s5895_s3 + $0x18] sm:$0xff]  ;;  %v39_v43 = vld [vmem:[%s5895_s3 + $0x10] sm:$0xff] }
  0xf2   :  { %v438_v47 = vmul.f32 %v409_v50, %v402_v39  ;;  %v441_v48 = vmul.f32 %v421_v52, %v390_v44  ;;  %v434_v49 = vmul.f32 %v409_v50, %v401_v46  ;;  %v437_v53 = vmul.f32 %v421_v52, %v389_v45  ;;  %792 = vrot.lane.b32.xlu1 %v3537_v8, %s3441_s18 }
  0xf3   :  { %790 = vrot.lane.b32.xlu0 %v3542_v9, %s3441_s18  ;;  %v461_v50 = vpack.c.bf16 %v3523_v6, %v3528_v7  ;;  %v448_v52 = vpack.c.bf16 %v440_v33, %v436_v41  ;;  %v4022_v9 = vrot.slane %v3236_v59, %v3689_v27  ;;  %v38_v33 = vld [vmem:[%s5895_s3 + $0x8] sm:$0xff] }
  0xf4   :  { %v477_v40 = vpop.permute.xlu1 %476  ;;  %v475_v54 = vpop.permute.xlu0 %474  ;;  %v446_v55 = vpack.c.bf16 %v438_v47, %v434_v49  ;;  %v449_v56 = vpack.c.bf16 %v441_v48, %v437_v53 }
  0xf6   :  { %800 = vrot.lane.b32.xlu1 %v3551_v10, %s3441_s18  ;;  %1042 = vmatpush1.bf16.msra.mxu0 %v446_v55  ;;  %v465_v10 = vpack.c.bf16 %v3579_v14, %v3584_v15 }
  0xf7   :  { %798 = vrot.lane.b32.xlu0 %v3556_v11, %s3441_s18  ;;  %1147 = vmatprep.subr.bf16.mxu1 %v449_v56  ;;  %v5900_v11 = vmov 0  }
  0xf8   :  { %1148 = vmatpush1.bf16.msra.mxu1 %v448_v52  ;;  %v485_v6 = vpop.permute.xlu1 %484  ;;  %v483_v7 = vpop.permute.xlu0 %482  ;;  %1043 = vmatprep.subr.bf16.mxu0 %v459_v51 }
  0xf9   :  { %v516_v1 = vsel %vm506_vm4, %v477_v40, %v485_v6  ;;  %v515_v3 = vsel %vm506_vm4, %v475_v54, %v483_v7  ;;  %1149 = vmatprep.subr.bf16.mxu1 %v461_v50  ;;  %3345 = vset.pattern.permute.xlu0 %v5900_v11 }
  0xfa   :  { %808 = vrot.lane.b32.xlu1 %v3565_v12, %s3441_s18  ;;  %1044 = vmatpush1.bf16.msra.mxu0 %v458_v60  ;;  %v550_v5 = vmul.f32 %v3992_v2, %v516_v1  ;;  %v546_v57 = vmul.f32 %v3992_v2, %v515_v3  ;;  %v541_v12 = vrot.slane %v3236_v59, %v3699_v32 }
  0xfb   :  { %806 = vrot.lane.b32.xlu0 %v3570_v13, %s3441_s18  ;;  %1045 = vmatprep.subr.bf16.mxu0 %v463_v0 }
  0xfc   :  { %v493_v58 = vpop.permute.xlu1 %492  ;;  %v491_v63 = vpop.permute.xlu0 %490  ;;  %1150 = vmatpush1.bf16.msra.mxu1 %v460_v61  ;;  %3346 = vset.pattern.permute.xlu1 %v5900_v11  ;;  %v562_v25 = vpack.c.bf16 %v550_v5, %v546_v57 }
  0xfd   :  { %v512_v17 = vsel %vm506_vm4, %v485_v6, %v493_v58  ;;  %v511_v8 = vsel %vm506_vm4, %v483_v7, %v491_v63  ;;  %1151 = vmatprep.subr.bf16.mxu1 %v465_v10 }
  0xfe   :  { %v551_v20 = vmul.f32 %v4006_v62, %v512_v17  ;;  %v547_v21 = vmul.f32 %v4006_v62, %v511_v8  ;;  %816 = vrot.lane.b32.xlu1 %v3579_v14, %s3441_s18  ;;  %1046 = vmatpush1.bf16.msra.mxu0 %v462_v4 }
  0xff   :  { %814 = vrot.lane.b32.xlu0 %v3584_v15, %s3441_s18 }
 0x100   :  { %v501_v13 = vpop.permute.xlu1 %500  ;;  %v499_v22 = vpop.permute.xlu0 %498  ;;  %v563_v24 = vpack.c.bf16 %v551_v20, %v547_v21  ;;  %1152 = vmatpush1.bf16.msra.mxu1 %v464_v16 }
 0x101   :  { %v508_v26 = vsel %vm506_vm4, %v493_v58, %v501_v13  ;;  %v520_v28 = vsel %vm506_vm4, %v501_v13, %v477_v40  ;;  %v507_v14 = vsel %vm506_vm4, %v491_v63, %v499_v22  ;;  %v519_v29 = vsel %vm506_vm4, %v499_v22, %v475_v54  ;;  %v3237_v58 = vld [vmem:[%s5893_s4 + $0x6] ss:$8 sm:$0xf] }
 0x102   :  { %v552_v23 = vmul.f32 %v4022_v9, %v508_v26  ;;  %v553_v15 = vmul.f32 %v541_v12, %v520_v28  ;;  %v548_v34 = vmul.f32 %v4022_v9, %v507_v14  ;;  %v549_v35 = vmul.f32 %v541_v12, %v519_v29  ;;  %1047 = vmatprep.subr.bf16.mxu0 %v563_v24 }
 0x103   :  { %1048 = vmatpush1.bf16.msra.mxu0 %v562_v25  ;;  %972 = vperm.xlu0 %3345, %v4044_v36   ;;  %v3443_v54 = vmov 2   ;;  %v633_v16 = vrot.slane %v3237_v58, %v3697_v31  ;;  %v637_v20 = vrot.slane %v3237_v58, %v3676_v19  ;;  %v641_v28 = vrot.slane %v3237_v58, %v3689_v27 }
 0x104   :  { %v481_v37 = vpop.permute.xlu1 %480  ;;  %v565_v38 = vpack.c.bf16 %v553_v15, %v549_v35  ;;  %v564_v30 = vpack.c.bf16 %v552_v23, %v548_v34  ;;  %977 = vperm.xlu1 %3346, %v38_v33   ;;  %v645_v14 = vrot.slane %v3237_v58, %v3699_v32 }
 0x105   :  { %v479_v41 = vpop.permute.xlu0 %478 }
 0x106   :  { %1153 = vmatprep.subr.bf16.mxu1 %v565_v38 }
 0x107   :  { %1154 = vmatpush1.bf16.msra.mxu1 %v564_v30  ;;  %987 = vperm.xlu0 %3345, %v40_v42  }
 0x108   :  { %v489_v44 = vpop.permute.xlu1 %488  ;;  %982 = vperm.xlu1 %3346, %v39_v43  }
 0x109   :  { %v487_v39 = vpop.permute.xlu0 %486  ;;  %v518_v45 = vsel %vm506_vm4, %v481_v37, %v489_v44 }
 0x10a   :  { %v517_v46 = vsel %vm506_vm4, %v479_v41, %v487_v39  ;;  %v558_v48 = vmul.f32 %v3992_v2, %v518_v45 }
 0x10b   :  { %v554_v49 = vmul.f32 %v3992_v2, %v517_v46  ;;  %3348 = vset.pattern.permute.xlu0 %v3443_v54 }
 0x10c   :  { %v497_v47 = vpop.permute.xlu1 %496  ;;  %3347 = vset.pattern.permute.xlu1 %v3443_v54  ;;  %1410 = vperm.xlu0 %3348, %v38_v33  }
 0x10d   :  { %v514_v53 = vsel %vm506_vm4, %v489_v44, %v497_v47  ;;  %v495_v40 = vpop.permute.xlu0 %494  ;;  %1406 = vperm.xlu1 %3347, %v4044_v36   ;;  %v566_v2 = vpack.c.bf16 %v558_v48, %v554_v49 }
 0x10e   :  { %v559_v55 = vmul.f32 %v4006_v62, %v514_v53  ;;  %v513_v56 = vsel %vm506_vm4, %v487_v39, %v495_v40 }
 0x10f   :  { %v555_v51 = vmul.f32 %v4006_v62, %v513_v56 }
 0x110   :  { %v505_v59 = vpop.permute.xlu1 %504  ;;  %1418 = vperm.xlu0 %3348, %v40_v42  }
 0x111   :  { %v510_v50 = vsel %vm506_vm4, %v497_v47, %v505_v59  ;;  %v522_v52 = vsel %vm506_vm4, %v505_v59, %v481_v37  ;;  %v503_v60 = vpop.permute.xlu0 %502  ;;  %v567_v0 = vpack.c.bf16 %v559_v55, %v555_v51  ;;  %1414 = vperm.xlu1 %3347, %v39_v43  }
 0x112   :  { %v560_v6 = vmul.f32 %v4022_v9, %v510_v50  ;;  %v561_v7 = vmul.f32 %v541_v12, %v522_v52  ;;  %v509_v61 = vsel %vm506_vm4, %v495_v40, %v503_v60  ;;  %v521_v1 = vsel %vm506_vm4, %v503_v60, %v479_v41 }
 0x113   :  { %v556_v3 = vmul.f32 %v4022_v9, %v509_v61  ;;  %v557_v10 = vmul.f32 %v541_v12, %v521_v1  ;;  %1049 = vmatprep.subr.bf16.mxu0 %v567_v0 }
 0x114   :  { %1050 = vmatpush1.bf16.msra.mxu0 %v566_v2  ;;  %v581_v62 = vpop.permute.xlu1 %580  ;;  %3350 = vset.pattern.permute.xlu0 %v5900_v11 }
 0x115   :  { %v579_v4 = vpop.permute.xlu0 %578  ;;  %v569_v5 = vpack.c.bf16 %v561_v7, %v557_v10  ;;  %v568_v57 = vpack.c.bf16 %v560_v6, %v556_v3  ;;  %3349 = vset.pattern.permute.xlu1 %v5900_v11 }
 0x117   :  { %1155 = vmatprep.subr.bf16.mxu1 %v569_v5 }
 0x118   :  { %1156 = vmatpush1.bf16.msra.mxu1 %v568_v57  ;;  %v589_v63 = vpop.permute.xlu1 %588 }
 0x119   :  { %v587_v17 = vpop.permute.xlu0 %586  ;;  %v620_v8 = vsel %vm610_vm5, %v581_v62, %v589_v63 }
 0x11a   :  { %v619_v9 = vsel %vm610_vm5, %v579_v4, %v587_v17  ;;  %v654_v12 = vmul.f32 %v633_v16, %v620_v8  ;;  %v3238_v8 = vld [vmem:[%s5893_s4 + $0x7] ss:$8 sm:$0xf] }
 0x11b   :  { %v650_v13 = vmul.f32 %v633_v16, %v619_v9 }
 0x11c   :  { %v597_v21 = vpop.permute.xlu1 %596 }
 0x11d   :  { %v616_v22 = vsel %vm610_vm5, %v589_v63, %v597_v21  ;;  %v595_v24 = vpop.permute.xlu0 %594  ;;  %v666_v38 = vpack.c.bf16 %v654_v12, %v650_v13 }
 0x11e   :  { %v655_v25 = vmul.f32 %v637_v20, %v616_v22  ;;  %v615_v26 = vsel %vm610_vm5, %v587_v17, %v595_v24  ;;  %v741_v22 = vrot.slane %v3238_v8, %v3676_v19 }
 0x11f   :  { %v651_v29 = vmul.f32 %v637_v20, %v615_v26 }
 0x120   :  { %v605_v23 = vpop.permute.xlu1 %604 }
 0x121   :  { %v612_v15 = vsel %vm610_vm5, %v597_v21, %v605_v23  ;;  %v624_v34 = vsel %vm610_vm5, %v605_v23, %v581_v62  ;;  %v603_v35 = vpop.permute.xlu0 %602  ;;  %v667_v37 = vpack.c.bf16 %v655_v25, %v651_v29 }
 0x122   :  { %v656_v30 = vmul.f32 %v641_v28, %v612_v15  ;;  %v657_v33 = vmul.f32 %v645_v14, %v624_v34  ;;  %v611_v41 = vsel %vm610_vm5, %v595_v24, %v603_v35  ;;  %v623_v42 = vsel %vm610_vm5, %v603_v35, %v579_v4 }
 0x123   :  { %v652_v43 = vmul.f32 %v641_v28, %v611_v41  ;;  %v653_v44 = vmul.f32 %v645_v14, %v623_v42  ;;  %1051 = vmatprep.subr.bf16.mxu0 %v667_v37  ;;  %v745_v15 = vrot.slane %v3238_v8, %v3689_v27  ;;  %v749_v34 = vrot.slane %v3238_v8, %v3699_v32 }
 0x124   :  { %1052 = vmatpush1.bf16.msra.mxu0 %v666_v38  ;;  %v585_v39 = vpop.permute.xlu1 %584 }
 0x125   :  { %v583_v45 = vpop.permute.xlu0 %582  ;;  %v669_v46 = vpack.c.bf16 %v657_v33, %v653_v44  ;;  %v668_v47 = vpack.c.bf16 %v656_v30, %v652_v43 }
 0x127   :  { %1157 = vmatprep.subr.bf16.mxu1 %v669_v46 }
 0x128   :  { %1158 = vmatpush1.bf16.msra.mxu1 %v668_v47  ;;  %v593_v48 = vpop.permute.xlu1 %592 }
 0x129   :  { %v591_v49 = vpop.permute.xlu0 %590  ;;  %v622_v53 = vsel %vm610_vm5, %v585_v39, %v593_v48 }
 0x12a   :  { %v621_v40 = vsel %vm610_vm5, %v583_v45, %v591_v49  ;;  %v662_v55 = vmul.f32 %v633_v16, %v622_v53 }
 0x12b   :  { %v658_v56 = vmul.f32 %v633_v16, %v621_v40 }
 0x12c   :  { %v601_v54 = vpop.permute.xlu1 %600 }
 0x12d   :  { %v618_v51 = vsel %vm610_vm5, %v593_v48, %v601_v54  ;;  %v599_v59 = vpop.permute.xlu0 %598  ;;  %v670_v1 = vpack.c.bf16 %v662_v55, %v658_v56 }
 0x12e   :  { %v663_v50 = vmul.f32 %v637_v20, %v618_v51  ;;  %v617_v52 = vsel %vm610_vm5, %v591_v49, %v599_v59 }
 0x12f   :  { %v659_v60 = vmul.f32 %v637_v20, %v617_v52  ;;  %v737_v20 = vrot.slane %v3238_v8, %v3697_v31  ;;  %v3362_v8 = vld [vmem:[%s5894_s1] ss:$12 sps:$4 sm:$0xff]  }
 0x130   :  { %v609_v0 = vpop.permute.xlu1 %608 }
 0x131   :  { %v614_v2 = vsel %vm610_vm5, %v601_v54, %v609_v0  ;;  %v626_v6 = vsel %vm610_vm5, %v609_v0, %v585_v39  ;;  %v607_v7 = vpop.permute.xlu0 %606  ;;  %v671_v61 = vpack.c.bf16 %v663_v50, %v659_v60 }
 0x132   :  { %v664_v3 = vmul.f32 %v641_v28, %v614_v2  ;;  %v665_v10 = vmul.f32 %v645_v14, %v626_v6  ;;  %v613_v62 = vsel %vm610_vm5, %v599_v59, %v607_v7  ;;  %v625_v4 = vsel %vm610_vm5, %v607_v7, %v583_v45 }
 0x133   :  { %v660_v5 = vmul.f32 %v641_v28, %v613_v62  ;;  %v661_v57 = vmul.f32 %v645_v14, %v625_v4  ;;  %1053 = vmatprep.subr.bf16.mxu0 %v671_v61 }
 0x134   :  { %1054 = vmatpush1.bf16.msra.mxu0 %v670_v1  ;;  %v685_v58 = vpop.permute.xlu1 %684 }
 0x135   :  { %v683_v63 = vpop.permute.xlu0 %682  ;;  %v673_v16 = vpack.c.bf16 %v665_v10, %v661_v57  ;;  %v672_v17 = vpack.c.bf16 %v664_v3, %v660_v5 }
 0x137   :  { %1159 = vmatprep.subr.bf16.mxu1 %v673_v16 }
 0x138   :  { %1160 = vmatpush1.bf16.msra.mxu1 %v672_v17  ;;  %v693_v9 = vpop.permute.xlu1 %692 }
 0x139   :  { %v691_v21 = vpop.permute.xlu0 %690  ;;  %v724_v12 = vsel %vm714_vm6, %v685_v58, %v693_v9 }
 0x13a   :  { %v723_v13 = vsel %vm714_vm6, %v683_v63, %v691_v21  ;;  %v758_v25 = vmul.f32 %v737_v20, %v724_v12 }
 0x13b   :  { %v754_v26 = vmul.f32 %v737_v20, %v723_v13 }
 0x13c   :  { %v701_v24 = vpop.permute.xlu1 %700 }
 0x13d   :  { %v720_v28 = vsel %vm714_vm6, %v693_v9, %v701_v24  ;;  %v699_v14 = vpop.permute.xlu0 %698  ;;  %v770_v42 = vpack.c.bf16 %v758_v25, %v754_v26 }
 0x13e   :  { %v759_v29 = vmul.f32 %v741_v22, %v720_v28  ;;  %v719_v23 = vsel %vm714_vm6, %v691_v21, %v699_v14 }
 0x13f   :  { %v755_v35 = vmul.f32 %v741_v22, %v719_v23  ;;  %v3367_v23 = vld [vmem:[%s5894_s1 + $0x18] ss:$12 sps:$4 sm:$0xff]  }
 0x140   :  { %v709_v37 = vpop.permute.xlu1 %708 }
 0x141   :  { %v716_v38 = vsel %vm714_vm6, %v701_v24, %v709_v37  ;;  %v728_v30 = vsel %vm714_vm6, %v709_v37, %v685_v58  ;;  %v707_v33 = vpop.permute.xlu0 %706  ;;  %v771_v41 = vpack.c.bf16 %v759_v29, %v755_v35 }
 0x142   :  { %v760_v43 = vmul.f32 %v745_v15, %v716_v38  ;;  %v761_v44 = vmul.f32 %v749_v34, %v728_v30  ;;  %v715_v39 = vsel %vm714_vm6, %v699_v14, %v707_v33  ;;  %v727_v45 = vsel %vm714_vm6, %v707_v33, %v683_v63 }
 0x143   :  { %v756_v46 = vmul.f32 %v745_v15, %v715_v39  ;;  %v757_v47 = vmul.f32 %v749_v34, %v727_v45  ;;  %1055 = vmatprep.subr.bf16.mxu0 %v771_v41 }
 0x144   :  { %1056 = vmatpush1.bf16.msra.mxu0 %v770_v42  ;;  %v689_v48 = vpop.permute.xlu1 %688 }
 0x145   :  { %v687_v49 = vpop.permute.xlu0 %686  ;;  %v773_v53 = vpack.c.bf16 %v761_v44, %v757_v47  ;;  %v772_v40 = vpack.c.bf16 %v760_v43, %v756_v46 }
 0x147   :  { %1161 = vmatprep.subr.bf16.mxu1 %v773_v53 }
 0x148   :  { %1162 = vmatpush1.bf16.msra.mxu1 %v772_v40  ;;  %v697_v54 = vpop.permute.xlu1 %696 }
 0x149   :  { %v695_v55 = vpop.permute.xlu0 %694  ;;  %v726_v56 = vsel %vm714_vm6, %v689_v48, %v697_v54 }
 0x14a   :  { %v725_v51 = vsel %vm714_vm6, %v687_v49, %v695_v55  ;;  %v766_v50 = vmul.f32 %v737_v20, %v726_v56 }
 0x14b   :  { %v762_v52 = vmul.f32 %v737_v20, %v725_v51  ;;  %v3365_v20 = vld [vmem:[%s5894_s1 + $0x1c] ss:$12 sps:$4 sm:$0xff]  }
 0x14c   :  { %v705_v59 = vpop.permute.xlu1 %704 }
 0x14d   :  { %v722_v60 = vsel %vm714_vm6, %v697_v54, %v705_v59  ;;  %v703_v0 = vpop.permute.xlu0 %702  ;;  %v774_v4 = vpack.c.bf16 %v766_v50, %v762_v52 }
 0x14e   :  { %v767_v2 = vmul.f32 %v741_v22, %v722_v60  ;;  %v721_v6 = vsel %vm714_vm6, %v695_v55, %v703_v0 }
 0x14f   :  { %v763_v7 = vmul.f32 %v741_v22, %v721_v6  ;;  %v3239_v22 = vld [vmem:[%s5893_s4 + $0x20] ss:$8 sm:$0xf] }
 0x150   :  { %v713_v61 = vpop.permute.xlu1 %712  ;;  %v841_v25 = vrot.slane %v3239_v22, %v3697_v31  ;;  %v845_v29 = vrot.slane %v3239_v22, %v3676_v19  ;;  %v849_v41 = vrot.slane %v3239_v22, %v3689_v27  ;;  %v853_v42 = vrot.slane %v3239_v22, %v3699_v32 }
 0x151   :  { %v718_v1 = vsel %vm714_vm6, %v705_v59, %v713_v61  ;;  %v730_v3 = vsel %vm714_vm6, %v713_v61, %v689_v48  ;;  %v711_v10 = vpop.permute.xlu0 %710  ;;  %v775_v62 = vpack.c.bf16 %v767_v2, %v763_v7 }
 0x152   :  { %v768_v5 = vmul.f32 %v745_v15, %v718_v1  ;;  %v769_v57 = vmul.f32 %v749_v34, %v730_v3  ;;  %v717_v58 = vsel %vm714_vm6, %v703_v0, %v711_v10  ;;  %v729_v63 = vsel %vm714_vm6, %v711_v10, %v687_v49 }
 0x153   :  { %v764_v16 = vmul.f32 %v745_v15, %v717_v58  ;;  %v765_v17 = vmul.f32 %v749_v34, %v729_v63  ;;  %1057 = vmatprep.subr.bf16.mxu0 %v775_v62 }
 0x154   :  { %1058 = vmatpush1.bf16.msra.mxu0 %v774_v4  ;;  %v789_v9 = vpop.permute.xlu1 %788 }
 0x155   :  { %v787_v21 = vpop.permute.xlu0 %786  ;;  %v777_v12 = vpack.c.bf16 %v769_v57, %v765_v17  ;;  %v776_v13 = vpack.c.bf16 %v768_v5, %v764_v16 }
 0x157   :  { %1163 = vmatprep.subr.bf16.mxu1 %v777_v12  ;;  %1060 = vmatmul.mubr.bf16.vlgmr.msra.gmra.mrb[0].mxu0 %v3362_v8 }
 0x158   :  { %1164 = vmatpush1.bf16.msra.mxu1 %v776_v13  ;;  %v797_v24 = vpop.permute.xlu1 %796  ;;  %1069 = vmatprep.mubr.bf16.mxu0 %v3365_v20 }
 0x159   :  { %v795_v26 = vpop.permute.xlu0 %794  ;;  %v828_v28 = vsel %vm818_vm7, %v789_v9, %v797_v24 }
 0x15a   :  { %v827_v14 = vsel %vm818_vm7, %v787_v21, %v795_v26  ;;  %v862_v34 = vmul.f32 %v841_v25, %v828_v28  ;;  %v3369_v28 = vld [vmem:[%s5894_s1 + $0x20] ss:$12 sps:$4 sm:$0xff]  }
 0x15b   :  { %1166 = vmatmul.mubr.bf16.vlgmr.msra.gmra.mrb[0].mxu1 %v3362_v8  ;;  %v858_v35 = vmul.f32 %v841_v25, %v827_v14 }
 0x15c   :  { %v805_v15 = vpop.permute.xlu1 %804  ;;  %1175 = vmatprep.mubr.bf16.mxu1 %v3365_v20 }
 0x15d   :  { %v824_v37 = vsel %vm818_vm7, %v797_v24, %v805_v15  ;;  %v803_v38 = vpop.permute.xlu0 %802  ;;  %v874_v39 = vpack.c.bf16 %v862_v34, %v858_v35  ;;  %v3368_v24 = vld [vmem:[%s5894_s1 + $0x8] ss:$12 sps:$4 sm:$0xff]  }
 0x15e   :  { %v863_v30 = vmul.f32 %v845_v29, %v824_v37  ;;  %v823_v33 = vsel %vm818_vm7, %v795_v26, %v803_v38 }
 0x15f   :  { %v859_v43 = vmul.f32 %v845_v29, %v823_v33  ;;  %1070 = vmatmul.mubr.bf16.gmra.mrb[4].mxu0 %v3367_v23 }
 0x160   :  { %v813_v44 = vpop.permute.xlu1 %812  ;;  %1112 = vmatprep.mubr.bf16.mxu0 %v5900_v11 }
 0x161   :  { %v820_v45 = vsel %vm818_vm7, %v805_v15, %v813_v44  ;;  %v832_v46 = vsel %vm818_vm7, %v813_v44, %v789_v9  ;;  %v811_v47 = vpop.permute.xlu0 %810  ;;  %v875_v48 = vpack.c.bf16 %v863_v30, %v859_v43 }
 0x162   :  { %v864_v49 = vmul.f32 %v849_v41, %v820_v45  ;;  %v865_v53 = vmul.f32 %v853_v42, %v832_v46  ;;  %v819_v40 = vsel %vm818_vm7, %v803_v38, %v811_v47  ;;  %v831_v54 = vsel %vm818_vm7, %v811_v47, %v787_v21 }
 0x163   :  { %v860_v55 = vmul.f32 %v849_v41, %v819_v40  ;;  %v861_v56 = vmul.f32 %v853_v42, %v831_v54  ;;  %1080 = vmatprep.subr.bf16.mxu0 %v875_v48  ;;  %1176 = vmatmul.mubr.bf16.gmra.mrb[4].mxu1 %v3367_v23 }
 0x164   :  { %1081 = vmatpush1.bf16.msra.mxu0 %v874_v39  ;;  %v793_v51 = vpop.permute.xlu1 %792  ;;  %1218 = vmatprep.mubr.bf16.mxu1 %v5900_v11 }
 0x165   :  { %v876_v59 = vpack.c.bf16 %v864_v49, %v860_v55  ;;  %v791_v50 = vpop.permute.xlu0 %790  ;;  %v877_v52 = vpack.c.bf16 %v865_v53, %v861_v56 }
 0x167   :  { %1186 = vmatprep.subr.bf16.mxu1 %v877_v52 }
 0x168   :  { %1187 = vmatpush1.bf16.msra.mxu1 %v876_v59  ;;  %v801_v60 = vpop.permute.xlu1 %800 }
 0x169   :  { %v799_v0 = vpop.permute.xlu0 %798  ;;  %v830_v2 = vsel %vm818_vm7, %v793_v51, %v801_v60 }
 0x16a   :  { %v829_v6 = vsel %vm818_vm7, %v791_v50, %v799_v0  ;;  %v870_v61 = vmul.f32 %v841_v25, %v830_v2 }
 0x16b   :  { %v866_v1 = vmul.f32 %v841_v25, %v829_v6 }
 0x16c   :  { %v809_v7 = vpop.permute.xlu1 %808 }
 0x16d   :  { %v826_v3 = vsel %vm818_vm7, %v801_v60, %v809_v7  ;;  %v807_v10 = vpop.permute.xlu0 %806  ;;  %v878_v58 = vpack.c.bf16 %v870_v61, %v866_v1 }
 0x16e   :  { %v871_v62 = vmul.f32 %v845_v29, %v826_v3  ;;  %v825_v4 = vsel %vm818_vm7, %v799_v0, %v807_v10 }
 0x16f   :  { %v867_v5 = vmul.f32 %v845_v29, %v825_v4 }
 0x170   :  { %v817_v57 = vpop.permute.xlu1 %816 }
 0x171   :  { %v822_v63 = vsel %vm818_vm7, %v809_v7, %v817_v57  ;;  %v834_v16 = vsel %vm818_vm7, %v817_v57, %v793_v51  ;;  %v815_v17 = vpop.permute.xlu0 %814  ;;  %v879_v8 = vpack.c.bf16 %v871_v62, %v867_v5 }
 0x172   :  { %v872_v9 = vmul.f32 %v849_v41, %v822_v63  ;;  %v873_v20 = vmul.f32 %v853_v42, %v834_v16  ;;  %v821_v21 = vsel %vm818_vm7, %v807_v10, %v815_v17  ;;  %v833_v12 = vsel %vm818_vm7, %v815_v17, %v791_v50 }
 0x173   :  { %v868_v13 = vmul.f32 %v849_v41, %v821_v21  ;;  %v869_v22 = vmul.f32 %v853_v42, %v833_v12  ;;  %1082 = vmatprep.subr.bf16.mxu0 %v879_v8 }
 0x174   :  { %1083 = vmatpush1.bf16.msra.mxu0 %v878_v58 }
 0x175   :  { %v880_v25 = vpack.c.bf16 %v872_v9, %v868_v13  ;;  %v881_v26 = vpack.c.bf16 %v873_v20, %v869_v22 }
 0x177   :  { %3246 = vmatmul.mubr.msk.bf16.vlgmr.msra.gmra.mrb[0].mxu0 %vm1020_vm8, %v3368_v24  ;;  %1188 = vmatprep.subr.bf16.mxu1 %v881_v26 }
 0x178   :  { %1189 = vmatpush1.bf16.msra.mxu1 %v880_v25  ;;  %1122 = vmatprep.mubr.bf16.mxu0 %v5900_v11 }
 0x17b   :  { %3248 = vmatmul.mubr.msk.bf16.vlgmr.msra.gmra.mrb[0].mxu1 %vm1020_vm8, %v3368_v24 }
 0x17c   :  { %1228 = vmatprep.mubr.bf16.mxu1 %v5900_v11 }
 0x17f   :  { %3247 = vmatmul.mubr.msk.bf16.gmra.mrb[4].mxu0 %vm1020_vm8, %v3369_v28 }
 0x182   :  { %v973_v14 = vpop.permute.xlu0 %972 }
 0x183   :  { %3249 = vmatmul.mubr.msk.bf16.gmra.mrb[4].mxu1 %vm1020_vm8, %v3369_v28  ;;  %v978_v37 = vpop.permute.xlu1 %977 }
 0x186   :  { %v988_v5 = vpop.permute.xlu0 %987 }
 0x187   :  { %v983_v57 = vpop.permute.xlu1 %982 }
 0x24a   :  { %v1114_v29 = vpop.f32.mrb[0].mxu0 }
 0x24b   :  { %v4224_v23 = vadd.f32 %v1114_v29, %v973_v14  ;;  %v1116_v15 = vpop.f32.mrb[1].mxu0 }
 0x24c   :  { %v4226_v34 = vadd.f32 %v1116_v15, %v973_v14  ;;  %v1118_v35 = vpop.f32.mrb[2].mxu0 }
 0x24d   :  { %v1120_v38 = vpop.f32.mrb[3].mxu0  ;;  %v4232_v43 = vadd.f32 %v1118_v35, %v978_v37  ;;  %v1251_v50 = vmul.f32 %v4224_v23, %v4224_v23 }
 0x24e   :  { %v1220_v30 = vpop.f32.mrb[0].mxu1  ;;  %v1239_v33 = vadd.f32 %v4226_v34, %v4224_v23  ;;  %v4234_v44 = vadd.f32 %v1120_v38, %v978_v37  ;;  %v1252_v52 = vmul.f32 %v4226_v34, %v4226_v34 }
 0x24f   :  { %v4230_v41 = vadd.f32 %v1220_v30, %v973_v14  ;;  %v1222_v42 = vpop.f32.mrb[1].mxu1  ;;  %v1253_v54 = vmul.f32 %v4232_v43, %v4232_v43 }
 0x250   :  { %v4236_v39 = vadd.f32 %v1222_v42, %v973_v14  ;;  %v1224_v45 = vpop.f32.mrb[2].mxu1  ;;  %1240 = vadd.xlane.f32.xlu1 %v1239_v33  ;;  %v1254_v55 = vmul.f32 %v4234_v44, %v4234_v44  ;;  %v1242_v0 = vadd.f32 %v4234_v44, %v4232_v43  ;;  %v1259_v4 = vadd.f32 %v1252_v52, %v1251_v50 }
 0x251   :  { %v4238_v46 = vadd.f32 %v1224_v45, %v978_v37  ;;  %v1226_v47 = vpop.f32.mrb[3].mxu1  ;;  %v1449_v10 = vmul.f32 %v4230_v41, %v4230_v41 }
 0x252   :  { %v4240_v48 = vadd.f32 %v1226_v47, %v978_v37  ;;  %v1124_v49 = vpop.f32.mrb[4].mxu0  ;;  %v1437_v53 = vadd.f32 %v4236_v39, %v4230_v41  ;;  %v1262_v1 = vadd.f32 %v1254_v55, %v1253_v54  ;;  %v1450_v62 = vmul.f32 %v4236_v39, %v4236_v39 }
 0x253   :  { %v1126_v40 = vpop.f32.mrb[5].mxu0  ;;  %v1451_v6 = vmul.f32 %v4238_v46, %v4238_v46  ;;  %v4268_v17 = vadd.f32 %v1124_v49, %v983_v57  ;;  %v4304_v49 = vpop.permute.xlu1 %1406 }
 0x254   :  { %1438 = vadd.xlane.f32.xlu0 %v1437_v53  ;;  %v1128_v56 = vpop.f32.mrb[6].mxu0  ;;  %v1440_v51 = vadd.f32 %v4240_v48, %v4238_v46  ;;  %v1452_v7 = vmul.f32 %v4240_v48, %v4240_v48  ;;  %v4270_v8 = vadd.f32 %v1126_v40, %v983_v57  ;;  %v1457_v9 = vadd.f32 %v1450_v62, %v1449_v10  ;;  %v4306_v53 = vpop.permute.xlu0 %1410 }
 0x255   :  { %v1130_v59 = vpop.f32.mrb[7].mxu0  ;;  %v4264_v58 = vadd.f32 %v1128_v56, %v988_v5  ;;  %v1255_v14 = vmul.f32 %v4268_v17, %v4268_v17 }
 0x256   :  { %v1230_v60 = vpop.f32.mrb[4].mxu1  ;;  %1441 = vadd.xlane.f32.xlu1 %v1440_v51  ;;  %v4266_v63 = vadd.f32 %v1130_v59, %v988_v5  ;;  %v1460_v16 = vadd.f32 %v1452_v7, %v1451_v6  ;;  %v1245_v24 = vadd.f32 %v4270_v8, %v4268_v17  ;;  %v1256_v29 = vmul.f32 %v4270_v8, %v4270_v8 }
 0x257   :  { %v1232_v2 = vpop.f32.mrb[5].mxu1  ;;  %v4278_v13 = vadd.f32 %v1230_v60, %v983_v57  ;;  %v1257_v25 = vmul.f32 %v4264_v58, %v4264_v58  ;;  %v4308_v40 = vpop.permute.xlu1 %1414 }
 0x258   :  { %v1234_v61 = vpop.f32.mrb[6].mxu1  ;;  %1243 = vadd.xlane.f32.xlu0 %v1242_v0  ;;  %v1248_v12 = vadd.f32 %v4266_v63, %v4264_v58  ;;  %v4280_v22 = vadd.f32 %v1232_v2, %v983_v57  ;;  %v1258_v26 = vmul.f32 %v4266_v63, %v4266_v63  ;;  %v1265_v42 = vadd.f32 %v1256_v29, %v1255_v14  ;;  %v4310_v54 = vpop.permute.xlu0 %1418 }
 0x259   :  { %v1236_v3 = vpop.f32.mrb[7].mxu1  ;;  %v4272_v20 = vadd.f32 %v1234_v61, %v988_v5  ;;  %v1453_v30 = vmul.f32 %v4278_v13, %v4278_v13 }
 0x25a   :  { %1263 = vadd.xlane.f32.xlu1 %v1262_v1  ;;  %v4274_v21 = vadd.f32 %v1236_v3, %v988_v5  ;;  %v1443_v15 = vadd.f32 %v4280_v22, %v4278_v13  ;;  %v1268_v38 = vadd.f32 %v1258_v26, %v1257_v25  ;;  %v1454_v33 = vmul.f32 %v4280_v22, %v4280_v22 }
 0x25b   :  { %v1455_v35 = vmul.f32 %v4272_v20, %v4272_v20 }
 0x25c   :  { %1260 = vadd.xlane.f32.xlu0 %v1259_v4  ;;  %v1446_v28 = vadd.f32 %v4274_v21, %v4272_v20  ;;  %v1456_v37 = vmul.f32 %v4274_v21, %v4274_v21  ;;  %v1463_v47 = vadd.f32 %v1454_v33, %v1453_v30 }
 0x25e   :  { %1461 = vadd.xlane.f32.xlu1 %v1460_v16  ;;  %v1466_v45 = vadd.f32 %v1456_v37, %v1455_v35 }
 0x260   :  { %1458 = vadd.xlane.f32.xlu0 %v1457_v9 }
 0x262   :  { %1249 = vadd.xlane.f32.xlu1 %v1248_v12 }
 0x264   :  { %1246 = vadd.xlane.f32.xlu0 %v1245_v24 }
 0x266   :  { %1447 = vadd.xlane.f32.xlu1 %v1446_v28 }
 0x268   :  { %1444 = vadd.xlane.f32.xlu0 %v1443_v15 }
 0x26a   :  { %1269 = vadd.xlane.f32.xlu1 %v1268_v38 }
 0x26c   :  { %1266 = vadd.xlane.f32.xlu0 %v1265_v42 }
 0x26e   :  { %1467 = vadd.xlane.f32.xlu1 %v1466_v45 }
 0x270   :  { %1464 = vadd.xlane.f32.xlu0 %v1463_v47 }
 0x2dd   :  { %v1241_v55 = vpop.xlane.xlu1 %1240 }
 0x2e1   :  { %v1439_v56 = vpop.xlane.xlu0 %1438 }
 0x2e3   :  { %v1442_v51 = vpop.xlane.xlu1 %1441 }
 0x2e5   :  { %v1244_v59 = vpop.xlane.xlu0 %1243 }
 0x2e7   :  { %v1264_v50 = vpop.xlane.xlu1 %1263 }
 0x2e8   :  { %v1273_v52 = vsel %vm1271_vm9, %v1244_v59, %v1264_v50 }
 0x2e9   :  { %v1284_v60 = vsel %vm1276_vm10, %v1273_v52, 0.0  ;;  %v1261_v0 = vpop.xlane.xlu0 %1260 }
 0x2ea   :  { %v1285_v2 = vrot.slane %v1284_v60, 4  ;;  %v1272_v6 = vsel %vm1271_vm9, %v1241_v55, %v1261_v0 }
 0x2eb   :  { %v1277_v7 = vsel %vm1276_vm10, %v1272_v6, 0.0  ;;  %v1462_v61 = vpop.xlane.xlu1 %1461 }
 0x2ec   :  { %v1286_v1 = vadd.f32 %v1285_v2, %v1284_v60  ;;  %v1278_v3 = vrot.slane %v1277_v7, 4  ;;  %v1470_v10 = vsel %vm1271_vm9, %v1442_v51, %v1462_v61 }
 0x2ed   :  { %v1480_v62 = vsel %vm1276_vm10, %v1470_v10, 0.0  ;;  %v1459_v4 = vpop.xlane.xlu0 %1458 }
 0x2ee   :  { %v1287_v5 = vrot.slane %v1286_v1, 2  ;;  %v1279_v57 = vadd.f32 %v1278_v3, %v1277_v7  ;;  %v1481_v16 = vrot.slane %v1480_v62, 4  ;;  %v1469_v9 = vsel %vm1271_vm9, %v1439_v56, %v1459_v4 }
 0x2ef   :  { %v1473_v12 = vsel %vm1276_vm10, %v1469_v9, 0.0  ;;  %v1250_v24 = vpop.xlane.xlu1 %1249 }
 0x2f0   :  { %v1280_v25 = vrot.slane %v1279_v57, 2  ;;  %v1482_v26 = vadd.f32 %v1481_v16, %v1480_v62  ;;  %v1474_v28 = vrot.slane %v1473_v12, 4  ;;  %v1288_v14 = vadd.f32 %v1287_v5, %v1286_v1 }
 0x2f1   :  { %v1247_v29 = vpop.xlane.xlu0 %1246 }
 0x2f2   :  { %v1281_v15 = vadd.f32 %v1280_v25, %v1279_v57  ;;  %v1483_v35 = vrot.slane %v1482_v26, 2  ;;  %v1475_v37 = vadd.f32 %v1474_v28, %v1473_v12  ;;  %v1289_v42 = vrot.slane %v1288_v14, 1 }
 0x2f3   :  { %v1448_v38 = vpop.xlane.xlu1 %1447 }
 0x2f4   :  { %v1282_v30 = vrot.slane %v1281_v15, 1  ;;  %v1476_v33 = vrot.slane %v1475_v37, 2  ;;  %v1484_v45 = vadd.f32 %v1483_v35, %v1482_v26  ;;  %v1290_v60 = vadd.f32 %v1289_v42, %v1288_v14 }
 0x2f5   :  { %v1445_v47 = vpop.xlane.xlu0 %1444 }
 0x2f6   :  { %v1283_v55 = vadd.f32 %v1282_v30, %v1281_v15  ;;  %v1477_v51 = vadd.f32 %v1476_v33, %v1475_v37  ;;  %v1485_v0 = vrot.slane %v1484_v45, 1  ;;  %v4334_v25 = vmul.f32 0.00048828125, %v1290_v60 }
 0x2f7   :  { %v1270_v56 = vpop.xlane.xlu1 %1269 }
 0x2f8   :  { %v1478_v59 = vrot.slane %v1477_v51, 1  ;;  %v1275_v50 = vsel %vm1271_vm9, %v1250_v24, %v1270_v56  ;;  %v4321_v52 = vmul.f32 0.00048828125, %v1283_v55  ;;  %v1486_v9 = vadd.f32 %v1485_v0, %v1484_v45 }
 0x2f9   :  { %v1298_v2 = vsel %vm1276_vm10, %v1275_v50, 0.0  ;;  %v1267_v6 = vpop.xlane.xlu0 %1266  ;;  %v1310_v60 = vmul.f32 %v4334_v25, %v4334_v25 }
 0x2fa   :  { %v1479_v7 = vadd.f32 %v1478_v59, %v1477_v51  ;;  %v1299_v61 = vrot.slane %v1298_v2, 4  ;;  %v1274_v1 = vsel %vm1271_vm9, %v1247_v29, %v1267_v6  ;;  %1347 = vperm.xlu1 %3349, %v4321_v52   ;;  %v1309_v3 = vmul.f32 %v4321_v52, %v4321_v52 }
 0x2fb   :  { %v1291_v10 = vsel %vm1276_vm10, %v1274_v1, 0.0  ;;  %v1468_v62 = vpop.xlane.xlu1 %1467  ;;  %v4342_v42 = vmul.f32 0.00048828125, %v1486_v9 }
 0x2fc   :  { %v1300_v4 = vadd.f32 %v1299_v61, %v1298_v2  ;;  %v1292_v5 = vrot.slane %v1291_v10, 4  ;;  %v1472_v57 = vsel %vm1271_vm9, %v1448_v38, %v1468_v62  ;;  %1317 = vrot.lane.b32.xlu0 %v1309_v3, %s3437_s29  ;;  %v4331_v16 = vmul.f32 0.00048828125, %v1479_v7 }
 0x2fd   :  { %v1494_v12 = vsel %vm1276_vm10, %v1472_v57, 0.0  ;;  %v1465_v24 = vpop.xlane.xlu0 %1464  ;;  %v1506_v0 = vmul.f32 %v4342_v42, %v4342_v42 }
 0x2fe   :  { %v1301_v26 = vrot.slane %v1300_v4, 2  ;;  %v1293_v28 = vadd.f32 %v1292_v5, %v1291_v10  ;;  %v1495_v14 = vrot.slane %v1494_v12, 4  ;;  %v1471_v29 = vsel %vm1271_vm9, %v1445_v47, %v1465_v24  ;;  %1543 = vperm.xlu1 %3349, %v4331_v16  }
 0x2ff   :  { %v1487_v15 = vsel %vm1276_vm10, %v1471_v29, 0.0  ;;  %v1505_v35 = vmul.f32 %v4331_v16, %v4331_v16  ;;  %v5898_v24 = vmov 1  }
 0x300   :  { %v1302_v37 = vadd.f32 %v1301_v26, %v1300_v4  ;;  %v1294_v38 = vrot.slane %v1293_v28, 2  ;;  %v1496_v30 = vadd.f32 %v1495_v14, %v1494_v12  ;;  %v1488_v33 = vrot.slane %v1487_v15, 4  ;;  %1352 = vperm.xlu0 %3350, %v4334_v25  }
 0x302   :  { %v1303_v45 = vrot.slane %v1302_v37, 1  ;;  %v1295_v55 = vadd.f32 %v1294_v38, %v1293_v28  ;;  %v1497_v51 = vrot.slane %v1496_v30, 2  ;;  %v1489_v56 = vadd.f32 %v1488_v33, %v1487_v15  ;;  %1513 = vrot.lane.b32.xlu1 %v1505_v35, %s3437_s29 }
 0x304   :  { %v1296_v47 = vrot.slane %v1295_v55, 1  ;;  %v1498_v59 = vadd.f32 %v1497_v51, %v1496_v30  ;;  %v1490_v50 = vrot.slane %v1489_v56, 2  ;;  %1548 = vperm.xlu0 %3350, %v4342_v42   ;;  %v1304_v2 = vadd.f32 %v1303_v45, %v1302_v37 }
 0x306   :  { %v1297_v6 = vadd.f32 %v1296_v47, %v1295_v55  ;;  %v1499_v7 = vrot.slane %v1498_v59, 1  ;;  %v1491_v61 = vadd.f32 %v1490_v50, %v1489_v56  ;;  %1319 = vrot.lane.b32.xlu1 %v1310_v60, %s3437_s29  ;;  %v4352_v3 = vmul.f32 0.00048828125, %v1304_v2 }
 0x308   :  { %v1492_v1 = vrot.slane %v1491_v61, 1  ;;  %1515 = vrot.lane.b32.xlu0 %v1506_v0, %s3437_s29  ;;  %v1500_v10 = vadd.f32 %v1499_v7, %v1498_v59  ;;  %v1307_v4 = vmul.f32 0.00048828125, %v1297_v6  ;;  %v1312_v9 = vmul.f32 %v4352_v3, %v4352_v3 }
 0x30a   :  { %v1493_v62 = vadd.f32 %v1492_v1, %v1491_v61  ;;  %v1504_v57 = vmul.f32 0.00048828125, %v1500_v10  ;;  %v1311_v12 = vmul.f32 %v1307_v4, %v1307_v4 }
 0x30c   :  { %1357 = vperm.xlu0 %3350, %v1307_v4   ;;  %v4354_v5 = vmul.f32 0.00048828125, %v1493_v62  ;;  %v1508_v26 = vmul.f32 %v1504_v57, %v1504_v57 }
 0x30e   :  { %1553 = vperm.xlu1 %3349, %v4354_v5   ;;  %v1507_v28 = vmul.f32 %v4354_v5, %v4354_v5 }
 0x310   :  { %1323 = vrot.lane.b32.xlu0 %v1312_v9, %s3437_s29 }
 0x311   :  { %3352 = vset.pattern.permute.xlu0 %v5898_v24 }
 0x312   :  { %1321 = vrot.lane.b32.xlu1 %v1311_v12, %s3437_s29 }
 0x314   :  { %1519 = vrot.lane.b32.xlu0 %v1508_v26, %s3437_s29 }
 0x316   :  { %1517 = vrot.lane.b32.xlu1 %v1507_v28, %s3437_s29 }
 0x31a   :  { %1362 = vperm.xlu1 %3349, %v4352_v3  }
 0x31e   :  { %1558 = vperm.xlu1 %3349, %v1504_v57  }
 0x322   :  { %3351 = vset.pattern.permute.xlu1 %v5898_v24 }
 0x36e   :  { %v1318_v14 = vpop.permute.xlu0 %1317 }
 0x36f   :  { %v1329_v29 = vsub.f32 %v4321_v52, %v1318_v14 }
 0x371   :  { %v1333_v15 = vmax.f32 %v1329_v29, 0.0 }
 0x373   :  { %v1337_v35 = vadd.f32 1e-05, %v1333_v15 }
 0x375   :  { %3378 = vrsqrt.f32 %v1337_v35 }
 0x379   :  { %v4369_v37 = vpop.permute.xlu1 %1347 }
 0x37d   :  { %v4371_v38 = vpop.permute.xlu1 %1543 }
 0x37f   :  { %v3379_v30 = vpop.eup %3378  ;;  %v4373_v33 = vpop.permute.xlu0 %1352 }
 0x380   :  { %v1373_v45 = vmul.f32 %v3379_v30, %v4044_v36 }
 0x381   :  { %v1514_v55 = vpop.permute.xlu1 %1513 }
 0x382   :  { %v1525_v51 = vsub.f32 %v4331_v16, %v1514_v55  ;;  %1379 = vperm.xlu1 %3351, %v1373_v45  }
 0x383   :  { %v4377_v56 = vpop.permute.xlu0 %1548 }
 0x384   :  { %v1529_v47 = vmax.f32 %v1525_v51, 0.0 }
 0x385   :  { %v1320_v52 = vpop.permute.xlu1 %1319 }
 0x386   :  { %v1533_v59 = vadd.f32 1e-05, %v1529_v47  ;;  %v1330_v50 = vsub.f32 %v4334_v25, %v1320_v52 }
 0x387   :  { %v1516_v60 = vpop.permute.xlu0 %1515 }
 0x388   :  { %3380 = vrsqrt.f32 %v1533_v59  ;;  %v1334_v0 = vmax.f32 %v1330_v50, 0.0  ;;  %v1526_v2 = vsub.f32 %v4342_v42, %v1516_v60  ;;  %v4389_v42 = vld [vmem:[%s5895_s3] sm:$0xff]  ;;  %v4403_v60 = vld [vmem:[%s5895_s3 + $0x10] sm:$0xff] }
 0x38a   :  { %v1338_v6 = vadd.f32 1e-05, %v1334_v0  ;;  %v1530_v7 = vmax.f32 %v1526_v2, 0.0 }
 0x38b   :  { %v4381_v61 = vpop.permute.xlu0 %1357 }
 0x38c   :  { %3382 = vrsqrt.f32 %v1338_v6  ;;  %v1534_v36 = vadd.f32 1e-05, %v1530_v7  ;;  %v4409_v7 = vld [vmem:[%s5895_s3 + $0x18] sm:$0xff] }
 0x38d   :  { %v4383_v16 = vpop.permute.xlu1 %1553 }
 0x38e   :  { %3384 = vrsqrt.f32 %v1534_v36 }
 0x38f   :  { %v1324_v1 = vpop.permute.xlu0 %1323 }
 0x390   :  { %v1332_v9 = vsub.f32 %v4352_v3, %v1324_v1  ;;  %v4396_v3 = vld [vmem:[%s5895_s3 + $0x8] sm:$0xff] }
 0x391   :  { %v1322_v10 = vpop.permute.xlu1 %1321 }
 0x392   :  { %v3381_v62 = vpop.eup %3380  ;;  %v1331_v25 = vsub.f32 %v1307_v4, %v1322_v10  ;;  %v1336_v35 = vmax.f32 %v1332_v9, 0.0 }
 0x393   :  { %v1520_v12 = vpop.permute.xlu0 %1519  ;;  %v1569_v26 = vmul.f32 %v4389_v42, %v3381_v62 }
 0x394   :  { %v1335_v28 = vmax.f32 %v1331_v25, 0.0  ;;  %v1528_v14 = vsub.f32 %v1504_v57, %v1520_v12  ;;  %v1340_v59 = vadd.f32 1e-05, %v1336_v35  ;;  %v1365_v12 = vsub.f32 %v4224_v23, %v4369_v37 }
 0x395   :  { %1575 = vperm.xlu1 %3351, %v1569_v26   ;;  %v1518_v29 = vpop.permute.xlu1 %1517  ;;  %v1366_v26 = vsub.f32 %v4226_v34, %v4369_v37  ;;  %v1561_v23 = vsub.f32 %v4230_v41, %v4371_v38  ;;  %v1562_v34 = vsub.f32 %v4236_v39, %v4371_v38  ;;  %v1563_v39 = vsub.f32 %v4238_v46, %v4377_v56 }
 0x396   :  { %v3383_v15 = vpop.eup %3382  ;;  %v1339_v30 = vadd.f32 1e-05, %v1335_v28  ;;  %v1532_v45 = vmax.f32 %v1528_v14, 0.0  ;;  %v1527_v55 = vsub.f32 %v4354_v5, %v1518_v29 }
 0x397   :  { %v1374_v4 = vmul.f32 %v4396_v3, %v3383_v15 }
 0x398   :  { %v3385_v51 = vpop.eup %3384  ;;  %3386 = vrsqrt.f32 %v1339_v30  ;;  %v1536_v47 = vadd.f32 1e-05, %v1532_v45  ;;  %v1531_v52 = vmax.f32 %v1527_v55, 0.0 }
 0x399   :  { %1384 = vperm.xlu0 %3352, %v1374_v4   ;;  %v1570_v57 = vmul.f32 %v4396_v3, %v3385_v51  ;;  %v4414_v9 = vpop.permute.xlu1 %1362  ;;  %v1367_v51 = vsub.f32 %v4232_v43, %v4373_v33 }
 0x39a   :  { %3388 = vrsqrt.f32 %v1536_v47  ;;  %v1535_v50 = vadd.f32 1e-05, %v1531_v52  ;;  %v1368_v47 = vsub.f32 %v4234_v44, %v4373_v33 }
 0x39b   :  { %1580 = vperm.xlu1 %3351, %v1570_v57  }
 0x39c   :  { %3390 = vrsqrt.f32 %v1535_v50 }
 0x39d   :  { %3392 = vrsqrt.f32 %v1340_v59  ;;  %v4416_v25 = vpop.permute.xlu1 %1558 }
 0x3a2   :  { %v3387_v5 = vpop.eup %3386 }
 0x3a3   :  { %v1375_v0 = vmul.f32 %v4403_v60, %v3387_v5 }
 0x3a4   :  { %v3389_v2 = vpop.eup %3388 }
 0x3a5   :  { %1389 = vperm.xlu0 %3352, %v1375_v0   ;;  %v1572_v36 = vmul.f32 %v4409_v7, %v3389_v2  ;;  %v1564_v2 = vsub.f32 %v4240_v48, %v4377_v56 }
 0x3a6   :  { %v3391_v6 = vpop.eup %3390 }
 0x3a7   :  { %v1571_v1 = vmul.f32 %v4403_v60, %v3391_v6  ;;  %v3393_v10 = vpop.eup %3392 }
 0x3a8   :  { %v1376_v62 = vmul.f32 %v4409_v7, %v3393_v10 }
 0x3a9   :  { %1590 = vperm.xlu0 %3352, %v1572_v36   ;;  %1585 = vperm.xlu1 %3351, %v1571_v1  }
 0x3ad   :  { %1394 = vperm.xlu1 %3351, %v1376_v62  }
 0x401   :  { %v1380_v28 = vpop.permute.xlu1 %1379 }
 0x402   :  { %v1397_v14 = vmul.f32 %v1380_v28, %v1365_v12  ;;  %v1398_v29 = vmul.f32 %v1380_v28, %v1366_v26  ;;  %v1369_v12 = vsub.f32 %v4268_v17, %v4381_v61 }
 0x404   :  { %v1421_v15 = vadd.f32 %v4304_v49, %v1397_v14  ;;  %v1422_v35 = vadd.f32 %v4304_v49, %v1398_v29  ;;  %v1370_v29 = vsub.f32 %v4270_v8, %v4381_v61  ;;  %v1665_v8 = vld [vmem:[%s5893_s4] ss:$8 sm:$0xf] }
 0x406   :  { %v4424_v30 = vmax.f32 %v1421_v15, 0.0  ;;  %v4426_v45 = vmax.f32 %v1422_v35, 0.0 }
 0x408   :  { %1625 = vrot.lane.b32.xlu0 %v4426_v45, %s3434_s22  ;;  %1617 = vrot.lane.b32.xlu1 %v4424_v30, %s3434_s22 }
 0x414   :  { %v1576_v37 = vpop.permute.xlu1 %1575 }
 0x415   :  { %v1593_v55 = vmul.f32 %v1576_v37, %v1561_v23  ;;  %v1594_v4 = vmul.f32 %v1576_v37, %v1562_v34  ;;  %v1565_v34 = vsub.f32 %v4278_v13, %v4383_v16  ;;  %v1566_v13 = vsub.f32 %v4280_v22, %v4383_v16 }
 0x417   :  { %v1601_v52 = vadd.f32 %v1593_v55, %v4304_v49  ;;  %v1602_v59 = vadd.f32 %v1594_v4, %v4304_v49 }
 0x418   :  { %v1385_v57 = vpop.permute.xlu0 %1384 }
 0x419   :  { %v4442_v50 = vmax.f32 %v1601_v52, 0.0  ;;  %v1399_v41 = vmul.f32 %v1385_v57, %v1367_v51  ;;  %v1400_v5 = vmul.f32 %v1385_v57, %v1368_v47  ;;  %v4449_v43 = vmax.f32 %v1602_v59, 0.0 }
 0x41a   :  { %v1581_v0 = vpop.permute.xlu1 %1580  ;;  %v1371_v47 = vsub.f32 %v4264_v58, %v4414_v9  ;;  %v4600_v52 = vrot.slane %v1665_v8, %v3676_v19 }
 0x41b   :  { %5948 = vst [vmem:[#allocation3_spill] sm:$0xff] %v4442_v50  ;;  %v1423_v38 = vadd.f32 %v4306_v53, %v1399_v41  ;;  %1633 = vrot.lane.b32.xlu0 %v4442_v50, %s3434_s22  ;;  %5949 = vst [vmem:[#allocation4_spill] sm:$0xff] %v4449_v43  ;;  %v1424_v44 = vadd.f32 %v4306_v53, %v1400_v5  ;;  %v1595_v49 = vmul.f32 %v1581_v0, %v1563_v39 }
 0x41c   :  { %v1596_v6 = vmul.f32 %v1581_v0, %v1564_v2  ;;  %v1372_v39 = vsub.f32 %v4266_v63, %v4414_v9 }
 0x41d   :  { %v4452_v33 = vmax.f32 %v1423_v38, 0.0  ;;  %v4460_v46 = vmax.f32 %v1424_v44, 0.0  ;;  %v1603_v36 = vadd.f32 %v1595_v49, %v4306_v53 }
 0x41e   :  { %v1604_v1 = vadd.f32 %v1596_v6, %v4306_v53 }
 0x41f   :  { %1619 = vrot.lane.b32.xlu1 %v4452_v33, %s3434_s22  ;;  %1641 = vrot.lane.b32.xlu0 %v4449_v43, %s3434_s22  ;;  %v4468_v48 = vmax.f32 %v1603_v36, 0.0 }
 0x420   :  { %v4474_v56 = vmax.f32 %v1604_v1, 0.0 }
 0x421   :  { %5950 = vst [vmem:[#allocation5_spill] sm:$0xff] %v4468_v48 }
 0x422   :  { %5951 = vst [vmem:[#allocation6_spill] sm:$0xff] %v4474_v56 }
 0x423   :  { %1627 = vrot.lane.b32.xlu1 %v4460_v46, %s3434_s22  ;;  %1719 = vrot.lane.b32.xlu0 %v4424_v30, %s3435_s27 }
 0x424   :  { %v1390_v53 = vpop.permute.xlu0 %1389 }
 0x425   :  { %v1401_v26 = vmul.f32 %v1390_v53, %v1369_v12  ;;  %v1402_v15 = vmul.f32 %v1390_v53, %v1370_v29  ;;  %v1567_v53 = vsub.f32 %v4272_v20, %v4416_v25  ;;  %v4635_v12 = vrot.slane %v1665_v8, %v3699_v32 }
 0x426   :  { %v1568_v20 = vsub.f32 %v4274_v21, %v4416_v25  ;;  %v4649_v29 = vrot.slane %v1665_v8, %v3689_v27 }
 0x427   :  { %1727 = vrot.lane.b32.xlu0 %v4426_v45, %s3435_s27  ;;  %1635 = vrot.lane.b32.xlu1 %v4468_v48, %s3434_s22  ;;  %v1425_v17 = vadd.f32 %v4308_v40, %v1401_v26  ;;  %v1426_v61 = vadd.f32 %v4308_v40, %v1402_v15 }
 0x428   :  { %v1586_v10 = vpop.permute.xlu1 %1585  ;;  %v4568_v62 = vpop.permute.xlu0 %1590 }
 0x429   :  { %v4593_v37 = vmax.f32 %v1425_v17, 0.0  ;;  %v1597_v55 = vmul.f32 %v1586_v10, %v1565_v34  ;;  %v1598_v57 = vmul.f32 %v1586_v10, %v1566_v13  ;;  %v4608_v41 = vmax.f32 %v1426_v61, 0.0 }
 0x42a   :  { %v4632_v10 = vrot.slane %v1665_v8, %v3697_v31 }
 0x42b   :  { %1735 = vrot.lane.b32.xlu0 %v4442_v50, %s3435_s27  ;;  %1643 = vrot.lane.b32.xlu1 %v4474_v56, %s3434_s22  ;;  %5952 = vst [vmem:[#allocation7_spill] sm:$0xff] %v4593_v37  ;;  %5953 = vst [vmem:[#allocation8_spill] sm:$0xff] %v4608_v41  ;;  %v1605_v22 = vadd.f32 %v1597_v55, %v4308_v40  ;;  %v1606_v49 = vadd.f32 %v1598_v57, %v4308_v40 }
 0x42c   :  { %v1395_v28 = vpop.permute.xlu1 %1394 }
 0x42d   :  { %v1403_v16 = vmul.f32 %v1395_v28, %v1371_v47  ;;  %v4624_v2 = vmax.f32 %v1605_v22, 0.0  ;;  %v1404_v6 = vmul.f32 %v1395_v28, %v1372_v39  ;;  %v1599_v28 = vmul.f32 %v4568_v62, %v1567_v53 }
 0x42e   :  { %v4653_v17 = vmax.f32 %v1606_v49, 0.0 }
 0x42f   :  { %1743 = vrot.lane.b32.xlu0 %v4449_v43, %s3435_s27  ;;  %1721 = vrot.lane.b32.xlu1 %v4452_v33, %s3435_s27  ;;  %5954 = vst [vmem:[#allocation9_spill] sm:$0xff] %v4624_v2  ;;  %v1427_v36 = vadd.f32 %v4310_v54, %v1403_v16 }
 0x430   :  { %5955 = vst [vmem:[#allocation10_spill] sm:$0xff] %v4653_v17 }
 0x431   :  { %v4656_v34 = vmax.f32 %v1427_v36, 0.0 }
 0x433   :  { %1821 = vrot.lane.b32.xlu0 %v4424_v30, %s3436_s28  ;;  %1729 = vrot.lane.b32.xlu1 %v4460_v46, %s3435_s27  ;;  %5956 = vst [vmem:[#allocation11_spill] sm:$0xff] %v4656_v34 }
 0x437   :  { %1829 = vrot.lane.b32.xlu0 %v4426_v45, %s3436_s28  ;;  %1737 = vrot.lane.b32.xlu1 %v4468_v48, %s3435_s27 }
 0x43b   :  { %1837 = vrot.lane.b32.xlu0 %v4442_v50, %s3436_s28  ;;  %1745 = vrot.lane.b32.xlu1 %v4474_v56, %s3435_s27 }
 0x43f   :  { %1845 = vrot.lane.b32.xlu0 %v4449_v43, %s3436_s28  ;;  %1823 = vrot.lane.b32.xlu1 %v4452_v33, %s3436_s28 }
 0x443   :  { %1923 = vrot.lane.b32.xlu0 %v4424_v30, %s3437_s29  ;;  %1831 = vrot.lane.b32.xlu1 %v4460_v46, %s3436_s28 }
 0x447   :  { %1931 = vrot.lane.b32.xlu0 %v4426_v45, %s3437_s29  ;;  %1839 = vrot.lane.b32.xlu1 %v4468_v48, %s3436_s28 }
 0x44b   :  { %1939 = vrot.lane.b32.xlu0 %v4442_v50, %s3437_s29  ;;  %1847 = vrot.lane.b32.xlu1 %v4474_v56, %s3436_s28 }
 0x44f   :  { %1947 = vrot.lane.b32.xlu0 %v4449_v43, %s3437_s29  ;;  %1925 = vrot.lane.b32.xlu1 %v4452_v33, %s3437_s29 }
 0x453   :  { %2041 = vrot.lane.b32.xlu0 %v4424_v30, %s3438_s7  ;;  %1933 = vrot.lane.b32.xlu1 %v4460_v46, %s3437_s29 }
 0x457   :  { %2049 = vrot.lane.b32.xlu0 %v4426_v45, %s3438_s7  ;;  %1941 = vrot.lane.b32.xlu1 %v4468_v48, %s3437_s29 }
 0x45b   :  { %2057 = vrot.lane.b32.xlu0 %v4442_v50, %s3438_s7  ;;  %1949 = vrot.lane.b32.xlu1 %v4474_v56, %s3437_s29 }
 0x45f   :  { %2065 = vrot.lane.b32.xlu0 %v4449_v43, %s3438_s7  ;;  %2043 = vrot.lane.b32.xlu1 %v4452_v33, %s3438_s7 }
 0x463   :  { %2143 = vrot.lane.b32.xlu0 %v4424_v30, %s3439_s10  ;;  %2051 = vrot.lane.b32.xlu1 %v4460_v46, %s3438_s7 }
 0x467   :  { %2151 = vrot.lane.b32.xlu0 %v4426_v45, %s3439_s10  ;;  %2059 = vrot.lane.b32.xlu1 %v4468_v48, %s3438_s7 }
 0x46b   :  { %2159 = vrot.lane.b32.xlu0 %v4442_v50, %s3439_s10  ;;  %2067 = vrot.lane.b32.xlu1 %v4474_v56, %s3438_s7 }
 0x46f   :  { %2167 = vrot.lane.b32.xlu0 %v4449_v43, %s3439_s10  ;;  %2145 = vrot.lane.b32.xlu1 %v4452_v33, %s3439_s10 }
 0x473   :  { %2245 = vrot.lane.b32.xlu0 %v4424_v30, %s3440_s13  ;;  %2153 = vrot.lane.b32.xlu1 %v4460_v46, %s3439_s10 }
 0x477   :  { %2253 = vrot.lane.b32.xlu0 %v4426_v45, %s3440_s13  ;;  %2161 = vrot.lane.b32.xlu1 %v4468_v48, %s3439_s10 }
 0x47a   :  { %v1626_v14 = vpop.permute.xlu0 %1625  ;;  %v1618_v35 = vpop.permute.xlu1 %1617 }
 0x47b   :  { %2261 = vrot.lane.b32.xlu0 %v4442_v50, %s3440_s13  ;;  %2169 = vrot.lane.b32.xlu1 %v4474_v56, %s3439_s10  ;;  %v1657_v59 = vsel %vm75_vm0, %v1618_v35, %v1626_v14 }
 0x47c   :  { %v1688_v38 = vmul.f32 %v4600_v52, %v1657_v59 }
 0x47f   :  { %2269 = vrot.lane.b32.xlu0 %v4449_v43, %s3440_s13  ;;  %2247 = vrot.lane.b32.xlu1 %v4452_v33, %s3440_s13 }
 0x483   :  { %2347 = vrot.lane.b32.xlu0 %v4424_v30, %s3441_s18  ;;  %2255 = vrot.lane.b32.xlu1 %v4460_v46, %s3440_s13 }
 0x487   :  { %2355 = vrot.lane.b32.xlu0 %v4426_v45, %s3441_s18  ;;  %2263 = vrot.lane.b32.xlu1 %v4468_v48, %s3440_s13 }
 0x48b   :  { %2363 = vrot.lane.b32.xlu0 %v4442_v50, %s3441_s18  ;;  %2271 = vrot.lane.b32.xlu1 %v4474_v56, %s3440_s13 }
 0x48d   :  { %v1634_v23 = vpop.permute.xlu0 %1633 }
 0x48e   :  { %v1653_v61 = vsel %vm75_vm0, %v1626_v14, %v1634_v23  ;;  %v1600_v14 = vmul.f32 %v4568_v62, %v1568_v20 }
 0x48f   :  { %2371 = vrot.lane.b32.xlu0 %v4449_v43, %s3441_s18  ;;  %2349 = vrot.lane.b32.xlu1 %v4452_v33, %s3441_s18 }
 0x490   :  { %v1608_v62 = vadd.f32 %v1600_v14, %v4310_v54 }
 0x491   :  { %v1642_v4 = vpop.permute.xlu0 %1641  ;;  %v1620_v51 = vpop.permute.xlu1 %1619 }
 0x492   :  { %v1649_v40 = vsel %vm75_vm0, %v1634_v23, %v1642_v4  ;;  %v1661_v26 = vsel %vm75_vm0, %v1642_v4, %v1618_v35  ;;  %v1428_v35 = vadd.f32 %v4310_v54, %v1404_v6  ;;  %v1607_v23 = vadd.f32 %v1599_v28, %v4310_v54 }
 0x493   :  { %1621 = vrot.lane.b32.xlu0 %v4593_v37, %s3434_s22  ;;  %2357 = vrot.lane.b32.xlu1 %v4460_v46, %s3441_s18  ;;  %v1687_v25 = vmul.f32 %v4632_v10, %v1661_v26  ;;  %v1690_v8 = vmul.f32 %v4635_v12, %v1649_v40  ;;  %v4699_v36 = vmax.f32 %v1608_v62, 0.0 }
 0x494   :  { %v4677_v22 = vmax.f32 %v1428_v35, 0.0 }
 0x495   :  { %v4611_v5 = vpop.permute.xlu0 %1719  ;;  %v1628_v58 = vpop.permute.xlu1 %1627  ;;  %5959 = vst [vmem:[#allocation14_spill] sm:$0xff] %v4699_v36 }
 0x496   :  { %v1658_v0 = vsel %vm75_vm0, %v1620_v51, %v1628_v58  ;;  %5957 = vst [vmem:[#allocation12_spill] sm:$0xff] %v4677_v22 }
 0x497   :  { %v1692_v44 = vmul.f32 %v4600_v52, %v1658_v0  ;;  %1629 = vrot.lane.b32.xlu0 %v4608_v41, %s3434_s22  ;;  %2365 = vrot.lane.b32.xlu1 %v4468_v48, %s3441_s18 }
 0x499   :  { %v4627_v1 = vpop.permute.xlu0 %1727  ;;  %v1636_v63 = vpop.permute.xlu1 %1635  ;;  %v1704_v9 = vpack.c.bf16 %v1692_v44, %v1688_v38  ;;  %v4689_v44 = vmax.f32 %v1607_v23, 0.0 }
 0x49a   :  { %v1654_v15 = vsel %vm75_vm0, %v1628_v58, %v1636_v63 }
 0x49b   :  { %2373 = vrot.lane.b32.xlu1 %v4474_v56, %s3441_s18  ;;  %1637 = vrot.lane.b32.xlu0 %v4624_v2, %s3434_s22  ;;  %v1693_v47 = vmul.f32 %v4649_v29, %v1654_v15  ;;  %5958 = vst [vmem:[#allocation13_spill] sm:$0xff] %v4689_v44 }
 0x49c   :  { %2581 = vmatprep.subr.bf16.mxu0 %v1704_v9 }
 0x49d   :  { %v4660_v55 = vpop.permute.xlu0 %1735  ;;  %v1644_v21 = vpop.permute.xlu1 %1643 }
 0x49e   :  { %v1650_v4 = vsel %vm75_vm0, %v1636_v63, %v1644_v21  ;;  %v1662_v13 = vsel %vm75_vm0, %v1644_v21, %v1620_v51  ;;  %v1689_v51 = vmul.f32 %v4649_v29, %v1653_v61 }
 0x49f   :  { %v1691_v57 = vmul.f32 %v4632_v10, %v1662_v13  ;;  %v1694_v59 = vmul.f32 %v4635_v12, %v1650_v4  ;;  %1645 = vrot.lane.b32.xlu0 %v4653_v17, %s3434_s22  ;;  %1623 = vrot.lane.b32.xlu1 %v4656_v34, %s3434_s22 }
 0x4a0   :  { %v1705_v38 = vpack.c.bf16 %v1693_v47, %v1689_v51 }
 0x4a1   :  { %v1703_v16 = vpack.c.bf16 %v1691_v57, %v1687_v25  ;;  %v4680_v58 = vpop.permute.xlu0 %1743  ;;  %v4682_v0 = vpop.permute.xlu1 %1721  ;;  %v1706_v39 = vpack.c.bf16 %v1694_v59, %v1690_v8 }
 0x4a3   :  { %1723 = vrot.lane.b32.xlu0 %v4593_v37, %s3435_s27  ;;  %1631 = vrot.lane.b32.xlu1 %v4677_v22, %s3434_s22 }
 0x4a4   :  { %2582 = vmatpush1.bf16.msra.mxu0 %v1703_v16  ;;  %2687 = vmatprep.subr.bf16.mxu1 %v1706_v39 }
 0x4a5   :  { %2688 = vmatpush1.bf16.msra.mxu1 %v1705_v38  ;;  %v4691_v49 = vpop.permute.xlu0 %1821  ;;  %v4693_v6 = vpop.permute.xlu1 %1729 }
 0x4a7   :  { %1731 = vrot.lane.b32.xlu0 %v4608_v41, %s3435_s27  ;;  %1639 = vrot.lane.b32.xlu1 %v4689_v44, %s3434_s22 }
 0x4a9   :  { %v4701_v63 = vpop.permute.xlu0 %1829  ;;  %v4703_v9 = vpop.permute.xlu1 %1737 }
 0x4ab   :  { %1739 = vrot.lane.b32.xlu0 %v4624_v2, %s3435_s27  ;;  %1647 = vrot.lane.b32.xlu1 %v4699_v36, %s3434_s22 }
 0x4ad   :  { %v4709_v54 = vpop.permute.xlu0 %1837  ;;  %v4711_v53 = vpop.permute.xlu1 %1745 }
 0x4af   :  { %1747 = vrot.lane.b32.xlu0 %v4653_v17, %s3435_s27  ;;  %1725 = vrot.lane.b32.xlu1 %v4656_v34, %s3435_s27 }
 0x4b1   :  { %v4717_v40 = vpop.permute.xlu0 %1845  ;;  %v4719_v26 = vpop.permute.xlu1 %1823 }
 0x4b3   :  { %1825 = vrot.lane.b32.xlu0 %v4593_v37, %s3436_s28  ;;  %1733 = vrot.lane.b32.xlu1 %v4677_v22, %s3435_s27 }
 0x4b5   :  { %v4725_v20 = vpop.permute.xlu0 %1923  ;;  %v4727_v28 = vpop.permute.xlu1 %1831 }
 0x4b7   :  { %1833 = vrot.lane.b32.xlu0 %v4608_v41, %s3436_s28  ;;  %1741 = vrot.lane.b32.xlu1 %v4689_v44, %s3435_s27 }
 0x4b9   :  { %v4733_v15 = vpop.permute.xlu0 %1931  ;;  %v4735_v35 = vpop.permute.xlu1 %1839 }
 0x4bb   :  { %1841 = vrot.lane.b32.xlu0 %v4624_v2, %s3436_s28  ;;  %1749 = vrot.lane.b32.xlu1 %v4699_v36, %s3435_s27  ;;  %s3447_s27 = smov 125  }
 0x4bd   :  { %v4741_v61 = vpop.permute.xlu0 %1939  ;;  %v4743_v21 = vpop.permute.xlu1 %1847 }
 0x4bf   :  { %1849 = vrot.lane.b32.xlu0 %v4653_v17, %s3436_s28  ;;  %1827 = vrot.lane.b32.xlu1 %v4656_v34, %s3436_s28 }
 0x4c1   :  { %v4749_v25 = vpop.permute.xlu0 %1947  ;;  %v4751_v8 = vpop.permute.xlu1 %1925 }
 0x4c3   :  { %1927 = vrot.lane.b32.xlu0 %v4593_v37, %s3437_s29  ;;  %1835 = vrot.lane.b32.xlu1 %v4677_v22, %s3436_s28 }
 0x4c5   :  { %v4757_v4 = vpop.permute.xlu0 %2041  ;;  %v4759_v13 = vpop.permute.xlu1 %1933 }
 0x4c6   :  { %5960 = vst [vmem:[#allocation15_spill] sm:$0xff] %v4757_v4 }
 0x4c7   :  { %1935 = vrot.lane.b32.xlu0 %v4608_v41, %s3437_s29  ;;  %1843 = vrot.lane.b32.xlu1 %v4689_v44, %s3436_s28 }
 0x4c9   :  { %v4765_v47 = vpop.permute.xlu0 %2049  ;;  %v4767_v57 = vpop.permute.xlu1 %1941 }
 0x4ca   :  { %5961 = vst [vmem:[#allocation16_spill] sm:$0xff] %v4765_v47 }
 0x4cb   :  { %1943 = vrot.lane.b32.xlu0 %v4624_v2, %s3437_s29  ;;  %1851 = vrot.lane.b32.xlu1 %v4699_v36, %s3436_s28 }
 0x4cd   :  { %v4773_v59 = vpop.permute.xlu0 %2057  ;;  %v4775_v14 = vpop.permute.xlu1 %1949 }
 0x4ce   :  { %5962 = vst [vmem:[#allocation17_spill] sm:$0xff] %v4773_v59 }
 0x4cf   :  { %1951 = vrot.lane.b32.xlu0 %v4653_v17, %s3437_s29  ;;  %1929 = vrot.lane.b32.xlu1 %v4656_v34, %s3437_s29 }
 0x4d1   :  { %v4781_v23 = vpop.permute.xlu0 %2065  ;;  %v4783_v51 = vpop.permute.xlu1 %2043 }
 0x4d2   :  { %5963 = vst [vmem:[#allocation18_spill] sm:$0xff] %v4781_v23  ;;  %5964 = vst [vmem:[#allocation19_spill] sm:$0xff] %v4783_v51 }
 0x4d3   :  { %2045 = vrot.lane.b32.xlu0 %v4593_v37, %s3438_s7  ;;  %1937 = vrot.lane.b32.xlu1 %v4677_v22, %s3437_s29 }
 0x4d5   :  { %v4789_v16 = vpop.permute.xlu0 %2143  ;;  %v4791_v39 = vpop.permute.xlu1 %2051 }
 0x4d6   :  { %5965 = vst [vmem:[#allocation20_spill] sm:$0xff] %v4789_v16  ;;  %5966 = vst [vmem:[#allocation21_spill] sm:$0xff] %v4791_v39 }
 0x4d7   :  { %2053 = vrot.lane.b32.xlu0 %v4608_v41, %s3438_s7  ;;  %1945 = vrot.lane.b32.xlu1 %v4689_v44, %s3437_s29 }
 0x4d9   :  { %v4797_v38 = vpop.permute.xlu0 %2151  ;;  %v4799_v62 = vpop.permute.xlu1 %2059 }
 0x4da   :  { %5967 = vst [vmem:[#allocation22_spill] sm:$0xff] %v4797_v38  ;;  %5968 = vst [vmem:[#allocation23_spill] sm:$0xff] %v4799_v62 }
 0x4db   :  { %2061 = vrot.lane.b32.xlu0 %v4624_v2, %s3438_s7  ;;  %1953 = vrot.lane.b32.xlu1 %v4699_v36, %s3437_s29 }
 0x4dd   :  { %v4805_v24 = vpop.permute.xlu0 %2159  ;;  %v4807_v11 = vpop.permute.xlu1 %2067 }
 0x4de   :  { %5969 = vst [vmem:[#allocation24_spill] sm:$0xff] %v4805_v24  ;;  %5970 = vst [vmem:[#allocation25_spill] sm:$0xff] %v4807_v11 }
 0x4df   :  { %2069 = vrot.lane.b32.xlu0 %v4653_v17, %s3438_s7  ;;  %2047 = vrot.lane.b32.xlu1 %v4656_v34, %s3438_s7 }
 0x4e1   :  { %v4813_v16 = vpop.permute.xlu0 %2167  ;;  %v4815_v38 = vpop.permute.xlu1 %2145 }
 0x4e2   :  { %5971 = vst [vmem:[#allocation26_spill] sm:$0xff] %v4813_v16  ;;  %5972 = vst [vmem:[#allocation27_spill] sm:$0xff] %v4815_v38 }
 0x4e3   :  { %2147 = vrot.lane.b32.xlu0 %v4593_v37, %s3439_s10  ;;  %2055 = vrot.lane.b32.xlu1 %v4677_v22, %s3438_s7 }
 0x4e5   :  { %v4821_v23 = vpop.permute.xlu0 %2245  ;;  %v4823_v24 = vpop.permute.xlu1 %2153 }
 0x4e6   :  { %5973 = vst [vmem:[#allocation28_spill] sm:$0xff] %v4821_v23  ;;  %5974 = vst [vmem:[#allocation29_spill] sm:$0xff] %v4823_v24 }
 0x4e7   :  { %2155 = vrot.lane.b32.xlu0 %v4608_v41, %s3439_s10  ;;  %2063 = vrot.lane.b32.xlu1 %v4689_v44, %s3438_s7 }
 0x4e9   :  { %v4829_v59 = vpop.permute.xlu0 %2253  ;;  %v4831_v16 = vpop.permute.xlu1 %2161 }
 0x4ea   :  { %5975 = vst [vmem:[#allocation30_spill] sm:$0xff] %v4829_v59  ;;  %5976 = vst [vmem:[#allocation31_spill] sm:$0xff] %v4831_v16 }
 0x4eb   :  { %2163 = vrot.lane.b32.xlu0 %v4624_v2, %s3439_s10  ;;  %2071 = vrot.lane.b32.xlu1 %v4699_v36, %s3438_s7 }
 0x4ed   :  { %v4837_v38 = vpop.permute.xlu0 %2261  ;;  %v4839_v23 = vpop.permute.xlu1 %2169 }
 0x4ee   :  { %5977 = vst [vmem:[#allocation32_spill] sm:$0xff] %v4837_v38  ;;  %5978 = vst [vmem:[#allocation33_spill] sm:$0xff] %v4839_v23 }
 0x4ef   :  { %2171 = vrot.lane.b32.xlu0 %v4653_v17, %s3439_s10  ;;  %2149 = vrot.lane.b32.xlu1 %v4656_v34, %s3439_s10 }
 0x4f1   :  { %v4845_v24 = vpop.permute.xlu0 %2269  ;;  %v4847_v59 = vpop.permute.xlu1 %2247 }
 0x4f2   :  { %5979 = vst [vmem:[#allocation34_spill] sm:$0xff] %v4845_v24  ;;  %5980 = vst [vmem:[#allocation35_spill] sm:$0xff] %v4847_v59 }
 0x4f3   :  { %2249 = vrot.lane.b32.xlu0 %v4593_v37, %s3440_s13  ;;  %2157 = vrot.lane.b32.xlu1 %v4677_v22, %s3439_s10 }
 0x4f5   :  { %v4853_v16 = vpop.permute.xlu0 %2347  ;;  %v4855_v38 = vpop.permute.xlu1 %2255 }
 0x4f6   :  { %5981 = vst [vmem:[#allocation36_spill] sm:$0xff] %v4853_v16  ;;  %5982 = vst [vmem:[#allocation37_spill] sm:$0xff] %v4855_v38 }
 0x4f7   :  { %2257 = vrot.lane.b32.xlu0 %v4608_v41, %s3440_s13  ;;  %2165 = vrot.lane.b32.xlu1 %v4689_v44, %s3439_s10 }
 0x4f9   :  { %v4861_v23 = vpop.permute.xlu0 %2355  ;;  %v4863_v24 = vpop.permute.xlu1 %2263 }
 0x4fa   :  { %5983 = vst [vmem:[#allocation38_spill] sm:$0xff] %v4861_v23  ;;  %5984 = vst [vmem:[#allocation39_spill] sm:$0xff] %v4863_v24  ;;  %v3372_v24 = vld [vmem:[%s5896_s2 + $0x4] ss:$12 sps:$4 sm:$0xff]  }
 0x4fb   :  { %2265 = vrot.lane.b32.xlu0 %v4624_v2, %s3440_s13  ;;  %2173 = vrot.lane.b32.xlu1 %v4699_v36, %s3439_s10 }
 0x4fc   :  { %2613 = vmatprep.mubr.bf16.mxu0 %v3372_v24  ;;  %2719 = vmatprep.mubr.bf16.mxu1 %v3372_v24 }
 0x4fd   :  { %v4869_v59 = vpop.permute.xlu0 %2363  ;;  %v4871_v16 = vpop.permute.xlu1 %2271 }
 0x4fe   :  { %5985 = vst [vmem:[#allocation40_spill] sm:$0xff] %v4869_v59  ;;  %5986 = vst [vmem:[#allocation41_spill] sm:$0xff] %v4871_v16 }
 0x4ff   :  { %2273 = vrot.lane.b32.xlu0 %v4653_v17, %s3440_s13  ;;  %2251 = vrot.lane.b32.xlu1 %v4656_v34, %s3440_s13 }
 0x501   :  { %v4877_v38 = vpop.permute.xlu0 %2371  ;;  %v4879_v23 = vpop.permute.xlu1 %2349 }
 0x502   :  { %5987 = vst [vmem:[#allocation42_spill] sm:$0xff] %v4877_v38  ;;  %5988 = vst [vmem:[#allocation43_spill] sm:$0xff] %v4879_v23 }
 0x503   :  { %2351 = vrot.lane.b32.xlu0 %v4593_v37, %s3441_s18  ;;  %2259 = vrot.lane.b32.xlu1 %v4677_v22, %s3440_s13 }
 0x505   :  { %v1622_v59 = vpop.permute.xlu0 %1621  ;;  %v4888_v16 = vpop.permute.xlu1 %2357 }
 0x506   :  { %5989 = vst [vmem:[#allocation44_spill] sm:$0xff] %v4888_v16 }
 0x507   :  { %2359 = vrot.lane.b32.xlu0 %v4608_v41, %s3441_s18  ;;  %2267 = vrot.lane.b32.xlu1 %v4689_v44, %s3440_s13  ;;  %v1760_v41 = vsel %vm178_vm1, %v4682_v0, %v4693_v6 }
 0x509   :  { %v1630_v38 = vpop.permute.xlu0 %1629  ;;  %v4894_v23 = vpop.permute.xlu1 %2365 }
 0x50a   :  { %5990 = vst [vmem:[#allocation45_spill] sm:$0xff] %v4894_v23  ;;  %v3250_v23 = vld [vmem:[%s5893_s4 + $0x1] ss:$8 sm:$0xf]  ;;  %v1659_v47 = vsel %vm75_vm0, %v1622_v59, %v1630_v38 }
 0x50b   :  { %2367 = vrot.lane.b32.xlu0 %v4624_v2, %s3441_s18  ;;  %2275 = vrot.lane.b32.xlu1 %v4699_v36, %s3440_s13  ;;  %v1696_v51 = vmul.f32 %v4600_v52, %v1659_v47  ;;  %v4935_v47 = vrot.slane %v3250_v23, %v3689_v27 }
 0x50d   :  { %v1638_v37 = vpop.permute.xlu0 %1637  ;;  %v4900_v24 = vpop.permute.xlu1 %2373 }
 0x50e   :  { %5991 = vst [vmem:[#allocation46_spill] sm:$0xff] %v4900_v24 }
 0x50f   :  { %2375 = vrot.lane.b32.xlu0 %v4653_v17, %s3441_s18  ;;  %2353 = vrot.lane.b32.xlu1 %v4656_v34, %s3441_s18  ;;  %v4918_v34 = vrot.slane %v3250_v23, %v3676_v19 }
 0x511   :  { %v1646_v16 = vpop.permute.xlu0 %1645  ;;  %v1624_v4 = vpop.permute.xlu1 %1623 }
 0x512   :  { %v1663_v56 = vsel %vm75_vm0, %v1646_v16, %v1622_v59  ;;  %v1651_v59 = vsel %vm75_vm0, %v1638_v37, %v1646_v16 }
 0x513   :  { %2361 = vrot.lane.b32.xlu1 %v4677_v22, %s3441_s18  ;;  %v1759_v22 = vsel %vm178_vm1, %v4611_v5, %v4627_v1  ;;  %v1695_v16 = vmul.f32 %v4632_v10, %v1663_v56 }
 0x514   :  { %v1790_v50 = vmul.f32 %v4918_v34, %v1759_v22  ;;  %v1751_v22 = vsel %vm178_vm1, %v4660_v55, %v4680_v58 }
 0x515   :  { %v4913_v11 = vpop.permute.xlu0 %1723  ;;  %v1632_v24 = vpop.permute.xlu1 %1631 }
 0x516   :  { %v1660_v62 = vsel %vm75_vm0, %v1624_v4, %v1632_v24 }
 0x517   :  { %v1700_v39 = vmul.f32 %v4600_v52, %v1660_v62  ;;  %2369 = vrot.lane.b32.xlu1 %v4689_v44, %s3441_s18  ;;  %v4938_v52 = vrot.slane %v3250_v23, %v3697_v31  ;;  %v4941_v62 = vrot.slane %v3250_v23, %v3699_v32  ;;  %v1752_v44 = vsel %vm178_vm1, %v4703_v9, %v4711_v53 }
 0x518   :  { %v1755_v23 = vsel %vm178_vm1, %v4627_v1, %v4660_v55  ;;  %v1764_v1 = vsel %vm178_vm1, %v4711_v53, %v4682_v0  ;;  %v1655_v55 = vsel %vm75_vm0, %v1630_v38, %v1638_v37  ;;  %v1698_v0 = vmul.f32 %v4635_v12, %v1651_v59 }
 0x519   :  { %v4932_v2 = vpop.permute.xlu0 %1731  ;;  %v1640_v17 = vpop.permute.xlu1 %1639  ;;  %v1708_v48 = vpack.c.bf16 %v1700_v39, %v1696_v51  ;;  %v1794_v39 = vmul.f32 %v4918_v34, %v1760_v41  ;;  %v1763_v37 = vsel %vm178_vm1, %v4680_v58, %v4611_v5  ;;  %v1792_v56 = vmul.f32 %v4941_v62, %v1751_v22 }
 0x51a   :  { %v1656_v51 = vsel %vm75_vm0, %v1632_v24, %v1640_v17  ;;  %v1796_v24 = vmul.f32 %v4941_v62, %v1752_v44  ;;  %v1697_v38 = vmul.f32 %v4649_v29, %v1655_v55  ;;  %v1789_v22 = vmul.f32 %v4938_v52, %v1763_v37 }
 0x51b   :  { %2377 = vrot.lane.b32.xlu1 %v4699_v36, %s3441_s18  ;;  %2583 = vmatprep.subr.bf16.mxu0 %v1708_v48  ;;  %v1756_v48 = vsel %vm178_vm1, %v4693_v6, %v4703_v9  ;;  %v1701_v43 = vmul.f32 %v4649_v29, %v1656_v51  ;;  %v3445_v51 = vmov 3   ;;  %v1806_v58 = vpack.c.bf16 %v1794_v39, %v1790_v50 }
 0x51c   :  { %3353 = vset.pattern.permute.xlu0 %v3445_v51  ;;  %3354 = vset.pattern.permute.xlu1 %v3445_v51  ;;  %v1808_v29 = vpack.c.bf16 %v1796_v24, %v1792_v56  ;;  %v1791_v55 = vmul.f32 %v4935_v47, %v1755_v23  ;;  %v3251_v23 = vld [vmem:[%s5893_s4 + $0x2] ss:$8 sm:$0xf]  ;;  %v1854_v37 = vsel %vm282_vm2, %v4735_v35, %v4743_v21 }
 0x51d   :  { %v4976_v36 = vpop.permute.xlu0 %1739  ;;  %v1648_v41 = vpop.permute.xlu1 %1647  ;;  %2530 = vperm.xlu0 %3353, %v4389_v42   ;;  %v1709_v5 = vpack.c.bf16 %v1701_v43, %v1697_v38  ;;  %v1861_v38 = vsel %vm282_vm2, %v4691_v49, %v4701_v63  ;;  %v1853_v51 = vsel %vm282_vm2, %v4709_v54, %v4717_v40 }
 0x51e   :  { %v1652_v6 = vsel %vm75_vm0, %v1640_v17, %v1648_v41  ;;  %v1664_v9 = vsel %vm75_vm0, %v1648_v41, %v1624_v4  ;;  %v1793_v17 = vmul.f32 %v4938_v52, %v1764_v1  ;;  %v1761_v1 = vsel %vm178_vm1, %v4913_v11, %v4932_v2 }
 0x51f   :  { %v1699_v44 = vmul.f32 %v4632_v10, %v1664_v9  ;;  %v1702_v53 = vmul.f32 %v4635_v12, %v1652_v6  ;;  %2534 = vperm.xlu1 %3354, %v4396_v3   ;;  %v1795_v12 = vmul.f32 %v4935_v47, %v1756_v48  ;;  %v1798_v48 = vmul.f32 %v4918_v34, %v1761_v1 }
 0x520   :  { %v1805_v42 = vpack.c.bf16 %v1793_v17, %v1789_v22  ;;  %v5992_v9 = vmov 0   ;;  %v1857_v1 = vsel %vm282_vm2, %v4701_v63, %v4709_v54 }
 0x521   :  { %v1707_v4 = vpack.c.bf16 %v1699_v44, %v1695_v16  ;;  %v1748_v59 = vpop.permute.xlu0 %1747  ;;  %v1726_v41 = vpop.permute.xlu1 %1725  ;;  %v1710_v10 = vpack.c.bf16 %v1702_v53, %v1698_v0  ;;  %v1807_v50 = vpack.c.bf16 %v1795_v12, %v1791_v55  ;;  %2542 = vperm.xlu0 %3353, %v4409_v7   ;;  %v1878_v0 = vrot.slane %v3251_v23, %v3676_v19 }
 0x522   :  { %v5019_v7 = vrot.slane %v3251_v23, %v3689_v27  ;;  %v1862_v44 = vsel %vm282_vm2, %v4719_v26, %v4727_v28  ;;  %v5029_v53 = vrot.slane %v3251_v23, %v3699_v32  ;;  %v1753_v17 = vsel %vm178_vm1, %v4976_v36, %v1748_v59 }
 0x523   :  { %2584 = vmatpush1.bf16.msra.mxu0 %v1707_v4  ;;  %2689 = vmatprep.subr.bf16.mxu1 %v1710_v10  ;;  %v1765_v4 = vsel %vm178_vm1, %v1748_v59, %v4913_v11  ;;  %v1896_v10 = vmul.f32 %v1878_v0, %v1862_v44  ;;  %v1858_v12 = vsel %vm282_vm2, %v4727_v28, %v4735_v35 }
 0x524   :  { %2585 = vmatprep.subr.bf16.mxu0 %v1806_v58  ;;  %2690 = vmatpush1.bf16.msra.mxu1 %v1709_v5  ;;  %v1866_v5 = vsel %vm282_vm2, %v4743_v21, %v4719_v26  ;;  %v1757_v58 = vsel %vm178_vm1, %v4932_v2, %v4976_v36  ;;  %v1898_v11 = vmul.f32 %v5029_v53, %v1854_v37 }
 0x525   :  { %v5003_v3 = vpop.permute.xlu0 %1825  ;;  %2691 = vmatprep.subr.bf16.mxu1 %v1808_v29  ;;  %v1734_v43 = vpop.permute.xlu1 %1733  ;;  %2538 = vperm.xlu1 %3354, %v4403_v60   ;;  %v1797_v35 = vmul.f32 %v4938_v52, %v1765_v4  ;;  %v1800_v26 = vmul.f32 %v4941_v62, %v1753_v17  ;;  %v1892_v36 = vmul.f32 %v1878_v0, %v1861_v38  ;;  %v3252_v38 = vld [vmem:[%s5893_s4 + $0x3] ss:$8 sm:$0xf] }
 0x526   :  { %v1762_v39 = vsel %vm178_vm1, %v1726_v41, %v1734_v43 }
 0x527   :  { %v1802_v24 = vmul.f32 %v4918_v34, %v1762_v39  ;;  %2586 = vmatpush1.bf16.msra.mxu0 %v1805_v42  ;;  %v5026_v34 = vrot.slane %v3251_v23, %v3697_v31  ;;  %v1865_v42 = vsel %vm282_vm2, %v4717_v40, %v4691_v49  ;;  %v1893_v49 = vmul.f32 %v5019_v7, %v1857_v1 }
 0x528   :  { %2692 = vmatpush1.bf16.msra.mxu1 %v1807_v50  ;;  %v1968_v1 = vsel %vm386_vm3, %v4775_v14, %v4751_v8 }
 0x529   :  { %v5014_v16 = vpop.permute.xlu0 %1833  ;;  %v1742_v6 = vpop.permute.xlu1 %1741  ;;  %v1810_v60 = vpack.c.bf16 %v1802_v24, %v1798_v48  ;;  %3355 = vset.pattern.permute.xlu1 %v5992_v9  ;;  %v1895_v50 = vmul.f32 %v5026_v34, %v1866_v5  ;;  %v1897_v48 = vmul.f32 %v5019_v7, %v1858_v12  ;;  %v1891_v63 = vmul.f32 %v5026_v34, %v1865_v42 }
 0x52a   :  { %v1758_v56 = vsel %vm178_vm1, %v1734_v43, %v1742_v6  ;;  %v1894_v43 = vmul.f32 %v5029_v53, %v1853_v51  ;;  %v1863_v40 = vsel %vm282_vm2, %v5003_v3, %v5014_v16  ;;  %v1980_v5 = vrot.slane %v3252_v38, %v3676_v19 }
 0x52b   :  { %2587 = vmatprep.subr.bf16.mxu0 %v1810_v60  ;;  %v1803_v59 = vmul.f32 %v4935_v47, %v1758_v56  ;;  %v1909_v37 = vpack.c.bf16 %v1897_v48, %v1893_v49  ;;  %v1900_v51 = vmul.f32 %v1878_v0, %v1863_v40 }
 0x52c   :  { %v1910_v54 = vpack.c.bf16 %v1898_v11, %v1894_v43  ;;  %v5109_v11 = vrot.slane %v3252_v38, %v3697_v31 }
 0x52d   :  { %v1842_v22 = vpop.permute.xlu0 %1841  ;;  %v1750_v29 = vpop.permute.xlu1 %1749 }
 0x52e   :  { %v1754_v55 = vsel %vm178_vm1, %v1742_v6, %v1750_v29  ;;  %v1766_v28 = vsel %vm178_vm1, %v1750_v29, %v1726_v41  ;;  %v1799_v41 = vmul.f32 %v4935_v47, %v1757_v58  ;;  %v1908_v6 = vpack.c.bf16 %v1896_v10, %v1892_v36 }
 0x52f   :  { %v1801_v21 = vmul.f32 %v4938_v52, %v1766_v28  ;;  %v1804_v2 = vmul.f32 %v4941_v62, %v1754_v55  ;;  %v1907_v47 = vpack.c.bf16 %v1895_v50, %v1891_v63  ;;  %v5102_v58 = vrot.slane %v3252_v38, %v3689_v27 }
 0x530   :  { %v1811_v24 = vpack.c.bf16 %v1803_v59, %v1799_v41  ;;  %v1964_v29 = vsel %vm386_vm3, %v4751_v8, %v4759_v13  ;;  %v1956_v59 = vsel %vm386_vm3, %v4767_v57, %v4775_v14  ;;  %v1963_v28 = vsel %vm386_vm3, %v4725_v20, %v4733_v15 }
 0x531   :  { %v1809_v52 = vpack.c.bf16 %v1801_v21, %v1797_v35  ;;  %v1850_v39 = vpop.permute.xlu0 %1849  ;;  %v1828_v62 = vpop.permute.xlu1 %1827  ;;  %v1812_v23 = vpack.c.bf16 %v1804_v2, %v1800_v26  ;;  %v1955_v35 = vsel %vm386_vm3, %v4741_v61, %v4749_v25  ;;  %v1998_v2 = vmul.f32 %v1980_v5, %v1964_v29 }
 0x532   :  { %v1855_v26 = vsel %vm282_vm2, %v1842_v22, %v1850_v39  ;;  %v1867_v21 = vsel %vm282_vm2, %v1850_v39, %v5003_v3  ;;  %v1960_v36 = vsel %vm386_vm3, %v4759_v13, %v4767_v57  ;;  %v1859_v42 = vsel %vm282_vm2, %v5014_v16, %v1842_v22 }
 0x533   :  { %2588 = vmatpush1.bf16.msra.mxu0 %v1809_v52  ;;  %2693 = vmatprep.subr.bf16.mxu1 %v1812_v23  ;;  %v1899_v57 = vmul.f32 %v5026_v34, %v1867_v21  ;;  %v1902_v8 = vmul.f32 %v5029_v53, %v1855_v26  ;;  %v1994_v22 = vmul.f32 %v1980_v5, %v1963_v28 }
 0x534   :  { %2589 = vmatprep.subr.bf16.mxu0 %v1908_v6  ;;  %2694 = vmatpush1.bf16.msra.mxu1 %v1811_v24  ;;  %v1959_v39 = vsel %vm386_vm3, %v4733_v15, %v4741_v61  ;;  %v1967_v23 = vsel %vm386_vm3, %v4749_v25, %v4725_v20  ;;  %v1997_v24 = vmul.f32 %v5109_v11, %v1968_v1  ;;  %v5994_v1 = vld [vmem:[#allocation6_spill] sm:$0xff] }
 0x535   :  { %v5091_v60 = vpop.permute.xlu0 %1927  ;;  %2695 = vmatprep.subr.bf16.mxu1 %v1910_v54  ;;  %v1836_v44 = vpop.permute.xlu1 %1835  ;;  %v1999_v54 = vmul.f32 %v5102_v58, %v1960_v36  ;;  %v2010_v40 = vpack.c.bf16 %v1998_v2, %v1994_v22  ;;  %v1993_v15 = vmul.f32 %v5109_v11, %v1967_v23  ;;  %v1995_v20 = vmul.f32 %v5102_v58, %v1959_v39  ;;  %v5993_v36 = vld [vmem:[#allocation4_spill] sm:$0xff] }
 0x536   :  { %v1864_v56 = vsel %vm282_vm2, %v1828_v62, %v1836_v44  ;;  %v2025_v28 = vpack.c.bf16 %v4452_v33, %v4424_v30 }
 0x537   :  { %v1904_v17 = vmul.f32 %v1878_v0, %v1864_v56  ;;  %2590 = vmatpush1.bf16.msra.mxu0 %v1907_v47  ;;  %v5112_v0 = vrot.slane %v3252_v38, %v3699_v32 }
 0x538   :  { %2696 = vmatpush1.bf16.msra.mxu1 %v1909_v37  ;;  %v2011_v37 = vpack.c.bf16 %v1999_v54, %v1995_v20 }
 0x539   :  { %v5098_v4 = vpop.permute.xlu0 %1935  ;;  %v1844_v10 = vpop.permute.xlu1 %1843  ;;  %v1912_v12 = vpack.c.bf16 %v1904_v17, %v1900_v51  ;;  %v2000_v50 = vmul.f32 %v5112_v0, %v1956_v59  ;;  %v1996_v48 = vmul.f32 %v5112_v0, %v1955_v35  ;;  %v3253_v35 = vld [vmem:[%s5893_s4 + $0x5] ss:$8 sm:$0xf] }
 0x53a   :  { %v1860_v55 = vsel %vm282_vm2, %v1836_v44, %v1844_v10  ;;  %v1965_v25 = vsel %vm386_vm3, %v5091_v60, %v5098_v4  ;;  %v5215_v22 = vrot.slane %v3253_v35, %v3697_v31  ;;  %v2098_v39 = vrot.slane %v3253_v35, %v3676_v19 }
 0x53b   :  { %2591 = vmatprep.subr.bf16.mxu0 %v1912_v12  ;;  %v1905_v3 = vmul.f32 %v5019_v7, %v1860_v55  ;;  %v2012_v61 = vpack.c.bf16 %v2000_v50, %v1996_v48  ;;  %v2002_v38 = vmul.f32 %v1980_v5, %v1965_v25  ;;  %v5998_v50 = vld [vmem:[#allocation14_spill] sm:$0xff]  ;;  %v6002_v48 = vld [vmem:[#allocation12_spill] sm:$0xff] }
 0x53d   :  { %v1944_v41 = vpop.permute.xlu0 %1943  ;;  %v1852_v43 = vpop.permute.xlu1 %1851 }
 0x53e   :  { %v1856_v52 = vsel %vm282_vm2, %v1844_v10, %v1852_v43  ;;  %v1868_v13 = vsel %vm282_vm2, %v1852_v43, %v1828_v62  ;;  %v1901_v62 = vmul.f32 %v5019_v7, %v1859_v42  ;;  %v2009_v7 = vpack.c.bf16 %v1997_v24, %v1993_v15  ;;  %v5995_v42 = vld [vmem:[#allocation3_spill] sm:$0xff]  ;;  %v5996_v43 = vld [vmem:[#allocation5_spill] sm:$0xff] }
 0x53f   :  { %v1903_v14 = vmul.f32 %v5026_v34, %v1868_v13  ;;  %v1906_v16 = vmul.f32 %v5029_v53, %v1856_v52  ;;  %v1961_v26 = vsel %vm386_vm3, %v5098_v4, %v1944_v41  ;;  %v6000_v52 = vld [vmem:[#allocation13_spill] sm:$0xff] }
 0x540   :  { %v1913_v49 = vpack.c.bf16 %v1905_v3, %v1901_v62  ;;  %v2003_v23 = vmul.f32 %v5102_v58, %v1961_v26  ;;  %v6001_v62 = vld [vmem:[#allocation8_spill] sm:$0xff]  ;;  %v6006_v15 = vld [vmem:[#allocation25_spill] sm:$0xff] }
 0x541   :  { %v1911_v34 = vpack.c.bf16 %v1903_v14, %v1899_v57  ;;  %v1952_v6 = vpop.permute.xlu0 %1951  ;;  %v1930_v53 = vpop.permute.xlu1 %1929  ;;  %v1914_v63 = vpack.c.bf16 %v1906_v16, %v1902_v8  ;;  %v2030_v24 = vpack.c.bf16 %v6002_v48, %v6001_v62 }
 0x542   :  { %v1957_v59 = vsel %vm386_vm3, %v1944_v41, %v1952_v6  ;;  %v1969_v55 = vsel %vm386_vm3, %v1952_v6, %v5091_v60  ;;  %v2028_v60 = vpack.c.bf16 %v5994_v1, %v5993_v36  ;;  %v5999_v41 = vld [vmem:[#allocation9_spill] sm:$0xff] }
 0x543   :  { %2592 = vmatpush1.bf16.msra.mxu0 %v1911_v34  ;;  %2697 = vmatprep.subr.bf16.mxu1 %v1914_v63  ;;  %v2031_v13 = vpack.c.bf16 %v6000_v52, %v5999_v41  ;;  %v2001_v57 = vmul.f32 %v5109_v11, %v1969_v55  ;;  %v2004_v8 = vmul.f32 %v5112_v0, %v1957_v59  ;;  %v6003_v6 = vld [vmem:[#allocation21_spill] sm:$0xff] }
 0x544   :  { %2593 = vmatprep.subr.bf16.mxu0 %v2010_v40  ;;  %2698 = vmatpush1.bf16.msra.mxu1 %v1913_v49  ;;  %v5222_v34 = vrot.slane %v3253_v35, %v3689_v27  ;;  %v6005_v40 = vld [vmem:[#allocation23_spill] sm:$0xff] }
 0x545   :  { %v5172_v47 = vpop.permute.xlu0 %2045  ;;  %2699 = vmatprep.subr.bf16.mxu1 %v2012_v61  ;;  %v1938_v44 = vpop.permute.xlu1 %1937  ;;  %v2074_v61 = vsel %vm506_vm4, %v6005_v40, %v6006_v15 }
 0x546   :  { %v1966_v56 = vsel %vm386_vm3, %v1930_v53, %v1938_v44  ;;  %v2117_v26 = vmul.f32 %v5222_v34, %v2074_v61  ;;  %v6017_v61 = vld [vmem:[#allocation31_spill] sm:$0xff] }
 0x547   :  { %v2006_v51 = vmul.f32 %v1980_v5, %v1966_v56  ;;  %2594 = vmatpush1.bf16.msra.mxu0 %v2009_v7  ;;  %v2026_v5 = vpack.c.bf16 %v4460_v46, %v4426_v45  ;;  %v2027_v45 = vpack.c.bf16 %v5996_v43, %v5995_v42  ;;  %v5997_v46 = vld [vmem:[#allocation10_spill] sm:$0xff]  ;;  %v6007_v7 = vld [vmem:[#allocation16_spill] sm:$0xff]  ;;  %v6009_v56 = vld [vmem:[#allocation17_spill] sm:$0xff] }
 0x548   :  { %2700 = vmatpush1.bf16.msra.mxu1 %v2011_v37  ;;  %v2032_v30 = vpack.c.bf16 %v5998_v50, %v5997_v46  ;;  %v6011_v42 = vld [vmem:[#allocation7_spill] sm:$0xff] }
 0x549   :  { %v5176_v17 = vpop.permute.xlu0 %2053  ;;  %v1946_v10 = vpop.permute.xlu1 %1945  ;;  %v2014_v12 = vpack.c.bf16 %v2006_v51, %v2002_v38  ;;  %v2077_v38 = vsel %vm506_vm4, %v6007_v7, %v6009_v56  ;;  %v5251_v51 = vrot.slane %v3253_v35, %v3699_v32  ;;  %v6012_v43 = vld [vmem:[#allocation11_spill] sm:$0xff] }
 0x54a   :  { %v1962_v29 = vsel %vm386_vm3, %v1938_v44, %v1946_v10  ;;  %v6008_v44 = vld [vmem:[#allocation15_spill] sm:$0xff]  ;;  %v2029_v46 = vpack.c.bf16 %v6012_v43, %v6011_v42 }
 0x54b   :  { %2595 = vmatprep.subr.bf16.mxu0 %v2014_v12  ;;  %v2007_v33 = vmul.f32 %v5102_v58, %v1962_v29  ;;  %v2078_v58 = vsel %vm506_vm4, %v6003_v6, %v6005_v40  ;;  %v2081_v37 = vsel %vm506_vm4, %v6008_v44, %v6007_v7  ;;  %v6010_v12 = vld [vmem:[#allocation18_spill] sm:$0xff]  ;;  %v6020_v7 = vld [vmem:[#allocation33_spill] sm:$0xff] }
 0x54c   :  { %v2073_v29 = vsel %vm506_vm4, %v6009_v56, %v6010_v12  ;;  %v2085_v59 = vsel %vm506_vm4, %v6010_v12, %v6008_v44  ;;  %v2116_v35 = vmul.f32 %v2098_v39, %v2078_v58  ;;  %v2111_v50 = vmul.f32 %v5215_v22, %v2081_v37  ;;  %v6016_v58 = vld [vmem:[#allocation26_spill] sm:$0xff] }
 0x54d   :  { %v5195_v21 = vpop.permute.xlu0 %2061  ;;  %v1954_v2 = vpop.permute.xlu1 %1953  ;;  %v2015_v25 = vpack.c.bf16 %v2007_v33, %v2003_v23  ;;  %v6014_v23 = vld [vmem:[#allocation20_spill] sm:$0xff]  ;;  %v2083_v37 = vsel %vm506_vm4, %v5172_v47, %v5176_v17 }
 0x54e   :  { %v1958_v3 = vsel %vm386_vm3, %v1946_v10, %v1954_v2  ;;  %v1970_v4 = vsel %vm386_vm3, %v1954_v2, %v1930_v53  ;;  %v6004_v53 = vld [vmem:[#allocation19_spill] sm:$0xff]  ;;  %v2079_v48 = vsel %vm506_vm4, %v5176_v17, %v5195_v21 }
 0x54f   :  { %v2005_v14 = vmul.f32 %v5109_v11, %v1970_v4  ;;  %v2008_v16 = vmul.f32 %v5112_v0, %v1958_v3  ;;  %v2082_v11 = vsel %vm506_vm4, %v6004_v53, %v6003_v6  ;;  %v2086_v20 = vsel %vm506_vm4, %v6006_v15, %v6004_v53  ;;  %v3254_v10 = vld [vmem:[%s5893_s4 + $0x6] ss:$8 sm:$0xf] }
 0x550   :  { %v2115_v55 = vmul.f32 %v5215_v22, %v2082_v11  ;;  %v2118_v2 = vmul.f32 %v5251_v51, %v2086_v20  ;;  %v5273_v33 = vrot.slane %v3254_v10, %v3697_v31  ;;  %v5279_v3 = vrot.slane %v3254_v10, %v3689_v27  ;;  %v6015_v6 = vld [vmem:[#allocation24_spill] sm:$0xff] }
 0x551   :  { %v2013_v63 = vpack.c.bf16 %v2005_v14, %v2001_v57  ;;  %v2070_v0 = vpop.permute.xlu0 %2069  ;;  %v5228_v54 = vpop.permute.xlu1 %2047  ;;  %v2016_v49 = vpack.c.bf16 %v2008_v16, %v2004_v8  ;;  %v2112_v4 = vmul.f32 %v2098_v39, %v2077_v38  ;;  %v2113_v57 = vmul.f32 %v5222_v34, %v2073_v29  ;;  %v6013_v16 = vld [vmem:[#allocation22_spill] sm:$0xff] }
 0x552   :  { %v5284_v8 = vrot.slane %v3254_v10, %v3699_v32  ;;  %v2127_v14 = vpack.c.bf16 %v2115_v55, %v2111_v50  ;;  %v2183_v62 = vsel %vm610_vm5, %v6014_v23, %v6013_v16  ;;  %v2179_v53 = vsel %vm610_vm5, %v6013_v16, %v6015_v6 }
 0x553   :  { %2596 = vmatpush1.bf16.msra.mxu0 %v2013_v63  ;;  %2701 = vmatprep.subr.bf16.mxu1 %v2016_v49  ;;  %v2129_v11 = vpack.c.bf16 %v2117_v26, %v2113_v57  ;;  %v2128_v49 = vpack.c.bf16 %v2116_v35, %v2112_v4  ;;  %v2187_v15 = vsel %vm610_vm5, %v6016_v58, %v6014_v23 }
 0x554   :  { %2597 = vmatprep.subr.bf16.mxu0 %v2026_v5  ;;  %2702 = vmatpush1.bf16.msra.mxu1 %v2015_v25  ;;  %v5276_v5 = vrot.slane %v3254_v10, %v3676_v19  ;;  %v6019_v25 = vld [vmem:[#allocation27_spill] sm:$0xff]  ;;  %v2120_v56 = vmul.f32 %v2098_v39, %v2079_v48  ;;  %v2075_v12 = vsel %vm506_vm4, %v5195_v21, %v2070_v0 }
 0x555   :  { %v5267_v36 = vpop.permute.xlu0 %2147  ;;  %2703 = vmatprep.subr.bf16.mxu1 %v2028_v60  ;;  %v2056_v1 = vpop.permute.xlu1 %2055  ;;  %v2114_v60 = vmul.f32 %v5251_v51, %v2085_v59  ;;  %v2188_v44 = vsel %vm610_vm5, %v6020_v7, %v6019_v25  ;;  %v2087_v29 = vsel %vm506_vm4, %v2070_v0, %v5172_v47  ;;  %v2119_v0 = vmul.f32 %v5215_v22, %v2083_v37 }
 0x556   :  { %v2084_v20 = vsel %vm506_vm4, %v5228_v54, %v2056_v1  ;;  %v2220_v47 = vmul.f32 %v5284_v8, %v2188_v44  ;;  %v2122_v26 = vmul.f32 %v5251_v51, %v2087_v29  ;;  %v2214_v42 = vmul.f32 %v5276_v5, %v2179_v53 }
 0x557   :  { %2598 = vmatpush1.bf16.msra.mxu0 %v2025_v28  ;;  %v2130_v40 = vpack.c.bf16 %v2118_v2, %v2114_v60  ;;  %v2123_v59 = vmul.f32 %v5215_v22, %v2084_v20  ;;  %v2175_v22 = vsel %vm610_vm5, %v6015_v6, %v6016_v58  ;;  %v2216_v43 = vmul.f32 %v5284_v8, %v2187_v15 }
 0x558   :  { %2599 = vmatprep.subr.bf16.mxu0 %v2030_v24  ;;  %2704 = vmatpush1.bf16.msra.mxu1 %v2027_v45  ;;  %v6018_v24 = vld [vmem:[#allocation29_spill] sm:$0xff]  ;;  %v2215_v23 = vmul.f32 %v5279_v3, %v2175_v22 }
 0x559   :  { %v5298_v28 = vpop.permute.xlu0 %2155  ;;  %2705 = vmatprep.subr.bf16.mxu1 %v2032_v30  ;;  %v2064_v63 = vpop.permute.xlu1 %2063  ;;  %v2180_v45 = vsel %vm610_vm5, %v6018_v24, %v6017_v61  ;;  %v2184_v10 = vsel %vm610_vm5, %v6019_v25, %v6018_v24  ;;  %v2232_v16 = vpack.c.bf16 %v2220_v47, %v2216_v43  ;;  %v6024_v24 = vld [vmem:[#allocation30_spill] sm:$0xff] }
 0x55a   :  { %v2080_v30 = vsel %vm506_vm4, %v2056_v1, %v2064_v63  ;;  %v2218_v17 = vmul.f32 %v5276_v5, %v2180_v45  ;;  %v2185_v44 = vsel %vm610_vm5, %v5267_v36, %v5298_v28 }
 0x55b   :  { %v2124_v38 = vmul.f32 %v2098_v39, %v2080_v30  ;;  %2600 = vmatpush1.bf16.msra.mxu0 %v2029_v46  ;;  %v2176_v39 = vsel %vm610_vm5, %v6017_v61, %v6020_v7  ;;  %v2131_v46 = vpack.c.bf16 %v2123_v59, %v2119_v0  ;;  %v6023_v61 = vld [vmem:[#allocation32_spill] sm:$0xff]  ;;  %v6028_v0 = vld [vmem:[#allocation34_spill] sm:$0xff] }
 0x55c   :  { %2601 = vmatprep.subr.bf16.mxu0 %v2128_v49  ;;  %2706 = vmatpush1.bf16.msra.mxu1 %v2031_v13  ;;  %v2121_v13 = vmul.f32 %v5222_v34, %v2075_v12  ;;  %v2230_v60 = vpack.c.bf16 %v2218_v17, %v2214_v42  ;;  %v6021_v49 = vld [vmem:[#allocation39_spill] sm:$0xff]  ;;  %v2281_v45 = vsel %vm714_vm6, %v6024_v24, %v6023_v61 }
 0x55d   :  { %v5340_v55 = vpop.permute.xlu0 %2163  ;;  %2707 = vmatprep.subr.bf16.mxu1 %v2130_v40  ;;  %v2072_v21 = vpop.permute.xlu1 %2071  ;;  %v2132_v35 = vpack.c.bf16 %v2124_v38, %v2120_v56  ;;  %v6022_v40 = vld [vmem:[#allocation37_spill] sm:$0xff]  ;;  %v6025_v38 = vld [vmem:[#allocation28_spill] sm:$0xff]  ;;  %v6026_v12 = vld [vmem:[#allocation35_spill] sm:$0xff] }
 0x55e   :  { %v2076_v41 = vsel %vm506_vm4, %v2064_v63, %v2072_v21  ;;  %v2088_v52 = vsel %vm506_vm4, %v2072_v21, %v5228_v54  ;;  %v2217_v54 = vmul.f32 %v5273_v33, %v2184_v10  ;;  %v2181_v20 = vsel %vm610_vm5, %v5298_v28, %v5340_v55  ;;  %v6027_v28 = vld [vmem:[#allocation41_spill] sm:$0xff] }
 0x55f   :  { %v2125_v2 = vmul.f32 %v5222_v34, %v2076_v41  ;;  %v2126_v1 = vmul.f32 %v5251_v51, %v2088_v52  ;;  %2602 = vmatpush1.bf16.msra.mxu0 %v2127_v14  ;;  %v2219_v51 = vmul.f32 %v5279_v3, %v2176_v39  ;;  %v2213_v14 = vmul.f32 %v5273_v33, %v2183_v62 }
 0x560   :  { %2603 = vmatprep.subr.bf16.mxu0 %v2132_v35  ;;  %2708 = vmatpush1.bf16.msra.mxu1 %v2129_v11  ;;  %v3255_v11 = vld [vmem:[%s5893_s4 + $0x7] ss:$8 sm:$0xf]  ;;  %v2282_v62 = vsel %vm714_vm6, %v6022_v40, %v6021_v49  ;;  %v2285_v10 = vsel %vm714_vm6, %v6025_v38, %v6024_v24  ;;  %v2286_v29 = vsel %vm714_vm6, %v6026_v12, %v6022_v40  ;;  %v3256_v40 = vld [vmem:[%s5893_s4 + $0x20] ss:$8 sm:$0xf] }
 0x561   :  { %v2133_v50 = vpack.c.bf16 %v2125_v2, %v2121_v13  ;;  %v2172_v4 = vpop.permute.xlu0 %2171  ;;  %v2150_v34 = vpop.permute.xlu1 %2149  ;;  %v2134_v57 = vpack.c.bf16 %v2126_v1, %v2122_v26  ;;  %v2229_v48 = vpack.c.bf16 %v2217_v54, %v2213_v14  ;;  %v2231_v63 = vpack.c.bf16 %v2219_v51, %v2215_v23 }
 0x562   :  { %v5373_v58 = vrot.slane %v3255_v11, %v3676_v19  ;;  %v5386_v30 = vrot.slane %v3255_v11, %v3697_v31  ;;  %v5389_v25 = vrot.slane %v3255_v11, %v3699_v32  ;;  %v2290_v21 = vsel %vm714_vm6, %v6027_v28, %v6026_v12 }
 0x563   :  { %2604 = vmatpush1.bf16.msra.mxu0 %v2131_v46  ;;  %2709 = vmatprep.subr.bf16.mxu1 %v2134_v57  ;;  %v2222_v35 = vmul.f32 %v5276_v5, %v2181_v20  ;;  %v2289_v41 = vsel %vm714_vm6, %v6028_v0, %v6025_v38  ;;  %v2221_v52 = vmul.f32 %v5273_v33, %v2185_v44  ;;  %v6031_v44 = vld [vmem:[#allocation40_spill] sm:$0xff] }
 0x564   :  { %2605 = vmatprep.subr.bf16.mxu0 %v2230_v60  ;;  %2710 = vmatpush1.bf16.msra.mxu1 %v2133_v50  ;;  %v2320_v7 = vmul.f32 %v5373_v58, %v2282_v62  ;;  %v2316_v59 = vmul.f32 %v5373_v58, %v2281_v45  ;;  %v2177_v13 = vsel %vm610_vm5, %v5340_v55, %v2172_v4 }
 0x565   :  { %v5363_v6 = vpop.permute.xlu0 %2249  ;;  %2711 = vmatprep.subr.bf16.mxu1 %v2232_v16  ;;  %v2158_v53 = vpop.permute.xlu1 %2157  ;;  %v2189_v26 = vsel %vm610_vm5, %v2172_v4, %v5267_v36  ;;  %v2319_v2 = vmul.f32 %v5386_v30, %v2286_v29  ;;  %v2223_v46 = vmul.f32 %v5279_v3, %v2177_v13  ;;  %v2315_v51 = vmul.f32 %v5386_v30, %v2285_v10  ;;  %v6036_v13 = vld [vmem:[#allocation42_spill] sm:$0xff] }
 0x566   :  { %v2186_v15 = vsel %vm610_vm5, %v2150_v34, %v2158_v53  ;;  %v2332_v43 = vpack.c.bf16 %v2320_v7, %v2316_v59  ;;  %v2224_v50 = vmul.f32 %v5284_v8, %v2189_v26  ;;  %v2306_v60 = vrot.slane %v3255_v11, %v3689_v27  ;;  %v6033_v59 = vld [vmem:[#allocation36_spill] sm:$0xff] }
 0x567   :  { %2606 = vmatpush1.bf16.msra.mxu0 %v2229_v48  ;;  %v2225_v17 = vmul.f32 %v5273_v33, %v2186_v15  ;;  %v2322_v33 = vmul.f32 %v5389_v25, %v2290_v21  ;;  %v2277_v14 = vsel %vm714_vm6, %v6023_v61, %v6028_v0  ;;  %v6029_v15 = vld [vmem:[#allocation45_spill] sm:$0xff]  ;;  %v6030_v61 = vld [vmem:[#allocation44_spill] sm:$0xff]  ;;  %v5456_v20 = vrot.slane %v3256_v40, %v3676_v19  ;;  %v6034_v21 = vld [vmem:[#allocation43_spill] sm:$0xff] }
 0x568   :  { %2712 = vmatpush1.bf16.msra.mxu1 %v2231_v63  ;;  %v2384_v24 = vsel %vm818_vm7, %v6030_v61, %v6029_v15  ;;  %v5467_v12 = vrot.slane %v3256_v40, %v3697_v31  ;;  %v5470_v29 = vrot.slane %v3256_v40, %v3699_v32  ;;  %v2388_v31 = vsel %vm818_vm7, %v6034_v21, %v6030_v61 }
 0x569   :  { %v2258_v37 = vpop.permute.xlu0 %2257  ;;  %v2166_v56 = vpop.permute.xlu1 %2165  ;;  %v2233_v54 = vpack.c.bf16 %v2225_v17, %v2221_v52  ;;  %v2422_v19 = vmul.f32 %v5456_v20, %v2384_v24  ;;  %v2391_v26 = vsel %vm818_vm7, %v6036_v13, %v6033_v59 }
 0x56a   :  { %v2182_v39 = vsel %vm610_vm5, %v2158_v53, %v2166_v56  ;;  %v2331_v53 = vpack.c.bf16 %v2319_v2, %v2315_v51  ;;  %v2287_v17 = vsel %vm714_vm6, %v5363_v6, %v2258_v37  ;;  %v3370_v51 = vld [vmem:[%s5896_s2] ss:$12 sps:$4 sm:$0xff]  }
 0x56b   :  { %v2226_v47 = vmul.f32 %v5276_v5, %v2182_v39  ;;  %v2278_v5 = vsel %vm714_vm6, %v6021_v49, %v6027_v28  ;;  %v2317_v49 = vmul.f32 %v2306_v60, %v2277_v14  ;;  %v2323_v2 = vmul.f32 %v5386_v30, %v2287_v17 }
 0x56d   :  { %v2266_v1 = vpop.permute.xlu0 %2265  ;;  %v2174_v42 = vpop.permute.xlu1 %2173  ;;  %v2234_v22 = vpack.c.bf16 %v2226_v47, %v2222_v35 }
 0x56e   :  { %v2178_v55 = vsel %vm610_vm5, %v2166_v56, %v2174_v42  ;;  %v2190_v36 = vsel %vm610_vm5, %v2174_v42, %v2150_v34  ;;  %v2318_v34 = vmul.f32 %v5389_v25, %v2289_v41  ;;  %v6032_v56 = vld [vmem:[#allocation38_spill] sm:$0xff]  ;;  %v2283_v10 = vsel %vm714_vm6, %v2258_v37, %v2266_v1 }
 0x56f   :  { %v2227_v4 = vmul.f32 %v5279_v3, %v2178_v55  ;;  %v2228_v57 = vmul.f32 %v5284_v8, %v2190_v36  ;;  %2607 = vmatprep.subr.bf16.mxu0 %v2234_v22  ;;  %v2321_v8 = vmul.f32 %v2306_v60, %v2278_v5  ;;  %v2383_v38 = vsel %vm818_vm7, %v6032_v56, %v6031_v44  ;;  %v6035_v37 = vld [vmem:[#allocation46_spill] sm:$0xff] }
 0x570   :  { %2608 = vmatpush1.bf16.msra.mxu0 %v2233_v54  ;;  %v2334_v63 = vpack.c.bf16 %v2322_v33, %v2318_v34  ;;  %v2387_v28 = vsel %vm818_vm7, %v6033_v59, %v6032_v56  ;;  %v2418_v47 = vmul.f32 %v5456_v20, %v2383_v38  ;;  %v2392_v0 = vsel %vm818_vm7, %v6035_v37, %v6034_v21 }
 0x571   :  { %v2235_v16 = vpack.c.bf16 %v2227_v4, %v2223_v46  ;;  %v2274_v23 = vpop.permute.xlu0 %2273  ;;  %2609 = vmatprep.subr.bf16.mxu0 %v2332_v43  ;;  %v2252_v48 = vpop.permute.xlu1 %2251  ;;  %v2236_v3 = vpack.c.bf16 %v2228_v57, %v2224_v50  ;;  %v2333_v62 = vpack.c.bf16 %v2321_v8, %v2317_v49  ;;  %v2324_v41 = vmul.f32 %v5373_v58, %v2283_v10 }
 0x572   :  { %v2279_v5 = vsel %vm714_vm6, %v2266_v1, %v2274_v23  ;;  %v2291_v42 = vsel %vm714_vm6, %v2274_v23, %v5363_v6  ;;  %v2421_v43 = vmul.f32 %v5467_v12, %v2388_v31  ;;  %v2434_v55 = vpack.c.bf16 %v2422_v19, %v2418_v47 }
 0x573   :  { %2713 = vmatprep.subr.bf16.mxu1 %v2236_v3  ;;  %v2325_v46 = vmul.f32 %v2306_v60, %v2279_v5  ;;  %v2326_v50 = vmul.f32 %v5389_v25, %v2291_v42  ;;  %v2417_v14 = vmul.f32 %v5467_v12, %v2387_v28  ;;  %v2408_v34 = vrot.slane %v3256_v40, %v3689_v27  ;;  %v3373_v3 = vld [vmem:[%s5896_s2 + $0x1c] ss:$12 sps:$4 sm:$0xff]  }
 0x574   :  { %2610 = vmatpush1.bf16.msra.mxu0 %v2331_v53  ;;  %2714 = vmatpush1.bf16.msra.mxu1 %v2235_v16  ;;  %v2379_v16 = vsel %vm818_vm7, %v6031_v44, %v6036_v13  ;;  %v2420_v23 = vmul.f32 %v5470_v29, %v2391_v26 }
 0x575   :  { %2715 = vmatprep.subr.bf16.mxu1 %v2334_v63  ;;  %v2260_v11 = vpop.permute.xlu1 %2259  ;;  %v5453_v45 = vpop.permute.xlu0 %2351  ;;  %v2433_v53 = vpack.c.bf16 %v2421_v43, %v2417_v14  ;;  %v2419_v49 = vmul.f32 %v2408_v34, %v2379_v16 }
 0x576   :  { %v2288_v7 = vsel %vm714_vm6, %v2252_v48, %v2260_v11 }
 0x577   :  { %v2327_v32 = vmul.f32 %v5386_v30, %v2288_v7  ;;  %v2424_v30 = vmul.f32 %v5470_v29, %v2392_v0 }
 0x578   :  { %2716 = vmatpush1.bf16.msra.mxu1 %v2333_v62 }
 0x579   :  { %v2268_v39 = vpop.permute.xlu1 %2267  ;;  %v2360_v22 = vpop.permute.xlu0 %2359  ;;  %v2335_v36 = vpack.c.bf16 %v2327_v32, %v2323_v2  ;;  %v2436_v27 = vpack.c.bf16 %v2424_v30, %v2420_v23 }
 0x57a   :  { %v2284_v35 = vsel %vm714_vm6, %v2260_v11, %v2268_v39  ;;  %v2389_v7 = vsel %vm818_vm7, %v5453_v45, %v2360_v22 }
 0x57b   :  { %v2328_v52 = vmul.f32 %v5373_v58, %v2284_v35  ;;  %v2380_v58 = vsel %vm818_vm7, %v6029_v15, %v6035_v37  ;;  %v3375_v15 = vld [vmem:[%s5896_s2 + $0x18] ss:$12 sps:$4 sm:$0xff]  }
 0x57c   :  { %v2423_v8 = vmul.f32 %v2408_v34, %v2380_v58 }
 0x57d   :  { %v2276_v33 = vpop.permute.xlu1 %2275  ;;  %v2336_v54 = vpack.c.bf16 %v2328_v52, %v2324_v41  ;;  %v2368_v63 = vpop.permute.xlu0 %2367 }
 0x57e   :  { %v2280_v1 = vsel %vm714_vm6, %v2268_v39, %v2276_v33  ;;  %v2292_v6 = vsel %vm714_vm6, %v2276_v33, %v2252_v48  ;;  %v2435_v40 = vpack.c.bf16 %v2423_v8, %v2419_v49  ;;  %v2385_v61 = vsel %vm818_vm7, %v2360_v22, %v2368_v63 }
 0x57f   :  { %v2329_v4 = vmul.f32 %v2306_v60, %v2280_v1  ;;  %v2330_v57 = vmul.f32 %v5389_v25, %v2292_v6  ;;  %2611 = vmatprep.subr.bf16.mxu0 %v2336_v54  ;;  %v2426_v10 = vmul.f32 %v5456_v20, %v2385_v61  ;;  %v2425_v39 = vmul.f32 %v5467_v12, %v2389_v7 }
 0x580   :  { %2612 = vmatpush1.bf16.msra.mxu0 %v2335_v36 }
 0x581   :  { %v2337_v60 = vpack.c.bf16 %v2329_v4, %v2325_v46  ;;  %2634 = vmatprep.subr.bf16.mxu0 %v2434_v55  ;;  %v2354_v25 = vpop.permute.xlu1 %2353  ;;  %v2338_v48 = vpack.c.bf16 %v2330_v57, %v2326_v50  ;;  %v2376_v24 = vpop.permute.xlu0 %2375 }
 0x582   :  { %v2381_v19 = vsel %vm818_vm7, %v2368_v63, %v2376_v24  ;;  %v2393_v59 = vsel %vm818_vm7, %v2376_v24, %v5453_v45  ;;  %v3376_v45 = vld [vmem:[%s5896_s2 + $0x8] ss:$12 sps:$4 sm:$0xff]  }
 0x583   :  { %2614 = vmatmul.mubr.bf16.vlgmr.msra.gmra.mrb[8].mxu0 %v3370_v51  ;;  %2717 = vmatprep.subr.bf16.mxu1 %v2338_v48  ;;  %v2427_v31 = vmul.f32 %v2408_v34, %v2381_v19 }
 0x584   :  { %2635 = vmatpush1.bf16.msra.mxu0 %v2433_v53  ;;  %2718 = vmatpush1.bf16.msra.mxu1 %v2337_v60 }
 0x585   :  { %2740 = vmatprep.subr.bf16.mxu1 %v2436_v27  ;;  %v2362_v11 = vpop.permute.xlu1 %2361  ;;  %2623 = vmatprep.mubr.bf16.mxu0 %v3373_v3 }
 0x586   :  { %v2390_v62 = vsel %vm818_vm7, %v2354_v25, %v2362_v11 }
 0x587   :  { %2720 = vmatmul.mubr.bf16.vlgmr.msra.gmra.mrb[8].mxu1 %v3370_v51  ;;  %v2429_v56 = vmul.f32 %v5467_v12, %v2390_v62 }
 0x588   :  { %2741 = vmatpush1.bf16.msra.mxu1 %v2435_v40  ;;  %2729 = vmatprep.mubr.bf16.mxu1 %v3373_v3 }
 0x589   :  { %v2370_v44 = vpop.permute.xlu1 %2369  ;;  %v2437_v32 = vpack.c.bf16 %v2429_v56, %v2425_v39 }
 0x58a   :  { %v2386_v38 = vsel %vm818_vm7, %v2362_v11, %v2370_v44 }
 0x58b   :  { %v2430_v17 = vmul.f32 %v5456_v20, %v2386_v38  ;;  %2624 = vmatmul.mubr.bf16.gmra.mrb[12].mxu0 %v3375_v15  ;;  %v2428_v20 = vmul.f32 %v5470_v29, %v2393_v59 }
 0x58c   :  { %2666 = vmatprep.mubr.bf16.mxu0 %v5992_v9 }
 0x58d   :  { %v2378_v28 = vpop.permute.xlu1 %2377  ;;  %v2438_v21 = vpack.c.bf16 %v2430_v17, %v2426_v10 }
 0x58e   :  { %v2382_v35 = vsel %vm818_vm7, %v2370_v44, %v2378_v28  ;;  %v2394_v47 = vsel %vm818_vm7, %v2378_v28, %v2354_v25 }
 0x58f   :  { %v2431_v37 = vmul.f32 %v2408_v34, %v2382_v35  ;;  %v2432_v12 = vmul.f32 %v5470_v29, %v2394_v47  ;;  %2636 = vmatprep.subr.bf16.mxu0 %v2438_v21  ;;  %2730 = vmatmul.mubr.bf16.gmra.mrb[12].mxu1 %v3375_v15 }
 0x590   :  { %2637 = vmatpush1.bf16.msra.mxu0 %v2437_v32  ;;  %2772 = vmatprep.mubr.bf16.mxu1 %v5992_v9 }
 0x591   :  { %v2439_v0 = vpack.c.bf16 %v2431_v37, %v2427_v31  ;;  %v2440_v41 = vpack.c.bf16 %v2432_v12, %v2428_v20 }
 0x593   :  { %3263 = vmatmul.mubr.msk.bf16.vlgmr.msra.gmra.mrb[8].mxu0 %vm1020_vm8, %v3376_v45  ;;  %2742 = vmatprep.subr.bf16.mxu1 %v2440_v41 }
 0x594   :  { %2743 = vmatpush1.bf16.msra.mxu1 %v2439_v0  ;;  %2676 = vmatprep.mubr.bf16.mxu0 %v5992_v9 }
 0x597   :  { %3265 = vmatmul.mubr.msk.bf16.vlgmr.msra.gmra.mrb[8].mxu1 %vm1020_vm8, %v3376_v45 }
 0x598   :  { %2782 = vmatprep.mubr.bf16.mxu1 %v5992_v9 }
 0x59b   :  { %3264 = vmatmul.mubr.msk.bf16.gmra.mrb[12].mxu0 %vm1020_vm8, %v3377_v18 }
 0x59c   :  { %v2531_v29 = vpop.permute.xlu0 %2530 }
 0x59e   :  { %v2535_v42 = vpop.permute.xlu1 %2534 }
 0x59f   :  { %3266 = vmatmul.mubr.msk.bf16.gmra.mrb[12].mxu1 %vm1020_vm8, %v3377_v18 }
 0x5a0   :  { %v2543_v7 = vpop.permute.xlu0 %2542 }
 0x5a4   :  { %v2539_v24 = vpop.permute.xlu1 %2538 }
 0x666   :  { %v2668_v52 = vpop.f32.mrb[8].mxu0 }
 0x667   :  { %v5570_v13 = vadd.f32 %v2668_v52, %v2531_v29  ;;  %v2670_v26 = vpop.f32.mrb[9].mxu0 }
 0x668   :  { %v5572_v2 = vadd.f32 %v2670_v26, %v2531_v29  ;;  %v2672_v5 = vpop.f32.mrb[10].mxu0 }
 0x669   :  { %v2674_v22 = vpop.f32.mrb[11].mxu0  ;;  %v5578_v55 = vadd.f32 %v2672_v5, %v2535_v42  ;;  %v2805_v25 = vmul.f32 %v5570_v13, %v5570_v13 }
 0x66a   :  { %v2774_v43 = vpop.f32.mrb[8].mxu1  ;;  %v2793_v58 = vadd.f32 %v5572_v2, %v5570_v13  ;;  %v5580_v30 = vadd.f32 %v2674_v22, %v2535_v42  ;;  %v2806_v48 = vmul.f32 %v5572_v2, %v5572_v2  ;;  %v3446_v22 = vmov 5  }
 0x66b   :  { %v5576_v33 = vadd.f32 %v2774_v43, %v2531_v29  ;;  %v2776_v54 = vpop.f32.mrb[9].mxu1  ;;  %v2807_v23 = vmul.f32 %v5578_v55, %v5578_v55  ;;  %3357 = vset.pattern.permute.xlu0 %v3446_v22 }
 0x66c   :  { %v5582_v36 = vadd.f32 %v2776_v54, %v2531_v29  ;;  %2794 = vadd.xlane.f32.xlu1 %v2793_v58  ;;  %v2778_v1 = vpop.f32.mrb[10].mxu1  ;;  %v2808_v14 = vmul.f32 %v5580_v30, %v5580_v30  ;;  %v2796_v53 = vadd.f32 %v5580_v30, %v5578_v55  ;;  %v2813_v61 = vadd.f32 %v2806_v48, %v2805_v25 }
 0x66d   :  { %v5584_v6 = vadd.f32 %v2778_v1, %v2535_v42  ;;  %v2780_v46 = vpop.f32.mrb[11].mxu1  ;;  %v3013_v62 = vmul.f32 %v5576_v33, %v5576_v33 }
 0x66e   :  { %v5586_v50 = vadd.f32 %v2780_v46, %v2535_v42  ;;  %v2678_v4 = vpop.f32.mrb[12].mxu0  ;;  %v3001_v57 = vadd.f32 %v5582_v36, %v5576_v33  ;;  %v2816_v11 = vadd.f32 %v2808_v14, %v2807_v23  ;;  %v3014_v15 = vmul.f32 %v5582_v36, %v5582_v36 }
 0x66f   :  { %v2680_v51 = vpop.f32.mrb[13].mxu0  ;;  %v3015_v63 = vmul.f32 %v5584_v6, %v5584_v6  ;;  %v5614_v10 = vadd.f32 %v2678_v4, %v2539_v24 }
 0x670   :  { %v2682_v34 = vpop.f32.mrb[14].mxu0  ;;  %3002 = vadd.xlane.f32.xlu0 %v3001_v57  ;;  %v3004_v16 = vadd.f32 %v5586_v50, %v5584_v6  ;;  %v3016_v27 = vmul.f32 %v5586_v50, %v5586_v50  ;;  %v5616_v19 = vadd.f32 %v2680_v51, %v2539_v24  ;;  %v3021_v17 = vadd.f32 %v3014_v15, %v3013_v62 }
 0x671   :  { %v2684_v60 = vpop.f32.mrb[15].mxu0  ;;  %v5610_v44 = vadd.f32 %v2682_v34, %v2543_v7  ;;  %v2809_v45 = vmul.f32 %v5614_v10, %v5614_v10 }
 0x672   :  { %v2784_v3 = vpop.f32.mrb[12].mxu1  ;;  %3005 = vadd.xlane.f32.xlu1 %v3004_v16  ;;  %v5612_v56 = vadd.f32 %v2684_v60, %v2543_v7  ;;  %v3024_v38 = vadd.f32 %v3016_v27, %v3015_v63  ;;  %v2799_v32 = vadd.f32 %v5616_v19, %v5614_v10  ;;  %v2810_v37 = vmul.f32 %v5616_v19, %v5616_v19 }
 0x673   :  { %v2786_v8 = vpop.f32.mrb[13].mxu1  ;;  %v5624_v21 = vadd.f32 %v2784_v3, %v2539_v24  ;;  %v2811_v35 = vmul.f32 %v5610_v44, %v5610_v44 }
 0x674   :  { %v2788_v49 = vpop.f32.mrb[14].mxu1  ;;  %2797 = vadd.xlane.f32.xlu0 %v2796_v53  ;;  %v2802_v28 = vadd.f32 %v5612_v56, %v5610_v44  ;;  %v5626_v31 = vadd.f32 %v2786_v8, %v2539_v24  ;;  %v2812_v47 = vmul.f32 %v5612_v56, %v5612_v56  ;;  %v2819_v26 = vadd.f32 %v2810_v37, %v2809_v45 }
 0x675   :  { %v2790_v40 = vpop.f32.mrb[15].mxu1  ;;  %v5618_v39 = vadd.f32 %v2788_v49, %v2543_v7  ;;  %v3017_v29 = vmul.f32 %v5624_v21, %v5624_v21 }
 0x676   :  { %2817 = vadd.xlane.f32.xlu1 %v2816_v11  ;;  %v5620_v59 = vadd.f32 %v2790_v40, %v2543_v7  ;;  %v3007_v12 = vadd.f32 %v5626_v31, %v5624_v21  ;;  %v2822_v18 = vadd.f32 %v2812_v47, %v2811_v35  ;;  %v3018_v52 = vmul.f32 %v5626_v31, %v5626_v31 }
 0x677   :  { %v3019_v0 = vmul.f32 %v5618_v39, %v5618_v39 }
 0x678   :  { %2814 = vadd.xlane.f32.xlu0 %v2813_v61  ;;  %v3010_v20 = vadd.f32 %v5620_v59, %v5618_v39  ;;  %v3020_v41 = vmul.f32 %v5620_v59, %v5620_v59  ;;  %v3027_v42 = vadd.f32 %v3018_v52, %v3017_v29 }
 0x67a   :  { %3025 = vadd.xlane.f32.xlu1 %v3024_v38  ;;  %v3030_v5 = vadd.f32 %v3020_v41, %v3019_v0 }
 0x67c   :  { %3022 = vadd.xlane.f32.xlu0 %v3021_v17 }
 0x67e   :  { %2803 = vadd.xlane.f32.xlu1 %v2802_v28 }
 0x680   :  { %2800 = vadd.xlane.f32.xlu0 %v2799_v32 }
 0x682   :  { %3011 = vadd.xlane.f32.xlu1 %v3010_v20 }
 0x684   :  { %3008 = vadd.xlane.f32.xlu0 %v3007_v12 }
 0x686   :  { %2823 = vadd.xlane.f32.xlu1 %v2822_v18 }
 0x688   :  { %2820 = vadd.xlane.f32.xlu0 %v2819_v26 }
 0x68a   :  { %3031 = vadd.xlane.f32.xlu1 %v3030_v5 }
 0x68c   :  { %3028 = vadd.xlane.f32.xlu0 %v3027_v42 }
 0x6f9   :  { %v2795_v43 = vpop.xlane.xlu1 %2794 }
 0x6fd   :  { %v3003_v58 = vpop.xlane.xlu0 %3002 }
 0x6ff   :  { %v3006_v54 = vpop.xlane.xlu1 %3005 }
 0x701   :  { %v2798_v1 = vpop.xlane.xlu0 %2797 }
 0x703   :  { %v2818_v46 = vpop.xlane.xlu1 %2817 }
 0x704   :  { %v2826_v4 = vsel %vm1271_vm9, %v2798_v1, %v2818_v46 }
 0x705   :  { %v2836_v57 = vsel %vm1276_vm10, %v2826_v4, 0.0  ;;  %v2815_v51 = vpop.xlane.xlu0 %2814 }
 0x706   :  { %v2837_v14 = vrot.slane %v2836_v57, 4  ;;  %v2825_v34 = vsel %vm1271_vm9, %v2795_v43, %v2815_v51 }
 0x707   :  { %v2829_v16 = vsel %vm1276_vm10, %v2825_v34, 0.0  ;;  %v3026_v23 = vpop.xlane.xlu1 %3025 }
 0x708   :  { %v2838_v60 = vadd.f32 %v2837_v14, %v2836_v57  ;;  %v2830_v25 = vrot.slane %v2829_v16, 4  ;;  %v3034_v48 = vsel %vm1271_vm9, %v3006_v54, %v3026_v23 }
 0x709   :  { %v3044_v3 = vsel %vm1276_vm10, %v3034_v48, 0.0  ;;  %v3023_v53 = vpop.xlane.xlu0 %3022 }
 0x70a   :  { %v2831_v8 = vadd.f32 %v2830_v25, %v2829_v16  ;;  %v3045_v63 = vrot.slane %v3044_v3, 4  ;;  %v3033_v27 = vsel %vm1271_vm9, %v3003_v58, %v3023_v53  ;;  %v2839_v49 = vrot.slane %v2838_v60, 2 }
 0x70b   :  { %v3037_v11 = vsel %vm1276_vm10, %v3033_v27, 0.0  ;;  %v2804_v40 = vpop.xlane.xlu1 %2803 }
 0x70c   :  { %v2832_v62 = vrot.slane %v2831_v8, 2  ;;  %v3046_v15 = vadd.f32 %v3045_v63, %v3044_v3  ;;  %v3038_v61 = vrot.slane %v3037_v11, 4  ;;  %v2840_v28 = vadd.f32 %v2839_v49, %v2838_v60 }
 0x70d   :  { %v2801_v24 = vpop.xlane.xlu0 %2800 }
 0x70e   :  { %v2833_v7 = vadd.f32 %v2832_v62, %v2831_v8  ;;  %v3047_v38 = vrot.slane %v3046_v15, 2  ;;  %v3039_v17 = vadd.f32 %v3038_v61, %v3037_v11  ;;  %v2841_v41 = vrot.slane %v2840_v28, 1 }
 0x70f   :  { %v3012_v32 = vpop.xlane.xlu1 %3011 }
 0x710   :  { %v2834_v35 = vrot.slane %v2833_v7, 1  ;;  %v3048_v47 = vadd.f32 %v3047_v38, %v3046_v15  ;;  %v3040_v20 = vrot.slane %v3039_v17, 2  ;;  %v2842_v46 = vadd.f32 %v2841_v41, %v2840_v28 }
 0x711   :  { %v3009_v37 = vpop.xlane.xlu0 %3008 }
 0x712   :  { %v2835_v12 = vadd.f32 %v2834_v35, %v2833_v7  ;;  %v3049_v45 = vrot.slane %v3048_v47, 1  ;;  %v3041_v0 = vadd.f32 %v3040_v20, %v3039_v17  ;;  %v5675_v27 = vmul.f32 0.00048828125, %v2842_v46 }
 0x713   :  { %v2824_v18 = vpop.xlane.xlu1 %2823 }
 0x714   :  { %v5659_v29 = vmul.f32 0.00048828125, %v2835_v12  ;;  %v3050_v52 = vadd.f32 %v3049_v45, %v3048_v47  ;;  %v3042_v26 = vrot.slane %v3041_v0, 1  ;;  %v2828_v5 = vsel %vm1271_vm9, %v2804_v40, %v2824_v18 }
 0x715   :  { %v2850_v42 = vsel %vm1276_vm10, %v2828_v5, 0.0  ;;  %v2821_v43 = vpop.xlane.xlu0 %2820 }
 0x716   :  { %v3043_v58 = vadd.f32 %v3042_v26, %v3041_v0  ;;  %v2851_v54 = vrot.slane %v2850_v42, 4  ;;  %v2827_v1 = vsel %vm1271_vm9, %v2801_v24, %v2821_v43  ;;  %v5664_v4 = vmul.f32 0.00048828125, %v3050_v52 }
 0x717   :  { %v2843_v57 = vsel %vm1276_vm10, %v2827_v1, 0.0  ;;  %v3032_v51 = vpop.xlane.xlu1 %3031  ;;  %v2861_v14 = vmul.f32 %v5659_v29, %v5659_v29 }
 0x718   :  { %v5669_v34 = vmul.f32 0.00048828125, %v3043_v58  ;;  %v2852_v16 = vadd.f32 %v2851_v54, %v2850_v42  ;;  %v2844_v23 = vrot.slane %v2843_v57, 4  ;;  %v3036_v60 = vsel %vm1271_vm9, %v3012_v32, %v3032_v51  ;;  %v3415_v51 = vld [vmem:[%s5895_s3] sm:$0xff] }
 0x719   :  { %v3058_v25 = vsel %vm1276_vm10, %v3036_v60, 0.0  ;;  %2869 = vrot.lane.b32.xlu0 %v2861_v14, %s3437_s29  ;;  %v3029_v48 = vpop.xlane.xlu0 %3028  ;;  %v3070_v40 = vmul.f32 %v5664_v4, %v5664_v4  ;;  %v2862_v32 = vmul.f32 %v5675_v27, %v5675_v27  ;;  %v3416_v14 = vld [vmem:[%s5895_s3 + $0x18] sm:$0xff] }
 0x71a   :  { %v2853_v3 = vrot.slane %v2852_v16, 2  ;;  %v2845_v53 = vadd.f32 %v2844_v23, %v2843_v57  ;;  %v3059_v8 = vrot.slane %v3058_v25, 4  ;;  %v3035_v63 = vsel %vm1271_vm9, %v3009_v37, %v3029_v48  ;;  %v3414_v57 = vld [vmem:[%s5895_s3 + $0x8] sm:$0xff] }
 0x71b   :  { %v3051_v49 = vsel %vm1276_vm10, %v3035_v63, 0.0  ;;  %v3069_v11 = vmul.f32 %v5669_v34, %v5669_v34  ;;  %v6037_v23 = vmov 1  }
 0x71c   :  { %v2854_v62 = vadd.f32 %v2853_v3, %v2852_v16  ;;  %v2846_v15 = vrot.slane %v2845_v53, 2  ;;  %v3060_v61 = vadd.f32 %v3059_v8, %v3058_v25  ;;  %v3052_v24 = vrot.slane %v3051_v49, 4  ;;  %v3417_v16 = vld [vmem:[%s5895_s3 + $0x10] sm:$0xff] }
 0x71d   :  { %3077 = vrot.lane.b32.xlu1 %v3069_v11, %s3437_s29  ;;  %3079 = vrot.lane.b32.xlu0 %v3070_v40, %s3437_s29 }
 0x71e   :  { %v2855_v7 = vrot.slane %v2854_v62, 1  ;;  %v2847_v38 = vadd.f32 %v2846_v15, %v2845_v53  ;;  %v3061_v17 = vrot.slane %v3060_v61, 2  ;;  %v3053_v28 = vadd.f32 %v3052_v24, %v3051_v49 }
 0x720   :  { %v2856_v35 = vadd.f32 %v2855_v7, %v2854_v62  ;;  %v2848_v47 = vrot.slane %v2847_v38, 1  ;;  %v3062_v20 = vadd.f32 %v3061_v17, %v3060_v61  ;;  %v3054_v37 = vrot.slane %v3053_v28, 2 }
 0x721   :  { %2871 = vrot.lane.b32.xlu1 %v2862_v32, %s3437_s29 }
 0x722   :  { %v5687_v12 = vmul.f32 0.00048828125, %v2856_v35  ;;  %v2849_v45 = vadd.f32 %v2848_v47, %v2847_v38  ;;  %v3063_v0 = vrot.slane %v3062_v20, 1  ;;  %v3055_v41 = vadd.f32 %v3054_v37, %v3053_v28 }
 0x724   :  { %v5689_v18 = vmul.f32 0.00048828125, %v2849_v45  ;;  %v3064_v52 = vadd.f32 %v3063_v0, %v3062_v20  ;;  %v3056_v26 = vrot.slane %v3055_v41, 1  ;;  %v2864_v5 = vmul.f32 %v5687_v12, %v5687_v12 }
 0x726   :  { %v5693_v42 = vmul.f32 0.00048828125, %v3064_v52  ;;  %v3057_v43 = vadd.f32 %v3056_v26, %v3055_v41  ;;  %2875 = vrot.lane.b32.xlu0 %v2864_v5, %s3437_s29  ;;  %v2863_v58 = vmul.f32 %v5689_v18, %v5689_v18 }
 0x728   :  { %v5698_v54 = vmul.f32 0.00048828125, %v3057_v43  ;;  %2873 = vrot.lane.b32.xlu1 %v2863_v58, %s3437_s29  ;;  %v3072_v1 = vmul.f32 %v5693_v42, %v5693_v42 }
 0x72a   :  { %3083 = vrot.lane.b32.xlu0 %v3072_v1, %s3437_s29  ;;  %v3071_v46 = vmul.f32 %v5698_v54, %v5698_v54 }
 0x72c   :  { %3081 = vrot.lane.b32.xlu1 %v3071_v46, %s3437_s29 }
 0x72e   :  { %2927 = vrot.lane.b32.xlu0 %v3414_v57, %s3447_s27 }
 0x730   :  { %2925 = vrot.lane.b32.xlu1 %v3415_v51, %s3447_s27 }
 0x732   :  { %2931 = vrot.lane.b32.xlu0 %v3416_v14, %s3447_s27 }
 0x734   :  { %2929 = vrot.lane.b32.xlu1 %v3417_v16, %s3447_s27 }
 0x736   :  { %2974 = vperm.xlu0 %3357, %v3414_v57  }
 0x738   :  { %2899 = vperm.xlu1 %3355, %v5659_v29  }
 0x73a   :  { %3358 = vset.pattern.permute.xlu0 %v5992_v9 }
 0x73b   :  { %2904 = vperm.xlu0 %3358, %v5675_v27  }
 0x73c   :  { %2909 = vperm.xlu1 %3355, %v5689_v18  }
 0x73f   :  { %3107 = vperm.xlu0 %3358, %v5669_v34  }
 0x740   :  { %2914 = vperm.xlu1 %3355, %v5687_v12  }
 0x743   :  { %3122 = vperm.xlu0 %3358, %v5693_v42  }
 0x744   :  { %3356 = vset.pattern.permute.xlu1 %v3446_v22 }
 0x745   :  { %2970 = vperm.xlu1 %3356, %v3415_v51  }
 0x747   :  { %3360 = vset.pattern.permute.xlu0 %v6037_v23 }
 0x749   :  { %2978 = vperm.xlu1 %3356, %v3417_v16  }
 0x74d   :  { %2982 = vperm.xlu1 %3356, %v3416_v14  }
 0x751   :  { %3359 = vset.pattern.permute.xlu1 %v5992_v9 }
 0x752   :  { %3112 = vperm.xlu1 %3359, %v5664_v4  }
 0x756   :  { %3117 = vperm.xlu1 %3359, %v5698_v54  }
 0x75a   :  { %3361 = vset.pattern.permute.xlu1 %v6037_v23 }
 0x78b   :  { %v2870_v60 = vpop.permute.xlu0 %2869 }
 0x78c   :  { %v2881_v25 = vsub.f32 %v5659_v29, %v2870_v60 }
 0x78e   :  { %v2885_v48 = vmax.f32 %v2881_v25, 0.0 }
 0x78f   :  { %v3078_v3 = vpop.permute.xlu1 %3077  ;;  %v3080_v53 = vpop.permute.xlu0 %3079 }
 0x790   :  { %v3089_v22 = vsub.f32 %v5669_v34, %v3078_v3  ;;  %v2889_v63 = vadd.f32 1e-05, %v2885_v48  ;;  %v3090_v11 = vsub.f32 %v5664_v4, %v3080_v53 }
 0x792   :  { %v3093_v8 = vmax.f32 %v3089_v22, 0.0  ;;  %3394 = vrsqrt.f32 %v2889_v63  ;;  %v3094_v15 = vmax.f32 %v3090_v11, 0.0 }
 0x793   :  { %v2872_v49 = vpop.permute.xlu1 %2871 }
 0x794   :  { %v3097_v9 = vadd.f32 1e-05, %v3093_v8  ;;  %v2882_v40 = vsub.f32 %v5675_v27, %v2872_v49  ;;  %v3098_v17 = vadd.f32 1e-05, %v3094_v15 }
 0x796   :  { %v2886_v62 = vmax.f32 %v2882_v40, 0.0  ;;  %3396 = vrsqrt.f32 %v3097_v9 }
 0x798   :  { %v2890_v61 = vadd.f32 1e-05, %v2886_v62  ;;  %v2876_v24 = vpop.permute.xlu0 %2875 }
 0x799   :  { %v2884_v29 = vsub.f32 %v5687_v12, %v2876_v24 }
 0x79a   :  { %3398 = vrsqrt.f32 %v2890_v61  ;;  %v2874_v7 = vpop.permute.xlu1 %2873 }
 0x79b   :  { %v2888_v34 = vmax.f32 %v2884_v29, 0.0  ;;  %v2883_v38 = vsub.f32 %v5689_v18, %v2874_v7 }
 0x79c   :  { %v3084_v28 = vpop.permute.xlu0 %3083  ;;  %v3395_v45 = vpop.eup %3394 }
 0x79d   :  { %v2892_v32 = vadd.f32 1e-05, %v2888_v34  ;;  %v2887_v4 = vmax.f32 %v2883_v38, 0.0  ;;  %v3092_v35 = vsub.f32 %v5693_v42, %v3084_v28 }
 0x79e   :  { %v3082_v27 = vpop.permute.xlu1 %3081 }
 0x79f   :  { %3400 = vrsqrt.f32 %v2892_v32  ;;  %v2891_v47 = vadd.f32 1e-05, %v2887_v4  ;;  %v3096_v20 = vmax.f32 %v3092_v35, 0.0  ;;  %v3091_v37 = vsub.f32 %v5698_v54, %v3082_v27 }
 0x7a0   :  { %3402 = vrsqrt.f32 %v3098_v17  ;;  %v3397_v0 = vpop.eup %3396  ;;  %v2928_v26 = vpop.permute.xlu0 %2927 }
 0x7a1   :  { %3404 = vrsqrt.f32 %v2891_v47  ;;  %v3095_v12 = vmax.f32 %v3091_v37, 0.0  ;;  %v3100_v52 = vadd.f32 1e-05, %v3096_v20 }
 0x7a2   :  { %v2926_v41 = vpop.permute.xlu1 %2925 }
 0x7a3   :  { %v3099_v18 = vadd.f32 1e-05, %v3095_v12  ;;  %v2937_v5 = vmul.f32 %v3395_v45, %v2926_v41  ;;  %v3133_v43 = vmul.f32 %v3397_v0, %v2926_v41 }
 0x7a4   :  { %v3399_v58 = vpop.eup %3398  ;;  %v2932_v1 = vpop.permute.xlu0 %2931 }
 0x7a5   :  { %3406 = vrsqrt.f32 %v3099_v18  ;;  %2943 = vperm.xlu0 %3360, %v2937_v5   ;;  %3139 = vperm.xlu1 %3361, %v3133_v43   ;;  %v2938_v42 = vmul.f32 %v3399_v58, %v2928_v26 }
 0x7a6   :  { %3408 = vrsqrt.f32 %v3100_v52  ;;  %v2930_v54 = vpop.permute.xlu1 %2929 }
 0x7a9   :  { %v3401_v46 = vpop.eup %3400  ;;  %2948 = vperm.xlu1 %3361, %v2938_v42   ;;  %v3419_v42 = vld [vmem:[%s5892_s0 + $0x8] sm:$0xff] }
 0x7aa   :  { %v3403_v57 = vpop.eup %3402  ;;  %v2940_v51 = vmul.f32 %v3401_v46, %v2932_v1  ;;  %v3420_v46 = vld [vmem:[%s5892_s0 + $0x10] sm:$0xff] }
 0x7ab   :  { %v3405_v14 = vpop.eup %3404  ;;  %v3134_v23 = vmul.f32 %v3403_v57, %v2928_v26 }
 0x7ac   :  { %v2939_v16 = vmul.f32 %v3405_v14, %v2930_v54  ;;  %2958 = vperm.xlu0 %3360, %v2940_v51  }
 0x7ae   :  { %2953 = vperm.xlu1 %3361, %v2939_v16  }
 0x7af   :  { %v3407_v60 = vpop.eup %3406 }
 0x7b0   :  { %v3135_v25 = vmul.f32 %v3407_v60, %v2930_v54  ;;  %3144 = vperm.xlu0 %3360, %v3134_v23   ;;  %v3409_v48 = vpop.eup %3408 }
 0x7b1   :  { %v3136_v3 = vmul.f32 %v3409_v48, %v2932_v1 }
 0x7b2   :  { %3149 = vperm.xlu1 %3361, %v3135_v25  }
 0x7b5   :  { %v5742_v49 = vpop.permute.xlu0 %2974 }
 0x7b6   :  { %3154 = vperm.xlu1 %3361, %v3136_v3  }
 0x7b7   :  { %v2900_v22 = vpop.permute.xlu1 %2899 }
 0x7b8   :  { %v2917_v29 = vsub.f32 %v5570_v13, %v2900_v22  ;;  %v2918_v7 = vsub.f32 %v5572_v2, %v2900_v22 }
 0x7ba   :  { %v2905_v9 = vpop.permute.xlu0 %2904 }
 0x7bb   :  { %v5740_v53 = vpop.permute.xlu1 %2909  ;;  %v2919_v47 = vsub.f32 %v5578_v55, %v2905_v9  ;;  %v2920_v20 = vsub.f32 %v5580_v30, %v2905_v9 }
 0x7bc   :  { %v2921_v37 = vsub.f32 %v5614_v10, %v5740_v53  ;;  %v2922_v13 = vsub.f32 %v5616_v19, %v5740_v53 }
 0x7be   :  { %v3108_v62 = vpop.permute.xlu0 %3107 }
 0x7bf   :  { %v2915_v8 = vpop.permute.xlu1 %2914  ;;  %v3125_v34 = vsub.f32 %v5576_v33, %v3108_v62  ;;  %v3126_v38 = vsub.f32 %v5582_v36, %v3108_v62 }
 0x7c0   :  { %v2923_v12 = vsub.f32 %v5610_v44, %v2915_v8  ;;  %v2924_v0 = vsub.f32 %v5612_v56, %v2915_v8  ;;  %v3418_v56 = vld [vmem:[%s5892_s0] sm:$0xff] }
 0x7c2   :  { %v5750_v61 = vpop.permute.xlu0 %3122 }
 0x7c3   :  { %v3131_v41 = vsub.f32 %v5618_v39, %v5750_v61  ;;  %v3132_v55 = vsub.f32 %v5620_v59, %v5750_v61 }
 0x7c4   :  { %v2971_v63 = vpop.permute.xlu1 %2970 }
 0x7c8   :  { %v5744_v11 = vpop.permute.xlu1 %2978 }
 0x7cc   :  { %v5746_v40 = vpop.permute.xlu1 %2982 }
 0x7d1   :  { %v5748_v15 = vpop.permute.xlu1 %3112 }
 0x7d2   :  { %v3127_v19 = vsub.f32 %v5584_v6, %v5748_v15  ;;  %v3128_v5 = vsub.f32 %v5586_v50, %v5748_v15  ;;  %v3421_v50 = vld [vmem:[%s5892_s0 + $0x18] sm:$0xff] }
 0x7d5   :  { %v5752_v24 = vpop.permute.xlu1 %3117 }
 0x7d6   :  { %v3129_v62 = vsub.f32 %v5624_v21, %v5752_v24  ;;  %v3130_v15 = vsub.f32 %v5626_v31, %v5752_v24  ;;  %v3422_v31 = vld [vmem:[%s5892_s0 + $0x20] sm:$0xff] }
 0x824   :  { %v2944_v17 = vpop.permute.xlu0 %2943  ;;  %v3140_v28 = vpop.permute.xlu1 %3139 }
 0x825   :  { %v2961_v32 = vmul.f32 %v2944_v17, %v2917_v29  ;;  %v2962_v4 = vmul.f32 %v2944_v17, %v2918_v7  ;;  %v3157_v35 = vmul.f32 %v3140_v28, %v3125_v34  ;;  %v3158_v27 = vmul.f32 %v3140_v28, %v3126_v38  ;;  %v3423_v34 = vld [vmem:[%s5892_s0 + $0x28] sm:$0xff] }
 0x827   :  { %v2985_v2 = vadd.f32 %v2971_v63, %v2961_v32  ;;  %v2986_v33 = vadd.f32 %v2971_v63, %v2962_v4  ;;  %v3165_v45 = vadd.f32 %v3157_v35, %v2971_v63  ;;  %v3166_v36 = vadd.f32 %v3158_v27, %v2971_v63 }
 0x828   :  { %v2949_v30 = vpop.permute.xlu1 %2948 }
 0x829   :  { %v2993_v52 = vmax.f32 %v2985_v2, 0.0  ;;  %v2994_v10 = vmax.f32 %v2986_v33, 0.0  ;;  %v3173_v18 = vmax.f32 %v3165_v45, 0.0  ;;  %v3174_v26 = vmax.f32 %v3166_v36, 0.0  ;;  %v3425_v33 = vld [vmem:[%s5892_s0 + $0x68] sm:$0xff] }
 0x82a   :  { %v2963_v44 = vmul.f32 %v2949_v30, %v2919_v47  ;;  %v2964_v43 = vmul.f32 %v2949_v30, %v2920_v20 }
 0x82b   :  { %v3181_v58 = vadd.f32 %v3418_v56, %v2993_v52  ;;  %v3182_v1 = vadd.f32 %v3419_v42, %v2994_v10  ;;  %v3183_v6 = vadd.f32 %v3420_v46, %v3173_v18  ;;  %v3184_v54 = vadd.f32 %v3421_v50, %v3174_v26  ;;  %v2959_v57 = vpop.permute.xlu0 %2958 }
 0x82c   :  { %v2987_v51 = vadd.f32 %v5742_v49, %v2963_v44  ;;  %v2988_v14 = vadd.f32 %v5742_v49, %v2964_v43  ;;  %v2967_v16 = vmul.f32 %v2959_v57, %v2923_v12  ;;  %v2968_v23 = vmul.f32 %v2959_v57, %v2924_v0  ;;  %v3428_v57 = vld [vmem:[%s5892_s0 + $0x30] sm:$0xff] }
 0x82d   :  { %v3197_v60 = vmax.f32 %v3181_v58, 0.0  ;;  %v3198_v25 = vmax.f32 %v3182_v1, 0.0  ;;  %v3199_v48 = vmax.f32 %v3183_v6, 0.0  ;;  %v3200_v3 = vmax.f32 %v3184_v54, 0.0  ;;  %v2954_v22 = vpop.permute.xlu1 %2953 }
 0x82e   :  { %v2995_v53 = vmax.f32 %v2987_v51, 0.0  ;;  %v2996_v8 = vmax.f32 %v2988_v14, 0.0  ;;  %v2991_v63 = vadd.f32 %v5746_v40, %v2967_v16  ;;  %v2992_v9 = vadd.f32 %v5746_v40, %v2968_v23  ;;  %v3429_v14 = vld [vmem:[%s5892_s0 + $0x38] sm:$0xff] }
 0x82f   :  { %3213 = vst [vmem:[%s5897_s5] sm:$0xff] %v3197_v60  ;;  %3214 = vst [vmem:[%s5897_s5 + $0x8] sm:$0xff] %v3198_v25  ;;  %v2965_v21 = vmul.f32 %v2954_v22, %v2921_v37  ;;  %v2966_v29 = vmul.f32 %v2954_v22, %v2922_v13  ;;  %v3145_v7 = vpop.permute.xlu0 %3144  ;;  %v3424_v13 = vld [vmem:[%s5892_s0 + $0x60] sm:$0xff]  ;;  %v3431_v25 = vld [vmem:[%s5892_s0 + $0x58] sm:$0xff] }
 0x830   :  { %3215 = vst [vmem:[%s5897_s5 + $0x10] sm:$0xff] %v3199_v48  ;;  %3216 = vst [vmem:[%s5897_s5 + $0x18] sm:$0xff] %v3200_v3  ;;  %v3185_v24 = vadd.f32 %v3422_v31, %v2995_v53  ;;  %v3186_v38 = vadd.f32 %v3423_v34, %v2996_v8  ;;  %v2999_v17 = vmax.f32 %v2991_v63, 0.0  ;;  %v3000_v28 = vmax.f32 %v2992_v9, 0.0  ;;  %v3432_v8 = vld [vmem:[%s5892_s0 + $0x70] sm:$0xff]  ;;  %v3433_v9 = vld [vmem:[%s5892_s0 + $0x78] sm:$0xff] }
 0x831   :  { %v2989_v32 = vadd.f32 %v5744_v11, %v2965_v21  ;;  %v2990_v4 = vadd.f32 %v5744_v11, %v2966_v29  ;;  %v3159_v35 = vmul.f32 %v3145_v7, %v3127_v19  ;;  %v3160_v27 = vmul.f32 %v3145_v7, %v3128_v5  ;;  %v3150_v47 = vpop.permute.xlu1 %3149  ;;  %v3426_v19 = vld [vmem:[%s5892_s0 + $0x40] sm:$0xff] }
 0x832   :  { %v3201_v20 = vmax.f32 %v3185_v24, 0.0  ;;  %v3202_v37 = vmax.f32 %v3186_v38, 0.0  ;;  %v3193_v2 = vadd.f32 %v3424_v13, %v2999_v17  ;;  %v3194_v45 = vadd.f32 %v3425_v33, %v3000_v28 }
 0x833   :  { %v2997_v36 = vmax.f32 %v2989_v32, 0.0  ;;  %v2998_v12 = vmax.f32 %v2990_v4, 0.0  ;;  %v3167_v0 = vadd.f32 %v3159_v35, %v5742_v49  ;;  %v3168_v30 = vadd.f32 %v3160_v27, %v5742_v49  ;;  %v3427_v49 = vld [vmem:[%s5892_s0 + $0x48] sm:$0xff] }
 0x834   :  { %3217 = vst [vmem:[%s5897_s5 + $0x20] sm:$0xff] %v3201_v20  ;;  %3218 = vst [vmem:[%s5897_s5 + $0x28] sm:$0xff] %v3202_v37  ;;  %v3209_v52 = vmax.f32 %v3193_v2, 0.0  ;;  %v3210_v10 = vmax.f32 %v3194_v45, 0.0  ;;  %v3161_v18 = vmul.f32 %v3150_v47, %v3129_v62  ;;  %v3162_v26 = vmul.f32 %v3150_v47, %v3130_v15 }
 0x835   :  { %v3189_v5 = vadd.f32 %v3426_v19, %v2997_v36  ;;  %v3190_v44 = vadd.f32 %v3427_v49, %v2998_v12  ;;  %v3175_v43 = vmax.f32 %v3167_v0, 0.0  ;;  %v3176_v56 = vmax.f32 %v3168_v30, 0.0  ;;  %v3155_v58 = vpop.permute.xlu1 %3154 }
 0x836   :  { %3225 = vst [vmem:[%s5897_s5 + $0x60] sm:$0xff] %v3209_v52  ;;  %3226 = vst [vmem:[%s5897_s5 + $0x68] sm:$0xff] %v3210_v10  ;;  %v3169_v42 = vadd.f32 %v3161_v18, %v5744_v11  ;;  %v3170_v1 = vadd.f32 %v3162_v26, %v5744_v11  ;;  %v3163_v46 = vmul.f32 %v3155_v58, %v3131_v41 }
 0x837   :  { %v3164_v6 = vmul.f32 %v3155_v58, %v3132_v55  ;;  %v3205_v50 = vmax.f32 %v3189_v5, 0.0  ;;  %v3206_v54 = vmax.f32 %v3190_v44, 0.0  ;;  %v3187_v51 = vadd.f32 %v3428_v57, %v3175_v43  ;;  %v3430_v55 = vld [vmem:[%s5892_s0 + $0x50] sm:$0xff] }
 0x838   :  { %v3188_v11 = vadd.f32 %v3429_v14, %v3176_v56  ;;  %v3177_v16 = vmax.f32 %v3169_v42, 0.0  ;;  %v3178_v23 = vmax.f32 %v3170_v1, 0.0  ;;  %v3171_v39 = vadd.f32 %v3163_v46, %v5746_v40 }
 0x839   :  { %v3172_v41 = vadd.f32 %v3164_v6, %v5746_v40  ;;  %3221 = vst [vmem:[%s5897_s5 + $0x40] sm:$0xff] %v3205_v50  ;;  %3222 = vst [vmem:[%s5897_s5 + $0x48] sm:$0xff] %v3206_v54  ;;  %v3203_v59 = vmax.f32 %v3187_v51, 0.0 }
 0x83a   :  { %v3204_v61 = vmax.f32 %v3188_v11, 0.0  ;;  %v3191_v60 = vadd.f32 %v3430_v55, %v3177_v16  ;;  %v3192_v40 = vadd.f32 %v3431_v25, %v3178_v23  ;;  %v3179_v48 = vmax.f32 %v3171_v39, 0.0 }
 0x83b   :  { %v3180_v3 = vmax.f32 %v3172_v41, 0.0  ;;  %3219 = vst [vmem:[%s5897_s5 + $0x30] sm:$0xff] %v3203_v59 }
 0x83c   :  { %3220 = vst [vmem:[%s5897_s5 + $0x38] sm:$0xff] %v3204_v61  ;;  %v3207_v22 = vmax.f32 %v3191_v60, 0.0  ;;  %v3208_v53 = vmax.f32 %v3192_v40, 0.0  ;;  %v3195_v63 = vadd.f32 %v3432_v8, %v3179_v48 }
 0x83d   :  { %v3196_v62 = vadd.f32 %v3433_v9, %v3180_v3 }
 0x83e   :  { %3223 = vst [vmem:[%s5897_s5 + $0x50] sm:$0xff] %v3207_v22  ;;  %3224 = vst [vmem:[%s5897_s5 + $0x58] sm:$0xff] %v3208_v53  ;;  %v3211_v15 = vmax.f32 %v3195_v63, 0.0 }
 0x83f   :  { %v3212_v21 = vmax.f32 %v3196_v62, 0.0 }
 0x840   :  { %3227 = vst [vmem:[%s5897_s5 + $0x70] sm:$0xff] %v3211_v15 }
 0x841   :  { %3228 = vst [vmem:[%s5897_s5 + $0x78] sm:$0xff] %v3212_v21 }

</bundles_post_ra>
